<compile_context>
chip_gen: v6e
topology: v6e:2x2x1
jax: 0.10.0
libtpu: 0.0.40
codegen_flags: <defaults>
</compile_context>

<pallas_src>
import jax
import jax.numpy as jnp
from jax.experimental import pallas as pl
from jax.experimental.pallas import tpu as pltpu

IN_FEATURES = 75 * 75 * 3           # 16875
H1, H2, OUT = 128, 64, 9
OUT_PAD = 128                       # lane-dense output (sliced back to 9)
K_PAD = 132 * 128                   # 16896: smallest lane multiple >= 16875
MAX_B_TILE = 256                    # cap on batch tile (VMEM-safe on v7x too)


def _mlp_kernel(x_ref, w1_ref, b1_ref, w2_ref, b2_ref, w3_ref, b3_ref, o_ref):
    """Fused fc1+ReLU, fc2+ReLU, fc3 for one batch tile.

    x_ref:  (B_TILE, K_PAD) bf16      w1_ref: (K_PAD, H1) bf16 (VMEM-resident)
    b1_ref: (1, H1) f32               w2_ref: (H1, H2) f32
    b2_ref: (1, H2) f32               w3_ref: (H2, OUT_PAD) f32 (zero-padded)
    b3_ref: (1, OUT_PAD) f32          o_ref:  (B_TILE, OUT_PAD) f32
    """
    h1 = jnp.dot(x_ref[...], w1_ref[...], preferred_element_type=jnp.float32)
    h1 = jnp.maximum(h1 + b1_ref[...], 0.0)
    h2 = jnp.dot(h1, w2_ref[...], preferred_element_type=jnp.float32)
    h2 = jnp.maximum(h2 + b2_ref[...], 0.0)
    h3 = jnp.dot(h2, w3_ref[...], preferred_element_type=jnp.float32) + b3_ref[...]
    o_ref[...] = h3.astype(o_ref.dtype)


def prepare_params(w1, b1, w2, b2, w3, b3):
    """One-time parameter prep (hoisted out of the per-call path):
    pad W1's K dim to K_PAD and cast the big streamed weight to bf16;
    pad W3/b3 to 128 output lanes so the kernel's store is lane-dense."""
    w1p = jnp.pad(w1.astype(jnp.bfloat16), ((0, K_PAD - IN_FEATURES), (0, 0)))
    w3p = jnp.pad(w3.astype(jnp.float32), ((0, 0), (0, OUT_PAD - OUT)))
    b3p = jnp.pad(b3.astype(jnp.float32), ((0, 0), (0, OUT_PAD - OUT)))
    return (w1p,
            b1.astype(jnp.float32), w2.astype(jnp.float32),
            b2.astype(jnp.float32), w3p, b3p)


@jax.jit
def mlp_forward(x_nchw, w1p, b1, w2, b2, w3p, b3p):
    """x_nchw: [B, 3, 75, 75].  Params from prepare_params()."""
    B = x_nchw.shape[0]
    b_tile = min(MAX_B_TILE, pl.cdiv(B, 16) * 16)   # 16 for tiny B, up to 256
    b_pad = pl.cdiv(B, b_tile) * b_tile
    n_bt = b_pad // b_tile

    # PyTorch x.view(-1, 75*75*3) on contiguous NCHW == reshape(B, C*H*W).
    x = x_nchw.reshape(B, -1).astype(jnp.bfloat16)
    x = jnp.pad(x, ((0, b_pad - B), (0, K_PAD - IN_FEATURES)))

    out = pl.pallas_call(
        _mlp_kernel,
        out_shape=jax.ShapeDtypeStruct((b_pad, OUT_PAD), jnp.float32),
        grid_spec=pltpu.PrefetchScalarGridSpec(
            num_scalar_prefetch=0,
            grid=(n_bt,),
            in_specs=[
                pl.BlockSpec((b_tile, K_PAD), lambda b: (b, 0)),    # x tile
                pl.BlockSpec((K_PAD, H1),     lambda b: (0, 0)),    # W1 (resident)
                pl.BlockSpec((1, H1),         lambda b: (0, 0)),    # b1
                pl.BlockSpec((H1, H2),        lambda b: (0, 0)),    # W2
                pl.BlockSpec((1, H2),         lambda b: (0, 0)),    # b2
                pl.BlockSpec((H2, OUT_PAD),   lambda b: (0, 0)),    # W3 (padded)
                pl.BlockSpec((1, OUT_PAD),    lambda b: (0, 0)),    # b3 (padded)
            ],
            out_specs=pl.BlockSpec((b_tile, OUT_PAD), lambda b: (b, 0)),
        ),
        compiler_params=pltpu.CompilerParams(
            dimension_semantics=("parallel",),
            vmem_limit_bytes=64 * 1024 * 1024),
    )(x, w1p, b1, w2, b2, w3p, b3p)

    return out[:B, :OUT]


def _init_linear(key, fan_in, fan_out):
    # Deterministic init mimicking PyTorch nn.Linear default: U(-1/sqrt(fan_in), +)
    kw, kb = jax.random.split(key)
    bound = 1.0 / jnp.sqrt(jnp.float32(fan_in))
    w = jax.random.uniform(kw, (fan_in, fan_out), jnp.float32, -bound, bound)
    b = jax.random.uniform(kb, (1, fan_out), jnp.float32, -bound, bound)
    return w, b


if __name__ == "__main__":
    root = jax.random.PRNGKey(0)
    kx, k1, k2, k3 = jax.random.split(root, 4)

    # Small deterministic input consistent with the module's expected NCHW image.
    B = 2
    x = jax.random.normal(kx, (B, 3, 75, 75), jnp.float32)

    w1, b1 = _init_linear(k1, IN_FEATURES, H1)
    w2, b2 = _init_linear(k2, H1, H2)
    w3, b3 = _init_linear(k3, H2, OUT)

    params = prepare_params(w1, b1, w2, b2, w3, b3)   # one-time pad + bf16 cast
    out = mlp_forward(x, *params)
    out = jax.block_until_ready(out)

    # Pure-JAX reference using the same bf16 rounding on the fc1 operands
    # (the kernel streams x/W1 in bf16 with an f32 MXU accumulator).
    xf = x.reshape(B, -1)
    x_bf = xf.astype(jnp.bfloat16).astype(jnp.float32)
    w1_bf = w1.astype(jnp.bfloat16).astype(jnp.float32)
    ref = jnp.maximum(x_bf @ w1_bf + b1, 0.0)
    ref = jnp.maximum(ref @ w2 + b2, 0.0)
    ref = ref @ w3 + b3

    assert out.shape == (B, OUT)
    assert jnp.allclose(out, ref, atol=2e-2, rtol=2e-2), float(
        jnp.max(jnp.abs(out - ref)))

    print("KERNEL_OK")
</pallas_src>

<mosaic_0001>
module attributes {stable_mosaic.version = 11 : i64} {
  func.func @_mlp_kernel(%arg0: i32, %arg1: memref<16x16896xbf16, #tpu.memory_space<vmem>>, %arg2: memref<16896x128xbf16, #tpu.memory_space<vmem>>, %arg3: memref<1x128xf32, #tpu.memory_space<vmem>>, %arg4: memref<128x64xf32, #tpu.memory_space<vmem>>, %arg5: memref<1x64xf32, #tpu.memory_space<vmem>>, %arg6: memref<64x128xf32, #tpu.memory_space<vmem>>, %arg7: memref<1x128xf32, #tpu.memory_space<vmem>>, %arg8: memref<16x128xf32, #tpu.memory_space<vmem>>) attributes {dimension_semantics = [#tpu.dimension_semantics<parallel>], iteration_bounds = array<i64: 1>, scalar_prefetch = 0 : i64, scratch_operands = 0 : i64, tpu.core_type = #tpu.core_type<tc>, window_params = [{transform_indices = @transform_0, window_bounds = array<i64: 16, 16896>}, {pipeline_mode = #tpu.pipeline_mode<synchronous>, transform_indices = @transform_1, window_bounds = array<i64: 16896, 128>}, {pipeline_mode = #tpu.pipeline_mode<synchronous>, transform_indices = @transform_2, window_bounds = array<i64: 1, 128>}, {pipeline_mode = #tpu.pipeline_mode<synchronous>, transform_indices = @transform_3, window_bounds = array<i64: 128, 64>}, {pipeline_mode = #tpu.pipeline_mode<synchronous>, transform_indices = @transform_4, window_bounds = array<i64: 1, 64>}, {pipeline_mode = #tpu.pipeline_mode<synchronous>, transform_indices = @transform_5, window_bounds = array<i64: 64, 128>}, {pipeline_mode = #tpu.pipeline_mode<synchronous>, transform_indices = @transform_6, window_bounds = array<i64: 1, 128>}, {transform_indices = @transform_7, window_bounds = array<i64: 16, 128>}]} {
    %c0 = arith.constant 0 : index
    %c0_0 = arith.constant 0 : index
    %0 = vector.load %arg1[%c0, %c0_0] : memref<16x16896xbf16, #tpu.memory_space<vmem>>, vector<16x16896xbf16>
    %c0_1 = arith.constant 0 : index
    %c0_2 = arith.constant 0 : index
    %1 = vector.load %arg2[%c0_1, %c0_2] : memref<16896x128xbf16, #tpu.memory_space<vmem>>, vector<16896x128xbf16>
    %cst = arith.constant dense<0.000000e+00> : vector<16x128xf32>
    %2 = tpu.matmul %0, %1, %cst {dimension_numbers = #tpu.dot_dimension_numbers<[1], [0], [0], [1], [0, 0, 1, 1], [], []>} : vector<16x16896xbf16>, vector<16896x128xbf16>, vector<16x128xf32> -> vector<16x128xf32>
    %c0_3 = arith.constant 0 : index
    %c0_4 = arith.constant 0 : index
    %3 = vector.load %arg3[%c0_3, %c0_4] : memref<1x128xf32, #tpu.memory_space<vmem>>, vector<1x128xf32>
    %4 = vector.broadcast %3 : vector<1x128xf32> to vector<16x128xf32>
    %5 = arith.addf %2, %4 : vector<16x128xf32>
    %cst_5 = arith.constant 0.000000e+00 : f32
    %6 = vector.broadcast %cst_5 : f32 to vector<16x128xf32>
    %7 = arith.maximumf %5, %6 : vector<16x128xf32>
    %c0_6 = arith.constant 0 : index
    %c0_7 = arith.constant 0 : index
    %8 = vector.load %arg4[%c0_6, %c0_7] : memref<128x64xf32, #tpu.memory_space<vmem>>, vector<128x64xf32>
    %cst_8 = arith.constant dense<0.000000e+00> : vector<16x64xf32>
    %9 = tpu.matmul %7, %8, %cst_8 {dimension_numbers = #tpu.dot_dimension_numbers<[1], [0], [0], [1], [0, 0, 1, 1], [], []>} : vector<16x128xf32>, vector<128x64xf32>, vector<16x64xf32> -> vector<16x64xf32>
    %c0_9 = arith.constant 0 : index
    %c0_10 = arith.constant 0 : index
    %10 = vector.load %arg5[%c0_9, %c0_10] : memref<1x64xf32, #tpu.memory_space<vmem>>, vector<1x64xf32>
    %11 = vector.broadcast %10 : vector<1x64xf32> to vector<16x64xf32>
    %12 = arith.addf %9, %11 : vector<16x64xf32>
    %cst_11 = arith.constant 0.000000e+00 : f32
    %13 = vector.broadcast %cst_11 : f32 to vector<16x64xf32>
    %14 = arith.maximumf %12, %13 : vector<16x64xf32>
    %c0_12 = arith.constant 0 : index
    %c0_13 = arith.constant 0 : index
    %15 = vector.load %arg6[%c0_12, %c0_13] : memref<64x128xf32, #tpu.memory_space<vmem>>, vector<64x128xf32>
    %cst_14 = arith.constant dense<0.000000e+00> : vector<16x128xf32>
    %16 = tpu.matmul %14, %15, %cst_14 {dimension_numbers = #tpu.dot_dimension_numbers<[1], [0], [0], [1], [0, 0, 1, 1], [], []>} : vector<16x64xf32>, vector<64x128xf32>, vector<16x128xf32> -> vector<16x128xf32>
    %c0_15 = arith.constant 0 : index
    %c0_16 = arith.constant 0 : index
    %17 = vector.load %arg7[%c0_15, %c0_16] : memref<1x128xf32, #tpu.memory_space<vmem>>, vector<1x128xf32>
    %18 = vector.broadcast %17 : vector<1x128xf32> to vector<16x128xf32>
    %19 = arith.addf %16, %18 : vector<16x128xf32>
    %c0_17 = arith.constant 0 : index
    %c0_18 = arith.constant 0 : index
    %20 = vector.load %arg8[%c0_17, %c0_18] : memref<16x128xf32, #tpu.memory_space<vmem>>, vector<16x128xf32>
    tpu.vector_store %arg8[%c0_17, %c0_18], %19 {strides = array<i32>} : memref<16x128xf32, #tpu.memory_space<vmem>>, vector<16x128xf32>,
    return
  }
  func.func @transform_0(%arg0: i32) -> (i32, i32) {
    %c0_i32 = arith.constant 0 : i32
    %c0_i32_0 = arith.constant 0 : i32
    return %arg0, %c0_i32 : i32, i32
  }
  func.func @transform_1(%arg0: i32) -> (i32, i32) {
    %c0_i32 = arith.constant 0 : i32
    %c0_i32_0 = arith.constant 0 : i32
    %c0_i32_1 = arith.constant 0 : i32
    return %c0_i32, %c0_i32_0 : i32, i32
  }
  func.func @transform_2(%arg0: i32) -> (i32, i32) {
    %c0_i32 = arith.constant 0 : i32
    %c0_i32_0 = arith.constant 0 : i32
    %c0_i32_1 = arith.constant 0 : i32
    return %c0_i32, %c0_i32_0 : i32, i32
  }
  func.func @transform_3(%arg0: i32) -> (i32, i32) {
    %c0_i32 = arith.constant 0 : i32
    %c0_i32_0 = arith.constant 0 : i32
    %c0_i32_1 = arith.constant 0 : i32
    return %c0_i32, %c0_i32_0 : i32, i32
  }
  func.func @transform_4(%arg0: i32) -> (i32, i32) {
    %c0_i32 = arith.constant 0 : i32
    %c0_i32_0 = arith.constant 0 : i32
    %c0_i32_1 = arith.constant 0 : i32
    return %c0_i32, %c0_i32_0 : i32, i32
  }
  func.func @transform_5(%arg0: i32) -> (i32, i32) {
    %c0_i32 = arith.constant 0 : i32
    %c0_i32_0 = arith.constant 0 : i32
    %c0_i32_1 = arith.constant 0 : i32
    return %c0_i32, %c0_i32_0 : i32, i32
  }
  func.func @transform_6(%arg0: i32) -> (i32, i32) {
    %c0_i32 = arith.constant 0 : i32
    %c0_i32_0 = arith.constant 0 : i32
    %c0_i32_1 = arith.constant 0 : i32
    return %c0_i32, %c0_i32_0 : i32, i32
  }
  func.func @transform_7(%arg0: i32) -> (i32, i32) {
    %c0_i32 = arith.constant 0 : i32
    %c0_i32_0 = arith.constant 0 : i32
    return %arg0, %c0_i32 : i32, i32
  }
}

</mosaic_0001>

<bundles_post_ra>
// kernel: mlp_forward.1
= control target key start
LH: loop header
LB: loop body
LE: loop exit
PB: predicated region body
PF: predicated region fallthrough
CT: control target
= control target key end

     0   :  { %12 = vsyncpa [#allocation3], 0  ;;  %s17226_s0 = inlined_call_operand.vmem [shape: bf16[16,16896], index: 0, kind: input, shape index: {}]   ;;  %s17227_s1 = inlined_call_operand.hbm [shape: bf16[16896,128], index: 1, kind: input, shape index: {}]   ;;  %s17228_s2 = inlined_call_operand.hbm [shape: f32[1,128], index: 2, kind: input, shape index: {}]   ;;  %s17229_s3 = inlined_call_operand.vmem [shape: f32[128,64], index: 3, kind: input, shape index: {}]   ;;  %s17230_s4 = inlined_call_operand.hbm [shape: f32[1,64], index: 4, kind: input, shape index: {}]   ;;  %s17231_s5 = inlined_call_operand.hbm [shape: f32[64,128], index: 5, kind: input, shape index: {}]   ;;  %s17232_s6 = inlined_call_operand.hbm [shape: f32[1,128], index: 6, kind: input, shape index: {}]   ;;  %s17233_s7 = inlined_call_operand.vmem [shape: f32[16,128], index: 7, kind: output, shape index: {}]  }
   0x1   :  { %13 = vsyncpa [#allocation5], 0 }
   0x2   :  { %14 = vsyncpa [#allocation8], 0  ;;  %s16346_s24 = smov [#allocation4]   ;;  %s16347_s26 = smov [#allocation7]  }
   0x3   :  { %s35_s25 = sshll.u32 %s16346_s24, 4  ;;  %s56_s27 = sshll.u32 %s16347_s26, 4  ;;  %s36_s25 = int_to_ptr.vmem [resolvable:$true] %s35_s25  ;;  %s57_s27 = int_to_ptr.vmem [resolvable:$true] %s56_s27 }
   0x4   :  { %s16248_s28 = scalar_lea.vmem %s36_s25, 16  ;;  %s16252_s29 = scalar_lea.vmem %s36_s25, 32 }
   0x5   :  { %p16249_p0 = scmp.ne.s32.totalorder %s36_s25, %s16248_s28  ;;  %p16253_p1 = scmp.lt.s32.totalorder %s36_s25, %s36_s25 }
   0x6   :  { %p16254_p2 = scmp.lt.s32.totalorder %s16252_s29, %s16248_s28 }
   0x8   :  { %p16255_p3 = por %p16254_p2, %p16253_p1 }
   0xa   :  { %p16256_p4 = pnand %p16255_p3, %p16249_p0 }
   0xc   :  { %16259 = shalt.err (!%p16256_p4)
}
   0xd   :  { %38 = dma.hbm_to_vmem [thread:$0]  %s17228_s2, 16, %s36_s25, [#allocation5]  }
   0xe   :  { %s16268_s9 = scalar_lea.vmem %s57_s27, 1024  ;;  %p16273_p6 = scmp.lt.s32.totalorder %s57_s27, %s57_s27 }
   0xf   :  { %p16269_p5 = scmp.ne.s32.totalorder %s57_s27, %s16268_s9  ;;  %p16274_p7 = scmp.lt.s32.totalorder %s16268_s9, %s16268_s9 }
  0x11   :  { %p16275_p8 = por %p16274_p7, %p16273_p6 }
  0x13   :  { %p16276_p9 = pnand %p16275_p8, %p16269_p5 }
  0x15   :  { %16279 = shalt.err (!%p16276_p9)
}
  0x16   :  { %s16348_s10 = smov 128   ;;  %s16349_s11 = smov 8  }
  0x17   :  { %62 = dma.hbm_to_vmem [thread:$0]  %s17231_s5, 1024, %s57_s27, [#allocation8], %s16348_s10, %s16348_s10, %s16349_s11  }
  0x18   :  { %s16350_s14 = smov [#allocation2]  }
  0x19   :  { %s22_s15 = sshll.u32 %s16350_s14, 4  ;;  %s23_s15 = int_to_ptr.vmem [resolvable:$true] %s22_s15 }
  0x1a   :  { %s16288_s16 = scalar_lea.vmem %s23_s15, 135168  ;;  %p16293_p11 = scmp.lt.s32.totalorder %s23_s15, %s23_s15 }
  0x1b   :  { %p16289_p10 = scmp.ne.s32.totalorder %s23_s15, %s16288_s16  ;;  %p16294_p12 = scmp.lt.s32.totalorder %s16288_s16, %s16288_s16 }
  0x1d   :  { %p16295_p13 = por %p16294_p12, %p16293_p11 }
  0x1f   :  { %p16296_p0 = pnand %p16295_p13, %p16289_p10 }
  0x21   :  { %16299 = shalt.err (!%p16296_p0)
}
  0x22   :  { %s16351_s2 = smov 64   ;;  %s16352_s17 = smov 4  }
  0x23   :  { %28 = dma.hbm_to_vmem [thread:$0]  %s17227_s1, 135168, %s23_s15, [#allocation3], %s16351_s2, %s16351_s2, %s16352_s17  }
  0x24   :  { %s16353_s20 = smov [#allocation6]   ;;  %s16354_s5 = smov [#allocation9]  }
  0x25   :  { %s47_s21 = sshll.u32 %s16353_s20, 4  ;;  %s69_s22 = sshll.u32 %s16354_s5, 4  ;;  %s48_s21 = int_to_ptr.vmem [resolvable:$true] %s47_s21  ;;  %s70_s22 = int_to_ptr.vmem [resolvable:$true] %s69_s22 }
  0x26   :  { %s16308_s23 = scalar_lea.vmem %s48_s21, 16  ;;  %s16312_s24 = scalar_lea.vmem %s48_s21, 32 }
  0x27   :  { %p16309_p1 = scmp.ne.s32.totalorder %s48_s21, %s16308_s23  ;;  %p16313_p2 = scmp.lt.s32.totalorder %s48_s21, %s48_s21 }
  0x28   :  { %p16314_p3 = scmp.lt.s32.totalorder %s16312_s24, %s16308_s23 }
  0x2a   :  { %p16315_p4 = por %p16314_p3, %p16313_p2 }
  0x2c   :  { %p16316_p5 = pnand %p16315_p4, %p16309_p1 }
  0x2e   :  { %16319 = shalt.err (!%p16316_p5)
}
  0x2f   :  { %50 = dma.hbm_to_vmem [thread:$0]  %s17230_s4, 16, %s48_s21, [#allocation5]  }
  0x30   :  { %s16328_s27 = scalar_lea.vmem %s70_s22, 16  ;;  %s16332_s1 = scalar_lea.vmem %s70_s22, 32 }
  0x31   :  { %p16329_p6 = scmp.ne.s32.totalorder %s70_s22, %s16328_s27  ;;  %p16333_p7 = scmp.lt.s32.totalorder %s70_s22, %s70_s22 }
  0x32   :  { %p16334_p8 = scmp.lt.s32.totalorder %s16332_s1, %s16328_s27 }
  0x34   :  { %p16335_p9 = por %p16334_p8, %p16333_p7 }
  0x36   :  { %p16336_p10 = pnand %p16335_p9, %p16329_p6 }
  0x38   :  { %16339 = shalt.err (!%p16336_p10)
}
  0x39   :  { %72 = dma.hbm_to_vmem [thread:$0]  %s17232_s6, 16, %s70_s22, [#allocation8]  }
  0x3a   :  { %16340 = dma.done.wait [#allocation3], 135168  }
  0x3b   :  { %16341 = vsyncadd [#allocation3], 4294832128 }
  0x3c   :  { %16342 = dma.done.wait [#allocation5], 32  }
  0x3d   :  { %16343 = vsyncadd [#allocation5], 4294967264 }
  0x3e   :  { %16344 = dma.done.wait [#allocation8], 1040  }
  0x3f   :  { %16345 = vsyncadd [#allocation8], 4294966256  ;;  %v14986_v0 = vld [vmem:[#allocation2 + $0x78] sm:$0xff]   ;;  %v14990_v4 = vld [vmem:[#allocation2 + $0x70] sm:$0xff]   ;;  %vm12159_vm0 = vcmask 523264  }
  0x40   :  { %v14987_v1 = vld [vmem:[#allocation2 + $0xf8] sm:$0xff]   ;;  %13443 = vmatprep.subr.bf16.mxu0 %v14986_v0  ;;  %v14991_v5 = vld [vmem:[#allocation2 + $0xf0] sm:$0xff]   ;;  %v14994_v8 = vld [vmem:[#allocation2 + $0x68] sm:$0xff]  }
  0x41   :  { %v14988_v2 = vld [vmem:[#allocation2 + $0x38] sm:$0xff]   ;;  %13465 = vmatprep.subr.bf16.mxu1 %v14987_v1  ;;  %v14992_v6 = vld [vmem:[#allocation2 + $0x30] sm:$0xff]   ;;  %v14995_v9 = vld [vmem:[#allocation2 + $0xe8] sm:$0xff]  }
  0x42   :  { %v14989_v3 = vld [vmem:[#allocation2 + $0xb8] sm:$0xff]   ;;  %13444 = vmatpush3.bf16.msra.mxu0 %v14988_v2  ;;  %v14993_v7 = vld [vmem:[#allocation2 + $0xb0] sm:$0xff]   ;;  %v14996_v10 = vld [vmem:[#allocation2 + $0x28] sm:$0xff]  }
  0x43   :  { %13466 = vmatpush3.bf16.msra.mxu1 %v14989_v3  ;;  %13445 = vmatprep.subr.bf16.mxu0 %v14990_v4  ;;  %v14997_v11 = vld [vmem:[#allocation2 + $0xa8] sm:$0xff]   ;;  %v14998_v12 = vld [vmem:[#allocation2 + $0x60] sm:$0xff]   ;;  %v15002_v16 = vld [vmem:[#allocation2 + $0x58] sm:$0xff]  }
  0x44   :  { %13467 = vmatprep.subr.bf16.mxu1 %v14991_v5  ;;  %v14999_v13 = vld [vmem:[#allocation2 + $0xe0] sm:$0xff]   ;;  %v15003_v17 = vld [vmem:[#allocation2 + $0xd8] sm:$0xff]   ;;  %v15006_v20 = vld [vmem:[#allocation2 + $0x50] sm:$0xff]  }
  0x45   :  { %v15000_v14 = vld [vmem:[#allocation2 + $0x20] sm:$0xff]   ;;  %v15004_v18 = vld [vmem:[#allocation2 + $0x18] sm:$0xff]   ;;  %v15007_v21 = vld [vmem:[#allocation2 + $0xd0] sm:$0xff]  }
  0x46   :  { %13446 = vmatpush3.bf16.msra.mxu0 %v14992_v6  ;;  %v15001_v15 = vld [vmem:[#allocation2 + $0xa0] sm:$0xff]   ;;  %v15005_v19 = vld [vmem:[#allocation2 + $0x98] sm:$0xff]   ;;  %v15008_v22 = vld [vmem:[#allocation2 + $0x10] sm:$0xff]  }
  0x47   :  { %13468 = vmatpush3.bf16.msra.mxu1 %v14993_v7  ;;  %13447 = vmatprep.subr.bf16.mxu0 %v14994_v8  ;;  %v15009_v23 = vld [vmem:[#allocation2 + $0x90] sm:$0xff]   ;;  %v15010_v24 = vld [vmem:[#allocation2 + $0x48] sm:$0xff]   ;;  %v15014_v28 = vld [vmem:[#allocation2 + $0x40] sm:$0xff]  }
  0x48   :  { %13469 = vmatprep.subr.bf16.mxu1 %v14995_v9  ;;  %v15011_v25 = vld [vmem:[#allocation2 + $0xc8] sm:$0xff]   ;;  %v15015_v29 = vld [vmem:[#allocation2 + $0xc0] sm:$0xff]   ;;  %v15024_v36 = vld [vmem:[#allocation2 + $0x178] sm:$0xff]  }
  0x49   :  { %v15012_v26 = vld [vmem:[#allocation2 + $0x8] sm:$0xff]   ;;  %v15016_v30 = vld [vmem:[#allocation2] sm:$0xff]   ;;  %v15025_v37 = vld [vmem:[#allocation2 + $0x1f8] sm:$0xff]  }
  0x4a   :  { %13448 = vmatpush3.bf16.msra.mxu0 %v14996_v10  ;;  %v15013_v27 = vld [vmem:[#allocation2 + $0x88] sm:$0xff]   ;;  %v15017_v31 = vld [vmem:[#allocation2 + $0x80] sm:$0xff]   ;;  %v15026_v38 = vld [vmem:[#allocation2 + $0x138] sm:$0xff]  }
  0x4b   :  { %13470 = vmatpush3.bf16.msra.mxu1 %v14997_v11  ;;  %13449 = vmatprep.subr.bf16.mxu0 %v14998_v12  ;;  %v15018_v32 = vld [vmem:[%s17226_s0] ss:$528 sps:$4 sm:$0xff]   ;;  %v15020_v33 = vld [vmem:[%s17226_s0 + $0x4] ss:$528 sps:$4 sm:$0xff]   ;;  %v15021_v34 = vld [vmem:[%s17226_s0 + $0x8] ss:$528 sps:$4 sm:$0xff]  }
  0x4c   :  { %13471 = vmatprep.subr.bf16.mxu1 %v14999_v13  ;;  %v15023_v35 = vld [vmem:[%s17226_s0 + $0xc] ss:$528 sps:$4 sm:$0xff]   ;;  %9368 = vmatprep.mubr.bf16.mxu0 %v15020_v33  ;;  %v15028_v40 = vld [vmem:[#allocation2 + $0x170] sm:$0xff]   ;;  %v15036_v48 = vld [vmem:[#allocation2 + $0x160] sm:$0xff]  }
  0x4d   :  { %9409 = vmatprep.mubr.bf16.mxu1 %v15023_v35  ;;  %v15027_v39 = vld [vmem:[#allocation2 + $0x1b8] sm:$0xff]   ;;  %v15029_v41 = vld [vmem:[#allocation2 + $0x1f0] sm:$0xff]   ;;  %v15032_v44 = vld [vmem:[#allocation2 + $0x168] sm:$0xff]  }
  0x4e   :  { %13450 = vmatpush3.bf16.msra.mxu0 %v15000_v14  ;;  %v15030_v42 = vld [vmem:[#allocation2 + $0x130] sm:$0xff]   ;;  %v15033_v45 = vld [vmem:[#allocation2 + $0x1e8] sm:$0xff]   ;;  %v15037_v49 = vld [vmem:[#allocation2 + $0x1e0] sm:$0xff]  }
  0x4f   :  { %13472 = vmatpush3.bf16.msra.mxu1 %v15001_v15  ;;  %13451 = vmatprep.subr.bf16.mxu0 %v15002_v16  ;;  %v15031_v43 = vld [vmem:[#allocation2 + $0x1b0] sm:$0xff]   ;;  %v15034_v46 = vld [vmem:[#allocation2 + $0x128] sm:$0xff]   ;;  %v15038_v50 = vld [vmem:[#allocation2 + $0x120] sm:$0xff]  }
  0x50   :  { %13473 = vmatprep.subr.bf16.mxu1 %v15003_v17  ;;  %v15035_v47 = vld [vmem:[#allocation2 + $0x1a8] sm:$0xff]   ;;  %v15039_v51 = vld [vmem:[#allocation2 + $0x1a0] sm:$0xff]   ;;  %v15040_v52 = vld [vmem:[#allocation2 + $0x158] sm:$0xff]  }
  0x51   :  { %v15041_v53 = vld [vmem:[#allocation2 + $0x1d8] sm:$0xff]   ;;  %v15044_v56 = vld [vmem:[#allocation2 + $0x150] sm:$0xff]   ;;  %v15048_v60 = vld [vmem:[#allocation2 + $0x148] sm:$0xff]  }
  0x52   :  { %13452 = vmatpush3.bf16.msra.mxu0 %v15004_v18  ;;  %v15042_v54 = vld [vmem:[#allocation2 + $0x118] sm:$0xff]   ;;  %v15045_v57 = vld [vmem:[#allocation2 + $0x1d0] sm:$0xff]   ;;  %v15049_v61 = vld [vmem:[#allocation2 + $0x1c8] sm:$0xff]  }
  0x53   :  { %13474 = vmatpush3.bf16.msra.mxu1 %v15005_v19  ;;  %13453 = vmatprep.subr.bf16.mxu0 %v15006_v20  ;;  %v15043_v55 = vld [vmem:[#allocation2 + $0x198] sm:$0xff]   ;;  %v15046_v58 = vld [vmem:[#allocation2 + $0x110] sm:$0xff]   ;;  %v15050_v62 = vld [vmem:[#allocation2 + $0x108] sm:$0xff]  }
  0x54   :  { %13475 = vmatprep.subr.bf16.mxu1 %v15007_v21  ;;  %v15047_v59 = vld [vmem:[#allocation2 + $0x190] sm:$0xff]   ;;  %v15051_v63 = vld [vmem:[#allocation2 + $0x188] sm:$0xff]   ;;  %v15052_v0 = vld [vmem:[#allocation2 + $0x140] sm:$0xff]  }
  0x55   :  { %v15053_v1 = vld [vmem:[#allocation2 + $0x1c0] sm:$0xff]   ;;  %v15059_v6 = vld [vmem:[%s17226_s0 + $0x18] ss:$528 sps:$4 sm:$0xff]   ;;  %v15061_v7 = vld [vmem:[%s17226_s0 + $0x1c] ss:$528 sps:$4 sm:$0xff]  }
  0x56   :  { %13454 = vmatpush3.bf16.msra.mxu0 %v15008_v22  ;;  %v15054_v2 = vld [vmem:[#allocation2 + $0x100] sm:$0xff]   ;;  %v15062_v8 = vld [vmem:[#allocation2 + $0x278] sm:$0xff]   ;;  %v15066_v12 = vld [vmem:[#allocation2 + $0x270] sm:$0xff]  }
  0x57   :  { %13476 = vmatpush3.bf16.msra.mxu1 %v15009_v23  ;;  %13455 = vmatprep.subr.bf16.mxu0 %v15010_v24  ;;  %v15055_v3 = vld [vmem:[#allocation2 + $0x180] sm:$0xff]   ;;  %v15063_v9 = vld [vmem:[#allocation2 + $0x2f8] sm:$0xff]   ;;  %v15067_v13 = vld [vmem:[#allocation2 + $0x2f0] sm:$0xff]  }
  0x58   :  { %13477 = vmatprep.subr.bf16.mxu1 %v15011_v25  ;;  %v15056_v4 = vld [vmem:[%s17226_s0 + $0x10] ss:$528 sps:$4 sm:$0xff]   ;;  %v15058_v5 = vld [vmem:[%s17226_s0 + $0x14] ss:$528 sps:$4 sm:$0xff]   ;;  %v15064_v10 = vld [vmem:[#allocation2 + $0x238] sm:$0xff]  }
  0x59   :  { %v15065_v11 = vld [vmem:[#allocation2 + $0x2b8] sm:$0xff]   ;;  %v15068_v14 = vld [vmem:[#allocation2 + $0x230] sm:$0xff]   ;;  %v15070_v16 = vld [vmem:[#allocation2 + $0x268] sm:$0xff]  }
  0x5a   :  { %13456 = vmatpush3.bf16.msra.mxu0 %v15012_v26  ;;  %v15069_v15 = vld [vmem:[#allocation2 + $0x2b0] sm:$0xff]   ;;  %v15071_v17 = vld [vmem:[#allocation2 + $0x2e8] sm:$0xff]   ;;  %v15074_v20 = vld [vmem:[#allocation2 + $0x260] sm:$0xff]  }
  0x5b   :  { %13478 = vmatpush3.bf16.msra.mxu1 %v15013_v27  ;;  %13457 = vmatprep.subr.bf16.mxu0 %v15014_v28  ;;  %v15072_v18 = vld [vmem:[#allocation2 + $0x228] sm:$0xff]   ;;  %v15075_v21 = vld [vmem:[#allocation2 + $0x2e0] sm:$0xff]   ;;  %v15078_v24 = vld [vmem:[#allocation2 + $0x258] sm:$0xff]  }
  0x5c   :  { %13479 = vmatprep.subr.bf16.mxu1 %v15015_v29  ;;  %v15073_v19 = vld [vmem:[#allocation2 + $0x2a8] sm:$0xff]   ;;  %v15076_v22 = vld [vmem:[#allocation2 + $0x220] sm:$0xff]   ;;  %v15079_v25 = vld [vmem:[#allocation2 + $0x2d8] sm:$0xff]  }
  0x5d   :  { %v15077_v23 = vld [vmem:[#allocation2 + $0x2a0] sm:$0xff]   ;;  %v15080_v26 = vld [vmem:[#allocation2 + $0x218] sm:$0xff]   ;;  %v15082_v28 = vld [vmem:[#allocation2 + $0x250] sm:$0xff]  }
  0x5e   :  { %13458 = vmatpush3.bf16.msra.mxu0 %v15016_v30  ;;  %v15081_v27 = vld [vmem:[#allocation2 + $0x298] sm:$0xff]   ;;  %v15083_v29 = vld [vmem:[#allocation2 + $0x2d0] sm:$0xff]   ;;  %v15087_v33 = vld [vmem:[#allocation2 + $0x2c8] sm:$0xff]  }
  0x5f   :  { %13480 = vmatpush3.bf16.msra.mxu1 %v15017_v31  ;;  %13487 = vmatprep.subr.bf16.mxu0 %v15024_v36  ;;  %v15084_v30 = vld [vmem:[#allocation2 + $0x210] sm:$0xff]   ;;  %v15089_v35 = vld [vmem:[#allocation2 + $0x288] sm:$0xff]   ;;  %v15090_v36 = vld [vmem:[#allocation2 + $0x240] sm:$0xff]  }
  0x60   :  { %13509 = vmatprep.subr.bf16.mxu1 %v15025_v37  ;;  %v15085_v31 = vld [vmem:[#allocation2 + $0x290] sm:$0xff]   ;;  %v15091_v37 = vld [vmem:[#allocation2 + $0x2c0] sm:$0xff]  }
  0x61   :  { %9369 = vmatmul.mubr.bf16.vlgmr.msra.gmra.mxu0 %v15018_v32  ;;  %v15086_v32 = vld [vmem:[#allocation2 + $0x248] sm:$0xff]  }
  0x62   :  { %9410 = vmatmul.mubr.bf16.vlgmr.msra.gmra.mxu1 %v15021_v34  ;;  %13488 = vmatpush3.bf16.msra.mxu0 %v15026_v38  ;;  %v15088_v34 = vld [vmem:[#allocation2 + $0x208] sm:$0xff]   ;;  %v15092_v38 = vld [vmem:[#allocation2 + $0x200] sm:$0xff]  }
  0x63   :  { %13510 = vmatpush3.bf16.msra.mxu1 %v15027_v39  ;;  %13489 = vmatprep.subr.bf16.mxu0 %v15028_v40  ;;  %v15093_v39 = vld [vmem:[#allocation2 + $0x280] sm:$0xff]  }
  0x64   :  { %13511 = vmatprep.subr.bf16.mxu1 %v15029_v41  ;;  %9450 = vmatprep.mubr.bf16.mxu0 %v15058_v5  ;;  %v15094_v40 = vld [vmem:[%s17226_s0 + $0x20] ss:$528 sps:$4 sm:$0xff]   ;;  %v15096_v41 = vld [vmem:[%s17226_s0 + $0x24] ss:$528 sps:$4 sm:$0xff]   ;;  %v15125_v5 = vld [vmem:[#allocation2 + $0x3c8] sm:$0xff]  }
  0x65   :  { %9491 = vmatprep.mubr.bf16.mxu1 %v15061_v7  ;;  %v15127_v7 = vld [vmem:[#allocation2 + $0x388] sm:$0xff]  }
  0x66   :  { %13490 = vmatpush3.bf16.msra.mxu0 %v15030_v42  ;;  %v15097_v42 = vld [vmem:[%s17226_s0 + $0x28] ss:$528 sps:$4 sm:$0xff]  }
  0x67   :  { %13512 = vmatpush3.bf16.msra.mxu1 %v15031_v43  ;;  %13491 = vmatprep.subr.bf16.mxu0 %v15032_v44  ;;  %v15099_v43 = vld [vmem:[%s17226_s0 + $0x2c] ss:$528 sps:$4 sm:$0xff]  }
  0x68   :  { %13513 = vmatprep.subr.bf16.mxu1 %v15033_v45  ;;  %v15100_v44 = vld [vmem:[#allocation2 + $0x378] sm:$0xff]  }
  0x69   :  { %v15101_v45 = vld [vmem:[#allocation2 + $0x3f8] sm:$0xff]  }
  0x6a   :  { %13492 = vmatpush3.bf16.msra.mxu0 %v15034_v46  ;;  %v15102_v46 = vld [vmem:[#allocation2 + $0x338] sm:$0xff]  }
  0x6b   :  { %13514 = vmatpush3.bf16.msra.mxu1 %v15035_v47  ;;  %13493 = vmatprep.subr.bf16.mxu0 %v15036_v48  ;;  %v15103_v47 = vld [vmem:[#allocation2 + $0x3b8] sm:$0xff]   ;;  %v15104_v48 = vld [vmem:[#allocation2 + $0x370] sm:$0xff]  }
  0x6c   :  { %13515 = vmatprep.subr.bf16.mxu1 %v15037_v49  ;;  %v15105_v49 = vld [vmem:[#allocation2 + $0x3f0] sm:$0xff]  }
  0x6e   :  { %13494 = vmatpush3.bf16.msra.mxu0 %v15038_v50  ;;  %v15106_v50 = vld [vmem:[#allocation2 + $0x330] sm:$0xff]  }
  0x6f   :  { %13516 = vmatpush3.bf16.msra.mxu1 %v15039_v51  ;;  %13495 = vmatprep.subr.bf16.mxu0 %v15040_v52  ;;  %v15107_v51 = vld [vmem:[#allocation2 + $0x3b0] sm:$0xff]   ;;  %v15108_v52 = vld [vmem:[#allocation2 + $0x368] sm:$0xff]  }
  0x70   :  { %13517 = vmatprep.subr.bf16.mxu1 %v15041_v53  ;;  %v15109_v53 = vld [vmem:[#allocation2 + $0x3e8] sm:$0xff]  }
  0x72   :  { %13496 = vmatpush3.bf16.msra.mxu0 %v15042_v54  ;;  %v15110_v54 = vld [vmem:[#allocation2 + $0x328] sm:$0xff]  }
  0x73   :  { %13518 = vmatpush3.bf16.msra.mxu1 %v15043_v55  ;;  %13497 = vmatprep.subr.bf16.mxu0 %v15044_v56  ;;  %v15111_v55 = vld [vmem:[#allocation2 + $0x3a8] sm:$0xff]   ;;  %v15112_v56 = vld [vmem:[#allocation2 + $0x360] sm:$0xff]  }
  0x74   :  { %13519 = vmatprep.subr.bf16.mxu1 %v15045_v57  ;;  %v15113_v57 = vld [vmem:[#allocation2 + $0x3e0] sm:$0xff]  }
  0x76   :  { %13498 = vmatpush3.bf16.msra.mxu0 %v15046_v58  ;;  %v15114_v58 = vld [vmem:[#allocation2 + $0x320] sm:$0xff]  }
  0x77   :  { %13520 = vmatpush3.bf16.msra.mxu1 %v15047_v59  ;;  %13499 = vmatprep.subr.bf16.mxu0 %v15048_v60  ;;  %v15115_v59 = vld [vmem:[#allocation2 + $0x3a0] sm:$0xff]   ;;  %v15116_v60 = vld [vmem:[#allocation2 + $0x358] sm:$0xff]  }
  0x78   :  { %13521 = vmatprep.subr.bf16.mxu1 %v15049_v61  ;;  %v15117_v61 = vld [vmem:[#allocation2 + $0x3d8] sm:$0xff]  }
  0x7a   :  { %13500 = vmatpush3.bf16.msra.mxu0 %v15050_v62  ;;  %v15118_v62 = vld [vmem:[#allocation2 + $0x318] sm:$0xff]  }
  0x7b   :  { %13522 = vmatpush3.bf16.msra.mxu1 %v15051_v63  ;;  %13501 = vmatprep.subr.bf16.mxu0 %v15052_v0  ;;  %v15119_v63 = vld [vmem:[#allocation2 + $0x398] sm:$0xff]   ;;  %v15120_v0 = vld [vmem:[#allocation2 + $0x350] sm:$0xff]  }
  0x7c   :  { %13523 = vmatprep.subr.bf16.mxu1 %v15053_v1  ;;  %v15121_v1 = vld [vmem:[#allocation2 + $0x3d0] sm:$0xff]  }
  0x7e   :  { %13502 = vmatpush3.bf16.msra.mxu0 %v15054_v2  ;;  %v15122_v2 = vld [vmem:[#allocation2 + $0x310] sm:$0xff]  }
  0x7f   :  { %13524 = vmatpush3.bf16.msra.mxu1 %v15055_v3  ;;  %13531 = vmatprep.subr.bf16.mxu0 %v15062_v8  ;;  %v15123_v3 = vld [vmem:[#allocation2 + $0x390] sm:$0xff]   ;;  %v15128_v8 = vld [vmem:[#allocation2 + $0x340] sm:$0xff]  }
  0x80   :  { %13553 = vmatprep.subr.bf16.mxu1 %v15063_v9  ;;  %v15129_v9 = vld [vmem:[#allocation2 + $0x3c0] sm:$0xff]  }
  0x81   :  { %9451 = vmatmul.mubr.bf16.vlgmr.msra.gmra.mxu0 %v15056_v4  ;;  %v15124_v4 = vld [vmem:[#allocation2 + $0x348] sm:$0xff]  }
  0x82   :  { %9492 = vmatmul.mubr.bf16.vlgmr.msra.gmra.mxu1 %v15059_v6  ;;  %13532 = vmatpush3.bf16.msra.mxu0 %v15064_v10  ;;  %v15126_v6 = vld [vmem:[#allocation2 + $0x308] sm:$0xff]   ;;  %v15130_v10 = vld [vmem:[#allocation2 + $0x300] sm:$0xff]  }
  0x83   :  { %13554 = vmatpush3.bf16.msra.mxu1 %v15065_v11  ;;  %13533 = vmatprep.subr.bf16.mxu0 %v15066_v12  ;;  %v15131_v11 = vld [vmem:[#allocation2 + $0x380] sm:$0xff]  }
  0x84   :  { %13555 = vmatprep.subr.bf16.mxu1 %v15067_v13  ;;  %9532 = vmatprep.mubr.bf16.mxu0 %v15096_v41  ;;  %v15132_v12 = vld [vmem:[%s17226_s0 + $0x30] ss:$528 sps:$4 sm:$0xff]   ;;  %v15134_v13 = vld [vmem:[%s17226_s0 + $0x34] ss:$528 sps:$4 sm:$0xff]   ;;  %v15163_v41 = vld [vmem:[#allocation2 + $0x4c8] sm:$0xff]  }
  0x85   :  { %9573 = vmatprep.mubr.bf16.mxu1 %v15099_v43  ;;  %v15165_v43 = vld [vmem:[#allocation2 + $0x488] sm:$0xff]  }
  0x86   :  { %13534 = vmatpush3.bf16.msra.mxu0 %v15068_v14  ;;  %v15135_v14 = vld [vmem:[%s17226_s0 + $0x38] ss:$528 sps:$4 sm:$0xff]  }
  0x87   :  { %13556 = vmatpush3.bf16.msra.mxu1 %v15069_v15  ;;  %13535 = vmatprep.subr.bf16.mxu0 %v15070_v16  ;;  %v15137_v15 = vld [vmem:[%s17226_s0 + $0x3c] ss:$528 sps:$4 sm:$0xff]  }
  0x88   :  { %13557 = vmatprep.subr.bf16.mxu1 %v15071_v17  ;;  %v15138_v16 = vld [vmem:[#allocation2 + $0x478] sm:$0xff]  }
  0x89   :  { %v15139_v17 = vld [vmem:[#allocation2 + $0x4f8] sm:$0xff]  }
  0x8a   :  { %13536 = vmatpush3.bf16.msra.mxu0 %v15072_v18  ;;  %v15140_v18 = vld [vmem:[#allocation2 + $0x438] sm:$0xff]  }
  0x8b   :  { %13558 = vmatpush3.bf16.msra.mxu1 %v15073_v19  ;;  %13537 = vmatprep.subr.bf16.mxu0 %v15074_v20  ;;  %v15141_v19 = vld [vmem:[#allocation2 + $0x4b8] sm:$0xff]   ;;  %v15142_v20 = vld [vmem:[#allocation2 + $0x470] sm:$0xff]  }
  0x8c   :  { %13559 = vmatprep.subr.bf16.mxu1 %v15075_v21  ;;  %v15143_v21 = vld [vmem:[#allocation2 + $0x4f0] sm:$0xff]  }
  0x8e   :  { %13538 = vmatpush3.bf16.msra.mxu0 %v15076_v22  ;;  %v15144_v22 = vld [vmem:[#allocation2 + $0x430] sm:$0xff]  }
  0x8f   :  { %13560 = vmatpush3.bf16.msra.mxu1 %v15077_v23  ;;  %13539 = vmatprep.subr.bf16.mxu0 %v15078_v24  ;;  %v15145_v23 = vld [vmem:[#allocation2 + $0x4b0] sm:$0xff]   ;;  %v15146_v24 = vld [vmem:[#allocation2 + $0x468] sm:$0xff]  }
  0x90   :  { %13561 = vmatprep.subr.bf16.mxu1 %v15079_v25  ;;  %v15147_v25 = vld [vmem:[#allocation2 + $0x4e8] sm:$0xff]  }
  0x92   :  { %13540 = vmatpush3.bf16.msra.mxu0 %v15080_v26  ;;  %v15148_v26 = vld [vmem:[#allocation2 + $0x428] sm:$0xff]  }
  0x93   :  { %13562 = vmatpush3.bf16.msra.mxu1 %v15081_v27  ;;  %13541 = vmatprep.subr.bf16.mxu0 %v15082_v28  ;;  %v15149_v27 = vld [vmem:[#allocation2 + $0x4a8] sm:$0xff]   ;;  %v15150_v28 = vld [vmem:[#allocation2 + $0x460] sm:$0xff]  }
  0x94   :  { %13563 = vmatprep.subr.bf16.mxu1 %v15083_v29  ;;  %v15151_v29 = vld [vmem:[#allocation2 + $0x4e0] sm:$0xff]  }
  0x96   :  { %13542 = vmatpush3.bf16.msra.mxu0 %v15084_v30  ;;  %v15152_v30 = vld [vmem:[#allocation2 + $0x420] sm:$0xff]  }
  0x97   :  { %13564 = vmatpush3.bf16.msra.mxu1 %v15085_v31  ;;  %13543 = vmatprep.subr.bf16.mxu0 %v15086_v32  ;;  %v15153_v31 = vld [vmem:[#allocation2 + $0x4a0] sm:$0xff]   ;;  %v15154_v32 = vld [vmem:[#allocation2 + $0x458] sm:$0xff]  }
  0x98   :  { %13565 = vmatprep.subr.bf16.mxu1 %v15087_v33  ;;  %v15155_v33 = vld [vmem:[#allocation2 + $0x4d8] sm:$0xff]  }
  0x9a   :  { %13544 = vmatpush3.bf16.msra.mxu0 %v15088_v34  ;;  %v15156_v34 = vld [vmem:[#allocation2 + $0x418] sm:$0xff]  }
  0x9b   :  { %13566 = vmatpush3.bf16.msra.mxu1 %v15089_v35  ;;  %13545 = vmatprep.subr.bf16.mxu0 %v15090_v36  ;;  %v15157_v35 = vld [vmem:[#allocation2 + $0x498] sm:$0xff]   ;;  %v15158_v36 = vld [vmem:[#allocation2 + $0x450] sm:$0xff]  }
  0x9c   :  { %13567 = vmatprep.subr.bf16.mxu1 %v15091_v37  ;;  %v15159_v37 = vld [vmem:[#allocation2 + $0x4d0] sm:$0xff]  }
  0x9e   :  { %13546 = vmatpush3.bf16.msra.mxu0 %v15092_v38  ;;  %v15160_v38 = vld [vmem:[#allocation2 + $0x410] sm:$0xff]  }
  0x9f   :  { %13568 = vmatpush3.bf16.msra.mxu1 %v15093_v39  ;;  %13575 = vmatprep.subr.bf16.mxu0 %v15100_v44  ;;  %v15161_v39 = vld [vmem:[#allocation2 + $0x490] sm:$0xff]   ;;  %v15166_v44 = vld [vmem:[#allocation2 + $0x440] sm:$0xff]  }
  0xa0   :  { %13597 = vmatprep.subr.bf16.mxu1 %v15101_v45  ;;  %v15167_v45 = vld [vmem:[#allocation2 + $0x4c0] sm:$0xff]  }
  0xa1   :  { %9533 = vmatmul.mubr.bf16.vlgmr.msra.gmra.mxu0 %v15094_v40  ;;  %v15162_v40 = vld [vmem:[#allocation2 + $0x448] sm:$0xff]  }
  0xa2   :  { %9574 = vmatmul.mubr.bf16.vlgmr.msra.gmra.mxu1 %v15097_v42  ;;  %13576 = vmatpush3.bf16.msra.mxu0 %v15102_v46  ;;  %v15164_v42 = vld [vmem:[#allocation2 + $0x408] sm:$0xff]   ;;  %v15168_v46 = vld [vmem:[#allocation2 + $0x400] sm:$0xff]  }
  0xa3   :  { %13598 = vmatpush3.bf16.msra.mxu1 %v15103_v47  ;;  %13577 = vmatprep.subr.bf16.mxu0 %v15104_v48  ;;  %v15169_v47 = vld [vmem:[#allocation2 + $0x480] sm:$0xff]  }
  0xa4   :  { %13599 = vmatprep.subr.bf16.mxu1 %v15105_v49  ;;  %9614 = vmatprep.mubr.bf16.mxu0 %v15134_v13  ;;  %v15170_v48 = vld [vmem:[%s17226_s0 + $0x40] ss:$528 sps:$4 sm:$0xff]   ;;  %v15172_v49 = vld [vmem:[%s17226_s0 + $0x44] ss:$528 sps:$4 sm:$0xff]   ;;  %v15201_v13 = vld [vmem:[#allocation2 + $0x5c8] sm:$0xff]  }
  0xa5   :  { %9655 = vmatprep.mubr.bf16.mxu1 %v15137_v15  ;;  %v15203_v15 = vld [vmem:[#allocation2 + $0x588] sm:$0xff]  }
  0xa6   :  { %13578 = vmatpush3.bf16.msra.mxu0 %v15106_v50  ;;  %v15173_v50 = vld [vmem:[%s17226_s0 + $0x48] ss:$528 sps:$4 sm:$0xff]  }
  0xa7   :  { %13600 = vmatpush3.bf16.msra.mxu1 %v15107_v51  ;;  %13579 = vmatprep.subr.bf16.mxu0 %v15108_v52  ;;  %v15175_v51 = vld [vmem:[%s17226_s0 + $0x4c] ss:$528 sps:$4 sm:$0xff]  }
  0xa8   :  { %13601 = vmatprep.subr.bf16.mxu1 %v15109_v53  ;;  %v15176_v52 = vld [vmem:[#allocation2 + $0x578] sm:$0xff]  }
  0xa9   :  { %v15177_v53 = vld [vmem:[#allocation2 + $0x5f8] sm:$0xff]  }
  0xaa   :  { %13580 = vmatpush3.bf16.msra.mxu0 %v15110_v54  ;;  %v15178_v54 = vld [vmem:[#allocation2 + $0x538] sm:$0xff]  }
  0xab   :  { %13602 = vmatpush3.bf16.msra.mxu1 %v15111_v55  ;;  %13581 = vmatprep.subr.bf16.mxu0 %v15112_v56  ;;  %v15179_v55 = vld [vmem:[#allocation2 + $0x5b8] sm:$0xff]   ;;  %v15180_v56 = vld [vmem:[#allocation2 + $0x570] sm:$0xff]  }
  0xac   :  { %13603 = vmatprep.subr.bf16.mxu1 %v15113_v57  ;;  %v15181_v57 = vld [vmem:[#allocation2 + $0x5f0] sm:$0xff]  }
  0xae   :  { %13582 = vmatpush3.bf16.msra.mxu0 %v15114_v58  ;;  %v15182_v58 = vld [vmem:[#allocation2 + $0x530] sm:$0xff]  }
  0xaf   :  { %13604 = vmatpush3.bf16.msra.mxu1 %v15115_v59  ;;  %13583 = vmatprep.subr.bf16.mxu0 %v15116_v60  ;;  %v15183_v59 = vld [vmem:[#allocation2 + $0x5b0] sm:$0xff]   ;;  %v15184_v60 = vld [vmem:[#allocation2 + $0x568] sm:$0xff]  }
  0xb0   :  { %13605 = vmatprep.subr.bf16.mxu1 %v15117_v61  ;;  %v15185_v61 = vld [vmem:[#allocation2 + $0x5e8] sm:$0xff]  }
  0xb2   :  { %13584 = vmatpush3.bf16.msra.mxu0 %v15118_v62  ;;  %v15186_v62 = vld [vmem:[#allocation2 + $0x528] sm:$0xff]  }
  0xb3   :  { %13606 = vmatpush3.bf16.msra.mxu1 %v15119_v63  ;;  %13585 = vmatprep.subr.bf16.mxu0 %v15120_v0  ;;  %v15187_v63 = vld [vmem:[#allocation2 + $0x5a8] sm:$0xff]   ;;  %v15188_v0 = vld [vmem:[#allocation2 + $0x560] sm:$0xff]  }
  0xb4   :  { %13607 = vmatprep.subr.bf16.mxu1 %v15121_v1  ;;  %v15189_v1 = vld [vmem:[#allocation2 + $0x5e0] sm:$0xff]  }
  0xb6   :  { %13586 = vmatpush3.bf16.msra.mxu0 %v15122_v2  ;;  %v15190_v2 = vld [vmem:[#allocation2 + $0x520] sm:$0xff]  }
  0xb7   :  { %13608 = vmatpush3.bf16.msra.mxu1 %v15123_v3  ;;  %13587 = vmatprep.subr.bf16.mxu0 %v15124_v4  ;;  %v15191_v3 = vld [vmem:[#allocation2 + $0x5a0] sm:$0xff]   ;;  %v15192_v4 = vld [vmem:[#allocation2 + $0x558] sm:$0xff]  }
  0xb8   :  { %13609 = vmatprep.subr.bf16.mxu1 %v15125_v5  ;;  %v15193_v5 = vld [vmem:[#allocation2 + $0x5d8] sm:$0xff]  }
  0xba   :  { %13588 = vmatpush3.bf16.msra.mxu0 %v15126_v6  ;;  %v15194_v6 = vld [vmem:[#allocation2 + $0x518] sm:$0xff]  }
  0xbb   :  { %13610 = vmatpush3.bf16.msra.mxu1 %v15127_v7  ;;  %13589 = vmatprep.subr.bf16.mxu0 %v15128_v8  ;;  %v15195_v7 = vld [vmem:[#allocation2 + $0x598] sm:$0xff]   ;;  %v15196_v8 = vld [vmem:[#allocation2 + $0x550] sm:$0xff]  }
  0xbc   :  { %13611 = vmatprep.subr.bf16.mxu1 %v15129_v9  ;;  %v15197_v9 = vld [vmem:[#allocation2 + $0x5d0] sm:$0xff]  }
  0xbe   :  { %13590 = vmatpush3.bf16.msra.mxu0 %v15130_v10  ;;  %v15198_v10 = vld [vmem:[#allocation2 + $0x510] sm:$0xff]  }
  0xbf   :  { %13612 = vmatpush3.bf16.msra.mxu1 %v15131_v11  ;;  %13619 = vmatprep.subr.bf16.mxu0 %v15138_v16  ;;  %v15199_v11 = vld [vmem:[#allocation2 + $0x590] sm:$0xff]   ;;  %v15204_v16 = vld [vmem:[#allocation2 + $0x540] sm:$0xff]  }
  0xc0   :  { %13641 = vmatprep.subr.bf16.mxu1 %v15139_v17  ;;  %v15205_v17 = vld [vmem:[#allocation2 + $0x5c0] sm:$0xff]  }
  0xc1   :  { %9615 = vmatmul.mubr.bf16.vlgmr.msra.gmra.mxu0 %v15132_v12  ;;  %v15200_v12 = vld [vmem:[#allocation2 + $0x548] sm:$0xff]  }
  0xc2   :  { %9656 = vmatmul.mubr.bf16.vlgmr.msra.gmra.mxu1 %v15135_v14  ;;  %13620 = vmatpush3.bf16.msra.mxu0 %v15140_v18  ;;  %v15202_v14 = vld [vmem:[#allocation2 + $0x508] sm:$0xff]   ;;  %v15206_v18 = vld [vmem:[#allocation2 + $0x500] sm:$0xff]  }
  0xc3   :  { %13642 = vmatpush3.bf16.msra.mxu1 %v15141_v19  ;;  %13621 = vmatprep.subr.bf16.mxu0 %v15142_v20  ;;  %v15207_v19 = vld [vmem:[#allocation2 + $0x580] sm:$0xff]  }
  0xc4   :  { %13643 = vmatprep.subr.bf16.mxu1 %v15143_v21  ;;  %9696 = vmatprep.mubr.bf16.mxu0 %v15172_v49  ;;  %v15208_v20 = vld [vmem:[%s17226_s0 + $0x50] ss:$528 sps:$4 sm:$0xff]   ;;  %v15210_v21 = vld [vmem:[%s17226_s0 + $0x54] ss:$528 sps:$4 sm:$0xff]  }
  0xc5   :  { %9737 = vmatprep.mubr.bf16.mxu1 %v15175_v51 }
  0xc6   :  { %13622 = vmatpush3.bf16.msra.mxu0 %v15144_v22  ;;  %v15211_v22 = vld [vmem:[%s17226_s0 + $0x58] ss:$528 sps:$4 sm:$0xff]  }
  0xc7   :  { %13644 = vmatpush3.bf16.msra.mxu1 %v15145_v23  ;;  %13623 = vmatprep.subr.bf16.mxu0 %v15146_v24  ;;  %v15213_v23 = vld [vmem:[%s17226_s0 + $0x5c] ss:$528 sps:$4 sm:$0xff]  }
  0xc8   :  { %13645 = vmatprep.subr.bf16.mxu1 %v15147_v25  ;;  %v15214_v24 = vld [vmem:[#allocation2 + $0x678] sm:$0xff]  }
  0xc9   :  { %v15215_v25 = vld [vmem:[#allocation2 + $0x6f8] sm:$0xff]  }
  0xca   :  { %13624 = vmatpush3.bf16.msra.mxu0 %v15148_v26  ;;  %v15216_v26 = vld [vmem:[#allocation2 + $0x638] sm:$0xff]  }
  0xcb   :  { %13646 = vmatpush3.bf16.msra.mxu1 %v15149_v27  ;;  %13625 = vmatprep.subr.bf16.mxu0 %v15150_v28  ;;  %v15217_v27 = vld [vmem:[#allocation2 + $0x6b8] sm:$0xff]   ;;  %v15218_v28 = vld [vmem:[#allocation2 + $0x670] sm:$0xff]  }
  0xcc   :  { %13647 = vmatprep.subr.bf16.mxu1 %v15151_v29  ;;  %v15219_v29 = vld [vmem:[#allocation2 + $0x6f0] sm:$0xff]  }
  0xce   :  { %13626 = vmatpush3.bf16.msra.mxu0 %v15152_v30  ;;  %v15220_v30 = vld [vmem:[#allocation2 + $0x630] sm:$0xff]  }
  0xcf   :  { %13648 = vmatpush3.bf16.msra.mxu1 %v15153_v31  ;;  %13627 = vmatprep.subr.bf16.mxu0 %v15154_v32  ;;  %v15221_v31 = vld [vmem:[#allocation2 + $0x6b0] sm:$0xff]   ;;  %v15222_v32 = vld [vmem:[#allocation2 + $0x668] sm:$0xff]  }
  0xd0   :  { %13649 = vmatprep.subr.bf16.mxu1 %v15155_v33  ;;  %v15223_v33 = vld [vmem:[#allocation2 + $0x6e8] sm:$0xff]  }
  0xd2   :  { %13628 = vmatpush3.bf16.msra.mxu0 %v15156_v34  ;;  %v15224_v34 = vld [vmem:[#allocation2 + $0x628] sm:$0xff]  }
  0xd3   :  { %13650 = vmatpush3.bf16.msra.mxu1 %v15157_v35  ;;  %13629 = vmatprep.subr.bf16.mxu0 %v15158_v36  ;;  %v15225_v35 = vld [vmem:[#allocation2 + $0x6a8] sm:$0xff]   ;;  %v15226_v36 = vld [vmem:[#allocation2 + $0x660] sm:$0xff]  }
  0xd4   :  { %13651 = vmatprep.subr.bf16.mxu1 %v15159_v37  ;;  %v15227_v37 = vld [vmem:[#allocation2 + $0x6e0] sm:$0xff]  }
  0xd6   :  { %13630 = vmatpush3.bf16.msra.mxu0 %v15160_v38  ;;  %v15228_v38 = vld [vmem:[#allocation2 + $0x620] sm:$0xff]  }
  0xd7   :  { %13652 = vmatpush3.bf16.msra.mxu1 %v15161_v39  ;;  %13631 = vmatprep.subr.bf16.mxu0 %v15162_v40  ;;  %v15229_v39 = vld [vmem:[#allocation2 + $0x6a0] sm:$0xff]   ;;  %v15230_v40 = vld [vmem:[#allocation2 + $0x658] sm:$0xff]  }
  0xd8   :  { %13653 = vmatprep.subr.bf16.mxu1 %v15163_v41  ;;  %v15231_v41 = vld [vmem:[#allocation2 + $0x6d8] sm:$0xff]  }
  0xda   :  { %13632 = vmatpush3.bf16.msra.mxu0 %v15164_v42  ;;  %v15232_v42 = vld [vmem:[#allocation2 + $0x618] sm:$0xff]  }
  0xdb   :  { %13654 = vmatpush3.bf16.msra.mxu1 %v15165_v43  ;;  %13633 = vmatprep.subr.bf16.mxu0 %v15166_v44  ;;  %v15233_v43 = vld [vmem:[#allocation2 + $0x698] sm:$0xff]   ;;  %v15234_v44 = vld [vmem:[#allocation2 + $0x650] sm:$0xff]  }
  0xdc   :  { %13655 = vmatprep.subr.bf16.mxu1 %v15167_v45 }
  0xde   :  { %13634 = vmatpush3.bf16.msra.mxu0 %v15168_v46  ;;  %v15235_v46 = vld [vmem:[#allocation2 + $0x6d0] sm:$0xff]  }
  0xdf   :  { %13656 = vmatpush3.bf16.msra.mxu1 %v15169_v47  ;;  %13663 = vmatprep.subr.bf16.mxu0 %v15176_v52 }
  0xe0   :  { %13685 = vmatprep.subr.bf16.mxu1 %v15177_v53  ;;  %v15238_v53 = vld [vmem:[#allocation2 + $0x648] sm:$0xff]  }
  0xe1   :  { %9697 = vmatmul.mubr.bf16.vlgmr.msra.gmra.mxu0 %v15170_v48  ;;  %v15236_v48 = vld [vmem:[#allocation2 + $0x610] sm:$0xff]  }
  0xe2   :  { %9738 = vmatmul.mubr.bf16.vlgmr.msra.gmra.mxu1 %v15173_v50  ;;  %13664 = vmatpush3.bf16.msra.mxu0 %v15178_v54  ;;  %v15237_v50 = vld [vmem:[#allocation2 + $0x690] sm:$0xff]  }
  0xe3   :  { %13686 = vmatpush3.bf16.msra.mxu1 %v15179_v55  ;;  %13665 = vmatprep.subr.bf16.mxu0 %v15180_v56  ;;  %v15239_v55 = vld [vmem:[#allocation2 + $0x6c8] sm:$0xff]  }
  0xe4   :  { %13687 = vmatprep.subr.bf16.mxu1 %v15181_v57  ;;  %9778 = vmatprep.mubr.bf16.mxu0 %v15210_v21  ;;  %v15240_v56 = vld [vmem:[#allocation2 + $0x608] sm:$0xff]  }
  0xe5   :  { %9819 = vmatprep.mubr.bf16.mxu1 %v15213_v23  ;;  %v15241_v57 = vld [vmem:[#allocation2 + $0x688] sm:$0xff]  }
  0xe6   :  { %13666 = vmatpush3.bf16.msra.mxu0 %v15182_v58  ;;  %v15242_v58 = vld [vmem:[#allocation2 + $0x640] sm:$0xff]   ;;  %v15260_v21 = vld [vmem:[#allocation2 + $0x768] sm:$0xff]  }
  0xe7   :  { %13688 = vmatpush3.bf16.msra.mxu1 %v15183_v59  ;;  %13667 = vmatprep.subr.bf16.mxu0 %v15184_v60  ;;  %v15243_v60 = vld [vmem:[#allocation2 + $0x6c0] sm:$0xff]   ;;  %v15262_v23 = vld [vmem:[#allocation2 + $0x728] sm:$0xff]  }
  0xe8   :  { %13689 = vmatprep.subr.bf16.mxu1 %v15185_v61  ;;  %v15244_v61 = vld [vmem:[#allocation2 + $0x600] sm:$0xff]  }
  0xea   :  { %13668 = vmatpush3.bf16.msra.mxu0 %v15186_v62  ;;  %v15245_v62 = vld [vmem:[#allocation2 + $0x680] sm:$0xff]  }
  0xeb   :  { %13690 = vmatpush3.bf16.msra.mxu1 %v15187_v63  ;;  %13669 = vmatprep.subr.bf16.mxu0 %v15188_v0  ;;  %v15246_v63 = vld [vmem:[%s17226_s0 + $0x60] ss:$528 sps:$4 sm:$0xff]  }
  0xec   :  { %13691 = vmatprep.subr.bf16.mxu1 %v15189_v1 }
  0xee   :  { %13670 = vmatpush3.bf16.msra.mxu0 %v15190_v2  ;;  %v15248_v2 = vld [vmem:[%s17226_s0 + $0x64] ss:$528 sps:$4 sm:$0xff]  }
  0xef   :  { %13692 = vmatpush3.bf16.msra.mxu1 %v15191_v3  ;;  %13671 = vmatprep.subr.bf16.mxu0 %v15192_v4  ;;  %v15249_v3 = vld [vmem:[%s17226_s0 + $0x68] ss:$528 sps:$4 sm:$0xff]   ;;  %v15251_v4 = vld [vmem:[%s17226_s0 + $0x6c] ss:$528 sps:$4 sm:$0xff]  }
  0xf0   :  { %13693 = vmatprep.subr.bf16.mxu1 %v15193_v5  ;;  %v15252_v5 = vld [vmem:[#allocation2 + $0x778] sm:$0xff]  }
  0xf2   :  { %13672 = vmatpush3.bf16.msra.mxu0 %v15194_v6 }
  0xf3   :  { %13694 = vmatpush3.bf16.msra.mxu1 %v15195_v7  ;;  %13673 = vmatprep.subr.bf16.mxu0 %v15196_v8  ;;  %v15253_v7 = vld [vmem:[#allocation2 + $0x7f8] sm:$0xff]  }
  0xf4   :  { %13695 = vmatprep.subr.bf16.mxu1 %v15197_v9  ;;  %v15254_v9 = vld [vmem:[#allocation2 + $0x738] sm:$0xff]  }
  0xf6   :  { %13674 = vmatpush3.bf16.msra.mxu0 %v15198_v10  ;;  %v15255_v10 = vld [vmem:[#allocation2 + $0x7b8] sm:$0xff]  }
  0xf7   :  { %13696 = vmatpush3.bf16.msra.mxu1 %v15199_v11  ;;  %13675 = vmatprep.subr.bf16.mxu0 %v15200_v12  ;;  %v12250_v11 = vld [vmem:[#allocation4] ss:$0 sm:$0xff] }
  0xf8   :  { %13697 = vmatprep.subr.bf16.mxu1 %v15201_v13  ;;  %v15256_v13 = vld [vmem:[#allocation2 + $0x770] sm:$0xff]  }
  0xfa   :  { %13676 = vmatpush3.bf16.msra.mxu0 %v15202_v14 }
  0xfb   :  { %13698 = vmatpush3.bf16.msra.mxu1 %v15203_v15  ;;  %13677 = vmatprep.subr.bf16.mxu0 %v15204_v16  ;;  %v15257_v16 = vld [vmem:[#allocation2 + $0x7f0] sm:$0xff]  }
  0xfc   :  { %13699 = vmatprep.subr.bf16.mxu1 %v15205_v17 }
  0xfe   :  { %13678 = vmatpush3.bf16.msra.mxu0 %v15206_v18  ;;  %v15258_v18 = vld [vmem:[#allocation2 + $0x730] sm:$0xff]  }
  0xff   :  { %13700 = vmatpush3.bf16.msra.mxu1 %v15207_v19  ;;  %13707 = vmatprep.subr.bf16.mxu0 %v15214_v24  ;;  %v15263_v24 = vld [vmem:[#allocation2 + $0x7a8] sm:$0xff]  }
 0x100   :  { %13729 = vmatprep.subr.bf16.mxu1 %v15215_v25  ;;  %v15264_v25 = vld [vmem:[#allocation2 + $0x760] sm:$0xff]  }
 0x101   :  { %9779 = vmatmul.mubr.bf16.vlgmr.msra.gmra.mxu0 %v15208_v20  ;;  %v15259_v20 = vld [vmem:[#allocation2 + $0x7b0] sm:$0xff]  }
 0x102   :  { %9820 = vmatmul.mubr.bf16.vlgmr.msra.gmra.mxu1 %v15211_v22  ;;  %13708 = vmatpush3.bf16.msra.mxu0 %v15216_v26  ;;  %v15261_v22 = vld [vmem:[#allocation2 + $0x7e8] sm:$0xff]   ;;  %v15265_v26 = vld [vmem:[#allocation2 + $0x7e0] sm:$0xff]  }
 0x103   :  { %13730 = vmatpush3.bf16.msra.mxu1 %v15217_v27  ;;  %13709 = vmatprep.subr.bf16.mxu0 %v15218_v28  ;;  %v15266_v27 = vld [vmem:[#allocation2 + $0x720] sm:$0xff]  }
 0x104   :  { %13731 = vmatprep.subr.bf16.mxu1 %v15219_v29  ;;  %9860 = vmatprep.mubr.bf16.mxu0 %v15248_v2  ;;  %v15267_v28 = vld [vmem:[#allocation2 + $0x7a0] sm:$0xff]   ;;  %v15268_v29 = vld [vmem:[#allocation2 + $0x758] sm:$0xff]  }
 0x105   :  { %9901 = vmatprep.mubr.bf16.mxu1 %v15251_v4  ;;  %v15291_v2 = vld [vmem:[#allocation2 + $0x8f8] sm:$0xff]  }
 0x106   :  { %13710 = vmatpush3.bf16.msra.mxu0 %v15220_v30  ;;  %v15269_v30 = vld [vmem:[#allocation2 + $0x7d8] sm:$0xff]  }
 0x107   :  { %13732 = vmatpush3.bf16.msra.mxu1 %v15221_v31  ;;  %13711 = vmatprep.subr.bf16.mxu0 %v15222_v32  ;;  %v15270_v31 = vld [vmem:[#allocation2 + $0x718] sm:$0xff]  }
 0x108   :  { %13733 = vmatprep.subr.bf16.mxu1 %v15223_v33  ;;  %v15271_v32 = vld [vmem:[#allocation2 + $0x798] sm:$0xff]  }
 0x109   :  { %v15293_v4 = vld [vmem:[#allocation2 + $0x8b8] sm:$0xff]  }
 0x10a   :  { %13712 = vmatpush3.bf16.msra.mxu0 %v15224_v34  ;;  %v15272_v34 = vld [vmem:[#allocation2 + $0x750] sm:$0xff]  }
 0x10b   :  { %13734 = vmatpush3.bf16.msra.mxu1 %v15225_v35  ;;  %13713 = vmatprep.subr.bf16.mxu0 %v15226_v36  ;;  %v15273_v35 = vld [vmem:[#allocation2 + $0x7d0] sm:$0xff]  }
 0x10c   :  { %13735 = vmatprep.subr.bf16.mxu1 %v15227_v37 }
 0x10e   :  { %13714 = vmatpush3.bf16.msra.mxu0 %v15228_v38  ;;  %v15274_v38 = vld [vmem:[#allocation2 + $0x710] sm:$0xff]  }
 0x10f   :  { %13736 = vmatpush3.bf16.msra.mxu1 %v15229_v39  ;;  %13715 = vmatprep.subr.bf16.mxu0 %v15230_v40  ;;  %v15275_v40 = vld [vmem:[#allocation2 + $0x790] sm:$0xff]  }
 0x110   :  { %13737 = vmatprep.subr.bf16.mxu1 %v15231_v41 }
 0x112   :  { %13716 = vmatpush3.bf16.msra.mxu0 %v15232_v42 }
 0x113   :  { %13738 = vmatpush3.bf16.msra.mxu1 %v15233_v43  ;;  %13717 = vmatprep.subr.bf16.mxu0 %v15234_v44  ;;  %v15276_v43 = vld [vmem:[#allocation2 + $0x748] sm:$0xff]  }
 0x114   :  { %13739 = vmatprep.subr.bf16.mxu1 %v15235_v46  ;;  %v15277_v46 = vld [vmem:[#allocation2 + $0x7c8] sm:$0xff]  }
 0x116   :  { %13718 = vmatpush3.bf16.msra.mxu0 %v15236_v48 }
 0x117   :  { %13740 = vmatpush3.bf16.msra.mxu1 %v15237_v50  ;;  %13719 = vmatprep.subr.bf16.mxu0 %v15238_v53 }
 0x118   :  { %13741 = vmatprep.subr.bf16.mxu1 %v15239_v55 }
 0x11a   :  { %13720 = vmatpush3.bf16.msra.mxu0 %v15240_v56 }
 0x11b   :  { %13742 = vmatpush3.bf16.msra.mxu1 %v15241_v57  ;;  %13721 = vmatprep.subr.bf16.mxu0 %v15242_v58  ;;  %v15281_v57 = vld [vmem:[#allocation2 + $0x7c0] sm:$0xff]  }
 0x11c   :  { %13743 = vmatprep.subr.bf16.mxu1 %v15243_v60  ;;  %v15282_v58 = vld [vmem:[#allocation2 + $0x700] sm:$0xff]  }
 0x11d   :  { %v15283_v60 = vld [vmem:[#allocation2 + $0x780] sm:$0xff]  }
 0x11e   :  { %13722 = vmatpush3.bf16.msra.mxu0 %v15244_v61  ;;  %v15284_v61 = vld [vmem:[%s17226_s0 + $0x70] ss:$528 sps:$4 sm:$0xff]  }
 0x11f   :  { %13744 = vmatpush3.bf16.msra.mxu1 %v15245_v62  ;;  %13751 = vmatprep.subr.bf16.mxu0 %v15252_v5  ;;  %v15286_v62 = vld [vmem:[%s17226_s0 + $0x74] ss:$528 sps:$4 sm:$0xff]  }
 0x120   :  { %13773 = vmatprep.subr.bf16.mxu1 %v15253_v7  ;;  %v15294_v5 = vld [vmem:[#allocation2 + $0x870] sm:$0xff]  }
 0x121   :  { %v13459_v45 = vpop.f32.mrf.mxu0  ;;  %9861 = vmatmul.mubr.bf16.vlgmr.msra.gmra.mxu0 %v15246_v63  ;;  %v15287_v63 = vld [vmem:[%s17226_s0 + $0x78] ss:$528 sps:$4 sm:$0xff]   ;;  %v15296_v7 = vld [vmem:[#allocation2 + $0x830] sm:$0xff]  }
 0x122   :  { %v13481_v47 = vpop.f32.mrf.mxu1  ;;  %9902 = vmatmul.mubr.bf16.vlgmr.msra.gmra.mxu1 %v15249_v3  ;;  %13752 = vmatpush3.bf16.msra.mxu0 %v15254_v9  ;;  %v15292_v3 = vld [vmem:[#allocation2 + $0x838] sm:$0xff]   ;;  %v15298_v9 = vld [vmem:[#allocation2 + $0x868] sm:$0xff]  }
 0x123   :  { %v13460_v49 = vpop.f32.mrf.mxu0  ;;  %13774 = vmatpush3.bf16.msra.mxu1 %v15255_v10  ;;  %13753 = vmatprep.subr.bf16.mxu0 %v15256_v13  ;;  %v15299_v10 = vld [vmem:[#allocation2 + $0x8e8] sm:$0xff]   ;;  %v15302_v13 = vld [vmem:[#allocation2 + $0x860] sm:$0xff]  }
 0x124   :  { %v13461_v51 = vadd.f32 %v13460_v49, %v13459_v45  ;;  %v13482_v52 = vpop.f32.mrf.mxu1  ;;  %13775 = vmatprep.subr.bf16.mxu1 %v15257_v16  ;;  %v15278_v49 = vld [vmem:[#allocation2 + $0x708] sm:$0xff]   ;;  %9942 = vmatprep.mubr.bf16.mxu0 %v15286_v62  ;;  %v15305_v16 = vld [vmem:[#allocation2 + $0x8a0] sm:$0xff]  }
 0x125   :  { %v13483_v54 = vadd.f32 %v13482_v52, %v13481_v47  ;;  %v13462_v59 = vpop.f32.mrf.mxu0  ;;  %v15279_v52 = vld [vmem:[#allocation2 + $0x788] sm:$0xff]  }
 0x126   :  { %v13484_v0 = vpop.f32.mrf.mxu1  ;;  %v9371_v12 = vadd.f32 %v13461_v51, %v12250_v11  ;;  %13754 = vmatpush3.bf16.msra.mxu0 %v15258_v18  ;;  %v15307_v18 = vld [vmem:[#allocation2 + $0x8d8] sm:$0xff]   ;;  %v15337_v62 = vld [vmem:[#allocation2 + $0x9e8] sm:$0xff]  }
 0x127   :  { %v13463_v1 = vpop.f32.mrf.mxu0  ;;  %13776 = vmatpush3.bf16.msra.mxu1 %v15259_v20  ;;  %13755 = vmatprep.subr.bf16.mxu0 %v15260_v21  ;;  %v15309_v20 = vld [vmem:[#allocation2 + $0x898] sm:$0xff]  }
 0x128   :  { %v13464_v6 = vadd.f32 %v13463_v1, %v13462_v59  ;;  %v13485_v8 = vpop.f32.mrf.mxu1  ;;  %v9412_v17 = vadd.f32 %v13483_v54, %v9371_v12  ;;  %13777 = vmatprep.subr.bf16.mxu1 %v15261_v22  ;;  %v15280_v54 = vld [vmem:[#allocation2 + $0x740] sm:$0xff]   ;;  %v15290_v1 = vld [vmem:[#allocation2 + $0x878] sm:$0xff]   ;;  %v15301_v12 = vld [vmem:[#allocation2 + $0x8a8] sm:$0xff]  }
 0x129   :  { %v13486_v15 = vadd.f32 %v13485_v8, %v13484_v0  ;;  %v15289_v0 = vld [vmem:[%s17226_s0 + $0x7c] ss:$528 sps:$4 sm:$0xff]   ;;  %v15297_v8 = vld [vmem:[#allocation2 + $0x8b0] sm:$0xff]  }
 0x12a   :  { %v9374_v14 = vadd.f32 %v13464_v6, %v12250_v11  ;;  %13756 = vmatpush3.bf16.msra.mxu0 %v15262_v23  ;;  %9983 = vmatprep.mubr.bf16.mxu1 %v15289_v0  ;;  %v15295_v6 = vld [vmem:[#allocation2 + $0x8f0] sm:$0xff]   ;;  %v15300_v11 = vld [vmem:[#allocation2 + $0x828] sm:$0xff]  }
 0x12b   :  { %13778 = vmatpush3.bf16.msra.mxu1 %v15263_v24  ;;  %13757 = vmatprep.subr.bf16.mxu0 %v15264_v25  ;;  %v15310_v22 = vld [vmem:[#allocation2 + $0x850] sm:$0xff]   ;;  %v15339_v0 = vld [vmem:[#allocation2 + $0x9a8] sm:$0xff]  }
 0x12c   :  { %v9415_v19 = vadd.f32 %v13486_v15, %v9374_v14  ;;  %13779 = vmatprep.subr.bf16.mxu1 %v15265_v26  ;;  %v15303_v14 = vld [vmem:[#allocation2 + $0x8e0] sm:$0xff]   ;;  %v15311_v24 = vld [vmem:[#allocation2 + $0x8d0] sm:$0xff]  }
 0x12d   :  { %v15304_v15 = vld [vmem:[#allocation2 + $0x820] sm:$0xff]   ;;  %v15312_v26 = vld [vmem:[#allocation2 + $0x810] sm:$0xff]  }
 0x12e   :  { %13758 = vmatpush3.bf16.msra.mxu0 %v15266_v27 }
 0x12f   :  { %13780 = vmatpush3.bf16.msra.mxu1 %v15267_v28  ;;  %13759 = vmatprep.subr.bf16.mxu0 %v15268_v29  ;;  %v15313_v29 = vld [vmem:[#allocation2 + $0x890] sm:$0xff]  }
 0x130   :  { %13781 = vmatprep.subr.bf16.mxu1 %v15269_v30 }
 0x132   :  { %13760 = vmatpush3.bf16.msra.mxu0 %v15270_v31 }
 0x133   :  { %13782 = vmatpush3.bf16.msra.mxu1 %v15271_v32  ;;  %13761 = vmatprep.subr.bf16.mxu0 %v15272_v34  ;;  %v15314_v32 = vld [vmem:[#allocation2 + $0x848] sm:$0xff]  }
 0x134   :  { %13783 = vmatprep.subr.bf16.mxu1 %v15273_v35  ;;  %v15315_v35 = vld [vmem:[#allocation2 + $0x8c8] sm:$0xff]  }
 0x136   :  { %13762 = vmatpush3.bf16.msra.mxu0 %v15274_v38 }
 0x137   :  { %13784 = vmatpush3.bf16.msra.mxu1 %v15275_v40  ;;  %13763 = vmatprep.subr.bf16.mxu0 %v15276_v43 }
 0x138   :  { %13785 = vmatprep.subr.bf16.mxu1 %v15277_v46  ;;  %v15320_v46 = vld [vmem:[#allocation2 + $0x800] sm:$0xff]  }
 0x13a   :  { %13764 = vmatpush3.bf16.msra.mxu0 %v15278_v49  ;;  %v15322_v49 = vld [vmem:[%s17226_s0 + $0x80] ss:$528 sps:$4 sm:$0xff]  }
 0x13b   :  { %13786 = vmatpush3.bf16.msra.mxu1 %v15279_v52  ;;  %13765 = vmatprep.subr.bf16.mxu0 %v15280_v54  ;;  %v15327_v52 = vld [vmem:[%s17226_s0 + $0x8c] ss:$528 sps:$4 sm:$0xff]  }
 0x13c   :  { %13787 = vmatprep.subr.bf16.mxu1 %v15281_v57  ;;  %v15329_v54 = vld [vmem:[#allocation2 + $0x9f8] sm:$0xff]   ;;  %v15332_v57 = vld [vmem:[#allocation2 + $0x970] sm:$0xff]  }
 0x13e   :  { %13766 = vmatpush3.bf16.msra.mxu0 %v15282_v58  ;;  %v15333_v58 = vld [vmem:[#allocation2 + $0x9f0] sm:$0xff]  }
 0x13f   :  { %13788 = vmatpush3.bf16.msra.mxu1 %v15283_v60  ;;  %13795 = vmatprep.subr.bf16.mxu0 %v15290_v1  ;;  %v15335_v60 = vld [vmem:[#allocation2 + $0x9b0] sm:$0xff]   ;;  %v15340_v1 = vld [vmem:[#allocation2 + $0x960] sm:$0xff]  }
 0x140   :  { %13817 = vmatprep.subr.bf16.mxu1 %v15291_v2  ;;  %v15341_v2 = vld [vmem:[#allocation2 + $0x9e0] sm:$0xff]  }
 0x141   :  { %v13503_v33 = vpop.f32.mrf.mxu0  ;;  %9943 = vmatmul.mubr.bf16.vlgmr.msra.gmra.mxu0 %v15284_v61  ;;  %v15336_v61 = vld [vmem:[#allocation2 + $0x968] sm:$0xff]  }
 0x142   :  { %v13525_v36 = vpop.f32.mrf.mxu1  ;;  %9984 = vmatmul.mubr.bf16.vlgmr.msra.gmra.mxu1 %v15287_v63  ;;  %13796 = vmatpush3.bf16.msra.mxu0 %v15292_v3  ;;  %v15338_v63 = vld [vmem:[#allocation2 + $0x928] sm:$0xff]   ;;  %v15342_v3 = vld [vmem:[#allocation2 + $0x920] sm:$0xff]  }
 0x143   :  { %v13504_v37 = vpop.f32.mrf.mxu0  ;;  %13818 = vmatpush3.bf16.msra.mxu1 %v15293_v4  ;;  %13797 = vmatprep.subr.bf16.mxu0 %v15294_v5  ;;  %v15343_v4 = vld [vmem:[#allocation2 + $0x9a0] sm:$0xff]   ;;  %v15344_v5 = vld [vmem:[#allocation2 + $0x958] sm:$0xff]  }
 0x144   :  { %v13505_v39 = vadd.f32 %v13504_v37, %v13503_v33  ;;  %v13526_v41 = vpop.f32.mrf.mxu1  ;;  %13819 = vmatprep.subr.bf16.mxu1 %v15295_v6  ;;  %v15316_v37 = vld [vmem:[#allocation2 + $0x808] sm:$0xff]   ;;  %10065 = vmatprep.mubr.bf16.mxu1 %v15327_v52  ;;  %v15345_v6 = vld [vmem:[#allocation2 + $0x9d8] sm:$0xff]  }
 0x145   :  { %v13506_v42 = vpop.f32.mrf.mxu0  ;;  %v13527_v45 = vadd.f32 %v13526_v41, %v13525_v36  ;;  %v15317_v41 = vld [vmem:[#allocation2 + $0x888] sm:$0xff]  }
 0x146   :  { %v9453_v44 = vadd.f32 %v13505_v39, %v9412_v17  ;;  %v13528_v47 = vpop.f32.mrf.mxu1  ;;  %13798 = vmatpush3.bf16.msra.mxu0 %v15296_v7  ;;  %v15306_v17 = vld [vmem:[#allocation2 + $0x858] sm:$0xff]   ;;  %v15377_v52 = vld [vmem:[#allocation2 + $0xaa8] sm:$0xff]  }
 0x147   :  { %v13507_v48 = vpop.f32.mrf.mxu0  ;;  %13820 = vmatpush3.bf16.msra.mxu1 %v15297_v8  ;;  %13799 = vmatprep.subr.bf16.mxu0 %v15298_v9  ;;  %v15346_v7 = vld [vmem:[#allocation2 + $0x918] sm:$0xff]  }
 0x148   :  { %v16494_v50 = vadd.f32 %v13527_v45, %v9453_v44  ;;  %v13508_v51 = vadd.f32 %v13507_v48, %v13506_v42  ;;  %v13529_v53 = vpop.f32.mrf.mxu1  ;;  %13821 = vmatprep.subr.bf16.mxu1 %v15299_v10  ;;  %v15318_v42 = vld [vmem:[#allocation2 + $0x840] sm:$0xff]   ;;  %v15347_v8 = vld [vmem:[#allocation2 + $0x998] sm:$0xff]   ;;  %v15348_v10 = vld [vmem:[#allocation2 + $0x950] sm:$0xff]  }
 0x149   :  { %v13530_v56 = vadd.f32 %v13529_v53, %v13528_v47  ;;  %v15319_v45 = vld [vmem:[#allocation2 + $0x8c0] sm:$0xff]   ;;  %v15328_v53 = vld [vmem:[#allocation2 + $0x978] sm:$0xff]  }
 0x14a   :  { %v9456_v55 = vadd.f32 %v13508_v51, %v9415_v19  ;;  %13800 = vmatpush3.bf16.msra.mxu0 %v15300_v11  ;;  %v15308_v19 = vld [vmem:[#allocation2 + $0x818] sm:$0xff]   ;;  %v15321_v48 = vld [vmem:[#allocation2 + $0x880] sm:$0xff]  }
 0x14b   :  { %13822 = vmatpush3.bf16.msra.mxu1 %v15301_v12  ;;  %13801 = vmatprep.subr.bf16.mxu0 %v15302_v13  ;;  %v15325_v51 = vld [vmem:[%s17226_s0 + $0x88] ss:$528 sps:$4 sm:$0xff]   ;;  %v15349_v12 = vld [vmem:[#allocation2 + $0x9d0] sm:$0xff]  }
 0x14c   :  { %v16496_v59 = vadd.f32 %v13530_v56, %v9456_v55  ;;  %13823 = vmatprep.subr.bf16.mxu1 %v15303_v14  ;;  %v15330_v55 = vld [vmem:[#allocation2 + $0x938] sm:$0xff]   ;;  %v15350_v14 = vld [vmem:[#allocation2 + $0x910] sm:$0xff]  }
 0x14d   :  { %v15331_v56 = vld [vmem:[#allocation2 + $0x9b8] sm:$0xff]  }
 0x14e   :  { %13802 = vmatpush3.bf16.msra.mxu0 %v15304_v15 }
 0x14f   :  { %13824 = vmatpush3.bf16.msra.mxu1 %v15305_v16  ;;  %13803 = vmatprep.subr.bf16.mxu0 %v15306_v17  ;;  %v15351_v17 = vld [vmem:[#allocation2 + $0x990] sm:$0xff]  }
 0x150   :  { %13825 = vmatprep.subr.bf16.mxu1 %v15307_v18 }
 0x152   :  { %13804 = vmatpush3.bf16.msra.mxu0 %v15308_v19 }
 0x153   :  { %13826 = vmatpush3.bf16.msra.mxu1 %v15309_v20  ;;  %13805 = vmatprep.subr.bf16.mxu0 %v15310_v22  ;;  %v15352_v20 = vld [vmem:[#allocation2 + $0x948] sm:$0xff]  }
 0x154   :  { %13827 = vmatprep.subr.bf16.mxu1 %v15311_v24 }
 0x156   :  { %13806 = vmatpush3.bf16.msra.mxu0 %v15312_v26 }
 0x157   :  { %13828 = vmatpush3.bf16.msra.mxu1 %v15313_v29  ;;  %13807 = vmatprep.subr.bf16.mxu0 %v15314_v32  ;;  %v15355_v29 = vld [vmem:[#allocation2 + $0x988] sm:$0xff]  }
 0x158   :  { %13829 = vmatprep.subr.bf16.mxu1 %v15315_v35 }
 0x15a   :  { %13808 = vmatpush3.bf16.msra.mxu0 %v15316_v37  ;;  %v15360_v37 = vld [vmem:[%s17226_s0 + $0x90] ss:$528 sps:$4 sm:$0xff]  }
 0x15b   :  { %13830 = vmatpush3.bf16.msra.mxu1 %v15317_v41  ;;  %13809 = vmatprep.subr.bf16.mxu0 %v15318_v42  ;;  %v15366_v41 = vld [vmem:[#allocation2 + $0xa78] sm:$0xff]  }
 0x15c   :  { %13831 = vmatprep.subr.bf16.mxu1 %v15319_v45  ;;  %v15367_v42 = vld [vmem:[#allocation2 + $0xaf8] sm:$0xff]   ;;  %v15370_v45 = vld [vmem:[#allocation2 + $0xa70] sm:$0xff]  }
 0x15e   :  { %13810 = vmatpush3.bf16.msra.mxu0 %v15320_v46  ;;  %v15371_v46 = vld [vmem:[#allocation2 + $0xaf0] sm:$0xff]  }
 0x15f   :  { %13832 = vmatpush3.bf16.msra.mxu1 %v15321_v48  ;;  %13839 = vmatprep.subr.bf16.mxu0 %v15328_v53  ;;  %v15373_v48 = vld [vmem:[#allocation2 + $0xab0] sm:$0xff]   ;;  %v15378_v53 = vld [vmem:[#allocation2 + $0xa60] sm:$0xff]  }
 0x160   :  { %13861 = vmatprep.subr.bf16.mxu1 %v15329_v54  ;;  %v15379_v54 = vld [vmem:[#allocation2 + $0xae0] sm:$0xff]  }
 0x161   :  { %v13547_v21 = vpop.f32.mrf.mxu0 }
 0x162   :  { %v13569_v23 = vpop.f32.mrf.mxu1  ;;  %10066 = vmatmul.mubr.bf16.vlgmr.msra.gmra.mxu1 %v15325_v51  ;;  %v15376_v51 = vld [vmem:[#allocation2 + $0xa28] sm:$0xff]  }
 0x163   :  { %v13548_v25 = vpop.f32.mrf.mxu0  ;;  %13862 = vmatpush3.bf16.msra.mxu1 %v15331_v56  ;;  %v15381_v56 = vld [vmem:[#allocation2 + $0xaa0] sm:$0xff]  }
 0x164   :  { %v13549_v27 = vadd.f32 %v13548_v25, %v13547_v21  ;;  %v13570_v28 = vpop.f32.mrf.mxu1  ;;  %13863 = vmatprep.subr.bf16.mxu1 %v15333_v58  ;;  %v15354_v25 = vld [vmem:[#allocation2 + $0x908] sm:$0xff]   ;;  %v15383_v58 = vld [vmem:[#allocation2 + $0xad8] sm:$0xff]  }
 0x165   :  { %v13571_v30 = vadd.f32 %v13570_v28, %v13569_v23  ;;  %v13550_v31 = vpop.f32.mrf.mxu0  ;;  %v15353_v23 = vld [vmem:[#allocation2 + $0x9c8] sm:$0xff]  }
 0x166   :  { %v9535_v33 = vadd.f32 %v13549_v27, %v16494_v50  ;;  %v13572_v34 = vpop.f32.mrf.mxu1  ;;  %v15324_v50 = vld [vmem:[%s17226_s0 + $0x84] ss:$528 sps:$4 sm:$0xff]  }
 0x167   :  { %v13551_v36 = vpop.f32.mrf.mxu0  ;;  %10024 = vmatprep.mubr.bf16.mxu0 %v15324_v50  ;;  %13864 = vmatpush3.bf16.msra.mxu1 %v15335_v60  ;;  %v15375_v50 = vld [vmem:[#allocation2 + $0xae8] sm:$0xff]   ;;  %v15385_v60 = vld [vmem:[#allocation2 + $0xa98] sm:$0xff]  }
 0x168   :  { %v16511_v38 = vadd.f32 %v13571_v30, %v9535_v33  ;;  %v13552_v39 = vadd.f32 %v13551_v36, %v13550_v31  ;;  %v13573_v40 = vpop.f32.mrf.mxu1  ;;  %10025 = vmatmul.mubr.bf16.vlgmr.msra.gmra.mxu0 %v15322_v49  ;;  %13865 = vmatprep.subr.bf16.mxu1 %v15337_v62  ;;  %v15356_v30 = vld [vmem:[#allocation2 + $0x940] sm:$0xff]   ;;  %v15374_v49 = vld [vmem:[#allocation2 + $0xa68] sm:$0xff]   ;;  %v15386_v62 = vld [vmem:[#allocation2 + $0xa50] sm:$0xff]  }
 0x169   :  { %v13574_v44 = vadd.f32 %v13573_v40, %v13572_v34  ;;  %13840 = vmatpush3.bf16.msra.mxu0 %v15330_v55  ;;  %v15357_v33 = vld [vmem:[#allocation2 + $0x9c0] sm:$0xff]   ;;  %v15365_v40 = vld [vmem:[%s17226_s0 + $0x9c] ss:$528 sps:$4 sm:$0xff]  }
 0x16a   :  { %v9538_v43 = vadd.f32 %v13552_v39, %v16496_v59  ;;  %13841 = vmatprep.subr.bf16.mxu0 %v15332_v57  ;;  %v15334_v59 = vld [vmem:[#allocation2 + $0x930] sm:$0xff]   ;;  %v15358_v34 = vld [vmem:[#allocation2 + $0x900] sm:$0xff]   ;;  %v15363_v39 = vld [vmem:[%s17226_s0 + $0x98] ss:$528 sps:$4 sm:$0xff]   ;;  %10147 = vmatprep.mubr.bf16.mxu1 %v15365_v40 }
 0x16b   :  { %13866 = vmatpush3.bf16.msra.mxu1 %v15339_v0  ;;  %v15359_v36 = vld [vmem:[#allocation2 + $0x980] sm:$0xff]   ;;  %v15382_v57 = vld [vmem:[#allocation2 + $0xa58] sm:$0xff]   ;;  %v15415_v40 = vld [vmem:[#allocation2 + $0xba8] sm:$0xff]  }
 0x16c   :  { %v16514_v47 = vadd.f32 %v13574_v44, %v9538_v43  ;;  %13867 = vmatprep.subr.bf16.mxu1 %v15341_v2  ;;  %v15368_v43 = vld [vmem:[#allocation2 + $0xa38] sm:$0xff]   ;;  %v15380_v55 = vld [vmem:[#allocation2 + $0xa20] sm:$0xff]   ;;  %v15388_v2 = vld [vmem:[#allocation2 + $0xa10] sm:$0xff]  }
 0x16d   :  { %13842 = vmatpush3.bf16.msra.mxu0 %v15334_v59  ;;  %v15369_v44 = vld [vmem:[#allocation2 + $0xab8] sm:$0xff]  }
 0x16e   :  { %13843 = vmatprep.subr.bf16.mxu0 %v15336_v61  ;;  %v15384_v59 = vld [vmem:[#allocation2 + $0xa18] sm:$0xff]  }
 0x16f   :  { %13868 = vmatpush3.bf16.msra.mxu1 %v15343_v4  ;;  %v15389_v4 = vld [vmem:[#allocation2 + $0xa90] sm:$0xff]  }
 0x170   :  { %13869 = vmatprep.subr.bf16.mxu1 %v15345_v6 }
 0x171   :  { %13844 = vmatpush3.bf16.msra.mxu0 %v15338_v63  ;;  %v15387_v63 = vld [vmem:[#allocation2 + $0xad0] sm:$0xff]  }
 0x172   :  { %13845 = vmatprep.subr.bf16.mxu0 %v15340_v1 }
 0x173   :  { %13870 = vmatpush3.bf16.msra.mxu1 %v15347_v8 }
 0x174   :  { %13871 = vmatprep.subr.bf16.mxu1 %v15349_v12 }
 0x175   :  { %13846 = vmatpush3.bf16.msra.mxu0 %v15342_v3 }
 0x176   :  { %13847 = vmatprep.subr.bf16.mxu0 %v15344_v5 }
 0x177   :  { %13872 = vmatpush3.bf16.msra.mxu1 %v15351_v17 }
 0x178   :  { %13873 = vmatprep.subr.bf16.mxu1 %v15353_v23 }
 0x179   :  { %13848 = vmatpush3.bf16.msra.mxu0 %v15346_v7  ;;  %v15390_v7 = vld [vmem:[#allocation2 + $0xa48] sm:$0xff]  }
 0x17a   :  { %13849 = vmatprep.subr.bf16.mxu0 %v15348_v10  ;;  %v15391_v10 = vld [vmem:[#allocation2 + $0xac8] sm:$0xff]  }
 0x17b   :  { %13874 = vmatpush3.bf16.msra.mxu1 %v15355_v29  ;;  %v15404_v29 = vld [vmem:[#allocation2 + $0xb78] sm:$0xff]  }
 0x17c   :  { %13875 = vmatprep.subr.bf16.mxu1 %v15357_v33  ;;  %v15408_v33 = vld [vmem:[#allocation2 + $0xb70] sm:$0xff]  }
 0x17d   :  { %13850 = vmatpush3.bf16.msra.mxu0 %v15350_v14 }
 0x17e   :  { %13851 = vmatprep.subr.bf16.mxu0 %v15352_v20 }
 0x17f   :  { %13876 = vmatpush3.bf16.msra.mxu1 %v15359_v36  ;;  %v15411_v36 = vld [vmem:[#allocation2 + $0xbb0] sm:$0xff]  }
 0x180   :  { %13905 = vmatprep.subr.bf16.mxu1 %v15367_v42  ;;  %v15417_v42 = vld [vmem:[#allocation2 + $0xbe0] sm:$0xff]  }
 0x181   :  { %v13591_v9 = vpop.f32.mrf.mxu0  ;;  %13852 = vmatpush3.bf16.msra.mxu0 %v15354_v25  ;;  %v15398_v25 = vld [vmem:[%s17226_s0 + $0xa0] ss:$528 sps:$4 sm:$0xff]  }
 0x182   :  { %v13613_v11 = vpop.f32.mrf.mxu1  ;;  %13853 = vmatprep.subr.bf16.mxu0 %v15356_v30  ;;  %10148 = vmatmul.mubr.bf16.vlgmr.msra.gmra.mxu1 %v15363_v39  ;;  %v15405_v30 = vld [vmem:[#allocation2 + $0xbf8] sm:$0xff]   ;;  %v15414_v39 = vld [vmem:[#allocation2 + $0xb28] sm:$0xff]  }
 0x183   :  { %v13592_v13 = vpop.f32.mrf.mxu0  ;;  %13906 = vmatpush3.bf16.msra.mxu1 %v15369_v44  ;;  %v15419_v44 = vld [vmem:[#allocation2 + $0xba0] sm:$0xff]  }
 0x184   :  { %v13593_v15 = vadd.f32 %v13592_v13, %v13591_v9  ;;  %v13614_v16 = vpop.f32.mrf.mxu1  ;;  %13907 = vmatprep.subr.bf16.mxu1 %v15371_v46  ;;  %v15392_v13 = vld [vmem:[#allocation2 + $0xa08] sm:$0xff]   ;;  %v15421_v46 = vld [vmem:[#allocation2 + $0xbd8] sm:$0xff]  }
 0x185   :  { %v13615_v18 = vadd.f32 %v13614_v16, %v13613_v11  ;;  %v13594_v19 = vpop.f32.mrf.mxu0  ;;  %13854 = vmatpush3.bf16.msra.mxu0 %v15358_v34  ;;  %v15393_v16 = vld [vmem:[#allocation2 + $0xa88] sm:$0xff]   ;;  %v15409_v34 = vld [vmem:[#allocation2 + $0xbf0] sm:$0xff]  }
 0x186   :  { %v9617_v21 = vadd.f32 %v13593_v15, %v16511_v38  ;;  %v13616_v22 = vpop.f32.mrf.mxu1  ;;  %v15362_v38 = vld [vmem:[%s17226_s0 + $0x94] ss:$528 sps:$4 sm:$0xff]   ;;  %13883 = vmatprep.subr.bf16.mxu0 %v15366_v41 }
 0x187   :  { %v13595_v24 = vpop.f32.mrf.mxu0  ;;  %10106 = vmatprep.mubr.bf16.mxu0 %v15362_v38  ;;  %13908 = vmatpush3.bf16.msra.mxu1 %v15373_v48  ;;  %v15413_v38 = vld [vmem:[#allocation2 + $0xbe8] sm:$0xff]   ;;  %v15416_v41 = vld [vmem:[#allocation2 + $0xb60] sm:$0xff]   ;;  %v15423_v48 = vld [vmem:[#allocation2 + $0xb98] sm:$0xff]  }
 0x188   :  { %v16529_v26 = vadd.f32 %v13615_v18, %v9617_v21  ;;  %v13596_v27 = vadd.f32 %v13595_v24, %v13594_v19  ;;  %v13617_v28 = vpop.f32.mrf.mxu1  ;;  %10107 = vmatmul.mubr.bf16.vlgmr.msra.gmra.mxu0 %v15360_v37  ;;  %13909 = vmatprep.subr.bf16.mxu1 %v15375_v50  ;;  %v15394_v18 = vld [vmem:[#allocation2 + $0xa40] sm:$0xff]   ;;  %v15412_v37 = vld [vmem:[#allocation2 + $0xb68] sm:$0xff]   ;;  %v15424_v50 = vld [vmem:[#allocation2 + $0xb50] sm:$0xff]  }
 0x189   :  { %v13618_v32 = vadd.f32 %v13617_v28, %v13616_v22  ;;  %13884 = vmatpush3.bf16.msra.mxu0 %v15368_v43  ;;  %v15395_v21 = vld [vmem:[#allocation2 + $0xac0] sm:$0xff]   ;;  %v15403_v28 = vld [vmem:[%s17226_s0 + $0xac] ss:$528 sps:$4 sm:$0xff]  }
 0x18a   :  { %v9620_v31 = vadd.f32 %v13596_v27, %v16514_v47  ;;  %13885 = vmatprep.subr.bf16.mxu0 %v15370_v45  ;;  %v15372_v47 = vld [vmem:[#allocation2 + $0xa30] sm:$0xff]   ;;  %v15396_v22 = vld [vmem:[#allocation2 + $0xa00] sm:$0xff]   ;;  %v15401_v27 = vld [vmem:[%s17226_s0 + $0xa8] ss:$528 sps:$4 sm:$0xff]   ;;  %10229 = vmatprep.mubr.bf16.mxu1 %v15403_v28 }
 0x18b   :  { %13910 = vmatpush3.bf16.msra.mxu1 %v15377_v52  ;;  %v15397_v24 = vld [vmem:[#allocation2 + $0xa80] sm:$0xff]   ;;  %v15420_v45 = vld [vmem:[#allocation2 + $0xb58] sm:$0xff]   ;;  %v15425_v52 = vld [vmem:[#allocation2 + $0xbd0] sm:$0xff]  }
 0x18c   :  { %v16532_v35 = vadd.f32 %v13618_v32, %v9620_v31  ;;  %13911 = vmatprep.subr.bf16.mxu1 %v15379_v54  ;;  %v15406_v31 = vld [vmem:[#allocation2 + $0xb38] sm:$0xff]   ;;  %v15418_v43 = vld [vmem:[#allocation2 + $0xb20] sm:$0xff]   ;;  %v15426_v54 = vld [vmem:[#allocation2 + $0xb10] sm:$0xff]  }
 0x18d   :  { %13886 = vmatpush3.bf16.msra.mxu0 %v15372_v47  ;;  %v15407_v32 = vld [vmem:[#allocation2 + $0xbb8] sm:$0xff]   ;;  %v15453_v28 = vld [vmem:[#allocation2 + $0xca8] sm:$0xff]  }
 0x18e   :  { %13887 = vmatprep.subr.bf16.mxu0 %v15374_v49  ;;  %v15422_v47 = vld [vmem:[#allocation2 + $0xb18] sm:$0xff]  }
 0x18f   :  { %13912 = vmatpush3.bf16.msra.mxu1 %v15381_v56 }
 0x190   :  { %13913 = vmatprep.subr.bf16.mxu1 %v15383_v58 }
 0x191   :  { %13888 = vmatpush3.bf16.msra.mxu0 %v15376_v51 }
 0x192   :  { %13889 = vmatprep.subr.bf16.mxu0 %v15378_v53 }
 0x193   :  { %13914 = vmatpush3.bf16.msra.mxu1 %v15385_v60  ;;  %v15428_v60 = vld [vmem:[#allocation2 + $0xb48] sm:$0xff]  }
 0x194   :  { %13915 = vmatprep.subr.bf16.mxu1 %v15387_v63  ;;  %v15429_v63 = vld [vmem:[#allocation2 + $0xbc8] sm:$0xff]  }
 0x195   :  { %13890 = vmatpush3.bf16.msra.mxu0 %v15380_v55 }
 0x196   :  { %13891 = vmatprep.subr.bf16.mxu0 %v15382_v57  ;;  %v15427_v57 = vld [vmem:[#allocation2 + $0xb90] sm:$0xff]  }
 0x197   :  { %13916 = vmatpush3.bf16.msra.mxu1 %v15389_v4 }
 0x198   :  { %13917 = vmatprep.subr.bf16.mxu1 %v15391_v10  ;;  %v15434_v10 = vld [vmem:[#allocation2 + $0xb00] sm:$0xff]  }
 0x199   :  { %13892 = vmatpush3.bf16.msra.mxu0 %v15384_v59 }
 0x19a   :  { %13893 = vmatprep.subr.bf16.mxu0 %v15386_v62 }
 0x19b   :  { %13918 = vmatpush3.bf16.msra.mxu1 %v15393_v16  ;;  %v15441_v16 = vld [vmem:[%s17226_s0 + $0xbc] ss:$528 sps:$4 sm:$0xff]  }
 0x19c   :  { %13919 = vmatprep.subr.bf16.mxu1 %v15395_v21  ;;  %v15446_v21 = vld [vmem:[#allocation2 + $0xc70] sm:$0xff]  }
 0x19d   :  { %13894 = vmatpush3.bf16.msra.mxu0 %v15388_v2 }
 0x19e   :  { %13895 = vmatprep.subr.bf16.mxu0 %v15390_v7  ;;  %v15432_v7 = vld [vmem:[#allocation2 + $0xb40] sm:$0xff]  }
 0x19f   :  { %13920 = vmatpush3.bf16.msra.mxu1 %v15397_v24  ;;  %v15449_v24 = vld [vmem:[#allocation2 + $0xcb0] sm:$0xff]  }
 0x1a0   :  { %13949 = vmatprep.subr.bf16.mxu1 %v15405_v30  ;;  %v15455_v30 = vld [vmem:[#allocation2 + $0xce0] sm:$0xff]  }
 0x1a1   :  { %v13635_v61 = vpop.f32.mrf.mxu0  ;;  %13896 = vmatpush3.bf16.msra.mxu0 %v15392_v13  ;;  %v15436_v13 = vld [vmem:[%s17226_s0 + $0xb0] ss:$528 sps:$4 sm:$0xff]  }
 0x1a2   :  { %v13657_v0 = vpop.f32.mrf.mxu1  ;;  %13897 = vmatprep.subr.bf16.mxu0 %v15394_v18  ;;  %10230 = vmatmul.mubr.bf16.vlgmr.msra.gmra.mxu1 %v15401_v27  ;;  %v15443_v18 = vld [vmem:[#allocation2 + $0xcf8] sm:$0xff]   ;;  %v15452_v27 = vld [vmem:[#allocation2 + $0xc28] sm:$0xff]  }
 0x1a3   :  { %v13636_v1 = vpop.f32.mrf.mxu0  ;;  %13950 = vmatpush3.bf16.msra.mxu1 %v15407_v32  ;;  %10311 = vmatprep.mubr.bf16.mxu1 %v15441_v16  ;;  %v15457_v32 = vld [vmem:[#allocation2 + $0xca0] sm:$0xff]   ;;  %v15491_v16 = vld [vmem:[#allocation2 + $0xda8] sm:$0xff]  }
 0x1a4   :  { %v13637_v3 = vadd.f32 %v13636_v1, %v13635_v61  ;;  %v13658_v5 = vpop.f32.mrf.mxu1  ;;  %13951 = vmatprep.subr.bf16.mxu1 %v15409_v34  ;;  %v15430_v1 = vld [vmem:[#allocation2 + $0xb08] sm:$0xff]   ;;  %v15459_v34 = vld [vmem:[#allocation2 + $0xcd8] sm:$0xff]  }
 0x1a5   :  { %v13638_v6 = vpop.f32.mrf.mxu0  ;;  %v13659_v9 = vadd.f32 %v13658_v5, %v13657_v0  ;;  %13898 = vmatpush3.bf16.msra.mxu0 %v15396_v22  ;;  %v15431_v5 = vld [vmem:[#allocation2 + $0xb88] sm:$0xff]   ;;  %v15447_v22 = vld [vmem:[#allocation2 + $0xcf0] sm:$0xff]  }
 0x1a6   :  { %v9699_v8 = vadd.f32 %v13637_v3, %v16529_v26  ;;  %v13660_v11 = vpop.f32.mrf.mxu1  ;;  %v15400_v26 = vld [vmem:[%s17226_s0 + $0xa4] ss:$528 sps:$4 sm:$0xff]   ;;  %13927 = vmatprep.subr.bf16.mxu0 %v15404_v29 }
 0x1a7   :  { %v13639_v12 = vpop.f32.mrf.mxu0  ;;  %10188 = vmatprep.mubr.bf16.mxu0 %v15400_v26  ;;  %13952 = vmatpush3.bf16.msra.mxu1 %v15411_v36  ;;  %v15451_v26 = vld [vmem:[#allocation2 + $0xce8] sm:$0xff]   ;;  %v15454_v29 = vld [vmem:[#allocation2 + $0xc60] sm:$0xff]   ;;  %v15461_v36 = vld [vmem:[#allocation2 + $0xc98] sm:$0xff]  }
 0x1a8   :  { %v16547_v14 = vadd.f32 %v13659_v9, %v9699_v8  ;;  %v13640_v15 = vadd.f32 %v13639_v12, %v13638_v6  ;;  %v13661_v17 = vpop.f32.mrf.mxu1  ;;  %10189 = vmatmul.mubr.bf16.vlgmr.msra.gmra.mxu0 %v15398_v25  ;;  %13953 = vmatprep.subr.bf16.mxu1 %v15413_v38  ;;  %v15433_v9 = vld [vmem:[#allocation2 + $0xbc0] sm:$0xff]   ;;  %v15450_v25 = vld [vmem:[#allocation2 + $0xc68] sm:$0xff]   ;;  %v15462_v38 = vld [vmem:[#allocation2 + $0xc50] sm:$0xff]  }
 0x1a9   :  { %v13662_v20 = vadd.f32 %v13661_v17, %v13660_v11  ;;  %13928 = vmatpush3.bf16.msra.mxu0 %v15406_v31  ;;  %v15435_v12 = vld [vmem:[#allocation2 + $0xb80] sm:$0xff]   ;;  %v15442_v17 = vld [vmem:[#allocation2 + $0xc78] sm:$0xff]  }
 0x1aa   :  { %v9702_v19 = vadd.f32 %v13640_v15, %v16532_v35  ;;  %13929 = vmatprep.subr.bf16.mxu0 %v15408_v33  ;;  %v15410_v35 = vld [vmem:[#allocation2 + $0xb30] sm:$0xff]   ;;  %v15439_v15 = vld [vmem:[%s17226_s0 + $0xb8] ss:$528 sps:$4 sm:$0xff]   ;;  %v15456_v31 = vld [vmem:[#allocation2 + $0xc20] sm:$0xff]  }
 0x1ab   :  { %13954 = vmatpush3.bf16.msra.mxu1 %v15415_v40  ;;  %v15458_v33 = vld [vmem:[#allocation2 + $0xc58] sm:$0xff]   ;;  %v15463_v40 = vld [vmem:[#allocation2 + $0xcd0] sm:$0xff]  }
 0x1ac   :  { %v16550_v23 = vadd.f32 %v13662_v20, %v9702_v19  ;;  %13955 = vmatprep.subr.bf16.mxu1 %v15417_v42  ;;  %v15444_v19 = vld [vmem:[#allocation2 + $0xc38] sm:$0xff]   ;;  %v15464_v42 = vld [vmem:[#allocation2 + $0xc10] sm:$0xff]  }
 0x1ad   :  { %13930 = vmatpush3.bf16.msra.mxu0 %v15410_v35  ;;  %v15445_v20 = vld [vmem:[#allocation2 + $0xcb8] sm:$0xff]  }
 0x1ae   :  { %13931 = vmatprep.subr.bf16.mxu0 %v15412_v37  ;;  %v15460_v35 = vld [vmem:[#allocation2 + $0xc18] sm:$0xff]  }
 0x1af   :  { %13956 = vmatpush3.bf16.msra.mxu1 %v15419_v44 }
 0x1b0   :  { %13957 = vmatprep.subr.bf16.mxu1 %v15421_v46 }
 0x1b1   :  { %13932 = vmatpush3.bf16.msra.mxu0 %v15414_v39 }
 0x1b2   :  { %13933 = vmatprep.subr.bf16.mxu0 %v15416_v41 }
 0x1b3   :  { %13958 = vmatpush3.bf16.msra.mxu1 %v15423_v48  ;;  %v15466_v48 = vld [vmem:[#allocation2 + $0xc48] sm:$0xff]  }
 0x1b4   :  { %13959 = vmatprep.subr.bf16.mxu1 %v15425_v52 }
 0x1b5   :  { %13934 = vmatpush3.bf16.msra.mxu0 %v15418_v43 }
 0x1b6   :  { %13935 = vmatprep.subr.bf16.mxu0 %v15420_v45  ;;  %v15465_v45 = vld [vmem:[#allocation2 + $0xc90] sm:$0xff]  }
 0x1b7   :  { %13960 = vmatpush3.bf16.msra.mxu1 %v15427_v57  ;;  %v15469_v57 = vld [vmem:[#allocation2 + $0xc88] sm:$0xff]  }
 0x1b8   :  { %13961 = vmatprep.subr.bf16.mxu1 %v15429_v63 }
 0x1b9   :  { %13936 = vmatpush3.bf16.msra.mxu0 %v15422_v47 }
 0x1ba   :  { %13937 = vmatprep.subr.bf16.mxu0 %v15424_v50 }
 0x1bb   :  { %13962 = vmatpush3.bf16.msra.mxu1 %v15431_v5  ;;  %v15480_v5 = vld [vmem:[#allocation2 + $0xd78] sm:$0xff]  }
 0x1bc   :  { %13963 = vmatprep.subr.bf16.mxu1 %v15433_v9  ;;  %v15484_v9 = vld [vmem:[#allocation2 + $0xd70] sm:$0xff]  }
 0x1bd   :  { %13938 = vmatpush3.bf16.msra.mxu0 %v15426_v54 }
 0x1be   :  { %13939 = vmatprep.subr.bf16.mxu0 %v15428_v60 }
 0x1bf   :  { %13964 = vmatpush3.bf16.msra.mxu1 %v15435_v12  ;;  %v15487_v12 = vld [vmem:[#allocation2 + $0xdb0] sm:$0xff]  }
 0x1c0   :  { %13993 = vmatprep.subr.bf16.mxu1 %v15443_v18  ;;  %v15493_v18 = vld [vmem:[#allocation2 + $0xde0] sm:$0xff]  }
 0x1c1   :  { %v13679_v49 = vpop.f32.mrf.mxu0  ;;  %13940 = vmatpush3.bf16.msra.mxu0 %v15430_v1  ;;  %v15474_v1 = vld [vmem:[%s17226_s0 + $0xc0] ss:$528 sps:$4 sm:$0xff]  }
 0x1c2   :  { %v13701_v51 = vpop.f32.mrf.mxu1  ;;  %13941 = vmatprep.subr.bf16.mxu0 %v15432_v7  ;;  %10312 = vmatmul.mubr.bf16.vlgmr.msra.gmra.mxu1 %v15439_v15  ;;  %v15482_v7 = vld [vmem:[#allocation2 + $0xd38] sm:$0xff]   ;;  %v15490_v15 = vld [vmem:[#allocation2 + $0xd28] sm:$0xff]  }
 0x1c3   :  { %v13680_v53 = vpop.f32.mrf.mxu0  ;;  %13994 = vmatpush3.bf16.msra.mxu1 %v15445_v20  ;;  %v15495_v20 = vld [vmem:[#allocation2 + $0xda0] sm:$0xff]  }
 0x1c4   :  { %v13681_v55 = vadd.f32 %v13680_v53, %v13679_v49  ;;  %v13702_v56 = vpop.f32.mrf.mxu1  ;;  %13995 = vmatprep.subr.bf16.mxu1 %v15447_v22  ;;  %v15468_v53 = vld [vmem:[#allocation2 + $0xc08] sm:$0xff]   ;;  %v15497_v22 = vld [vmem:[#allocation2 + $0xdd8] sm:$0xff]  }
 0x1c5   :  { %v13703_v58 = vadd.f32 %v13702_v56, %v13701_v51  ;;  %v13682_v59 = vpop.f32.mrf.mxu0  ;;  %13942 = vmatpush3.bf16.msra.mxu0 %v15434_v10  ;;  %v15467_v51 = vld [vmem:[#allocation2 + $0xcc8] sm:$0xff]   ;;  %v15485_v10 = vld [vmem:[#allocation2 + $0xdf0] sm:$0xff]  }
 0x1c6   :  { %v9781_v61 = vadd.f32 %v13681_v55, %v16547_v14  ;;  %v13704_v62 = vpop.f32.mrf.mxu1  ;;  %v15438_v14 = vld [vmem:[%s17226_s0 + $0xb4] ss:$528 sps:$4 sm:$0xff]   ;;  %13971 = vmatprep.subr.bf16.mxu0 %v15442_v17 }
 0x1c7   :  { %v13683_v0 = vpop.f32.mrf.mxu0  ;;  %10270 = vmatprep.mubr.bf16.mxu0 %v15438_v14  ;;  %13996 = vmatpush3.bf16.msra.mxu1 %v15449_v24  ;;  %v15489_v14 = vld [vmem:[#allocation2 + $0xde8] sm:$0xff]   ;;  %v15492_v17 = vld [vmem:[#allocation2 + $0xd60] sm:$0xff]   ;;  %v15499_v24 = vld [vmem:[#allocation2 + $0xd98] sm:$0xff]  }
 0x1c8   :  { %v16565_v2 = vadd.f32 %v13703_v58, %v9781_v61  ;;  %v13684_v3 = vadd.f32 %v13683_v0, %v13682_v59  ;;  %v13705_v4 = vpop.f32.mrf.mxu1  ;;  %10271 = vmatmul.mubr.bf16.vlgmr.msra.gmra.mxu0 %v15436_v13  ;;  %13997 = vmatprep.subr.bf16.mxu1 %v15451_v26  ;;  %v15470_v59 = vld [vmem:[#allocation2 + $0xc40] sm:$0xff]   ;;  %v15488_v13 = vld [vmem:[#allocation2 + $0xd68] sm:$0xff]  }
 0x1c9   :  { %v13706_v6 = vadd.f32 %v13705_v4, %v13704_v62  ;;  %13972 = vmatpush3.bf16.msra.mxu0 %v15444_v19  ;;  %v15471_v61 = vld [vmem:[#allocation2 + $0xcc0] sm:$0xff]   ;;  %v15479_v4 = vld [vmem:[%s17226_s0 + $0xcc] ss:$528 sps:$4 sm:$0xff]  }
 0x1ca   :  { %v9784_v8 = vadd.f32 %v13684_v3, %v16550_v23  ;;  %13973 = vmatprep.subr.bf16.mxu0 %v15446_v21  ;;  %v15448_v23 = vld [vmem:[#allocation2 + $0xc30] sm:$0xff]   ;;  %v15472_v62 = vld [vmem:[#allocation2 + $0xc00] sm:$0xff]   ;;  %v15477_v3 = vld [vmem:[%s17226_s0 + $0xc8] ss:$528 sps:$4 sm:$0xff]   ;;  %10393 = vmatprep.mubr.bf16.mxu1 %v15479_v4 }
 0x1cb   :  { %13998 = vmatpush3.bf16.msra.mxu1 %v15453_v28  ;;  %v15473_v0 = vld [vmem:[#allocation2 + $0xc80] sm:$0xff]   ;;  %v15496_v21 = vld [vmem:[#allocation2 + $0xd58] sm:$0xff]   ;;  %v15529_v4 = vld [vmem:[#allocation2 + $0xea8] sm:$0xff]  }
 0x1cc   :  { %v16568_v11 = vadd.f32 %v13706_v6, %v9784_v8  ;;  %13999 = vmatprep.subr.bf16.mxu1 %v15455_v30  ;;  %v15481_v6 = vld [vmem:[#allocation2 + $0xdf8] sm:$0xff]   ;;  %v15494_v19 = vld [vmem:[#allocation2 + $0xd20] sm:$0xff]  }
 0x1cd   :  { %13974 = vmatpush3.bf16.msra.mxu0 %v15448_v23  ;;  %v15483_v8 = vld [vmem:[#allocation2 + $0xdb8] sm:$0xff]  }
 0x1ce   :  { %13975 = vmatprep.subr.bf16.mxu0 %v15450_v25  ;;  %v15498_v23 = vld [vmem:[#allocation2 + $0xd18] sm:$0xff]   ;;  %v15500_v25 = vld [vmem:[#allocation2 + $0xd50] sm:$0xff]  }
 0x1cf   :  { %14000 = vmatpush3.bf16.msra.mxu1 %v15457_v32 }
 0x1d0   :  { %14001 = vmatprep.subr.bf16.mxu1 %v15459_v34  ;;  %v15504_v34 = vld [vmem:[#allocation2 + $0xd48] sm:$0xff]  }
 0x1d1   :  { %13976 = vmatpush3.bf16.msra.mxu0 %v15452_v27  ;;  %v15501_v27 = vld [vmem:[#allocation2 + $0xdd0] sm:$0xff]  }
 0x1d2   :  { %13977 = vmatprep.subr.bf16.mxu0 %v15454_v29  ;;  %v15502_v29 = vld [vmem:[#allocation2 + $0xd10] sm:$0xff]  }
 0x1d3   :  { %14002 = vmatpush3.bf16.msra.mxu1 %v15461_v36 }
 0x1d4   :  { %14003 = vmatprep.subr.bf16.mxu1 %v15463_v40  ;;  %v15506_v40 = vld [vmem:[#allocation2 + $0xd08] sm:$0xff]  }
 0x1d5   :  { %13978 = vmatpush3.bf16.msra.mxu0 %v15456_v31  ;;  %v15503_v31 = vld [vmem:[#allocation2 + $0xd90] sm:$0xff]  }
 0x1d6   :  { %13979 = vmatprep.subr.bf16.mxu0 %v15458_v33 }
 0x1d7   :  { %14004 = vmatpush3.bf16.msra.mxu1 %v15465_v45 }
 0x1d8   :  { %14005 = vmatprep.subr.bf16.mxu1 %v15467_v51  ;;  %v15511_v51 = vld [vmem:[#allocation2 + $0xd80] sm:$0xff]  }
 0x1d9   :  { %13980 = vmatpush3.bf16.msra.mxu0 %v15460_v35 }
 0x1da   :  { %13981 = vmatprep.subr.bf16.mxu0 %v15462_v38 }
 0x1db   :  { %14006 = vmatpush3.bf16.msra.mxu1 %v15469_v57  ;;  %v15518_v57 = vld [vmem:[#allocation2 + $0xe78] sm:$0xff]  }
 0x1dc   :  { %14007 = vmatprep.subr.bf16.mxu1 %v15471_v61  ;;  %v15522_v61 = vld [vmem:[#allocation2 + $0xe70] sm:$0xff]  }
 0x1dd   :  { %13982 = vmatpush3.bf16.msra.mxu0 %v15464_v42  ;;  %v15507_v42 = vld [vmem:[#allocation2 + $0xd88] sm:$0xff]  }
 0x1de   :  { %13983 = vmatprep.subr.bf16.mxu0 %v15466_v48  ;;  %v15509_v48 = vld [vmem:[#allocation2 + $0xdc0] sm:$0xff]  }
 0x1df   :  { %14008 = vmatpush3.bf16.msra.mxu1 %v15473_v0  ;;  %v15525_v0 = vld [vmem:[#allocation2 + $0xeb0] sm:$0xff]  }
 0x1e0   :  { %14037 = vmatprep.subr.bf16.mxu1 %v15481_v6  ;;  %v15531_v6 = vld [vmem:[#allocation2 + $0xee0] sm:$0xff]  }
 0x1e1   :  { %v13723_v37 = vpop.f32.mrf.mxu0  ;;  %13984 = vmatpush3.bf16.msra.mxu0 %v15468_v53  ;;  %v15512_v53 = vld [vmem:[%s17226_s0 + $0xd0] ss:$528 sps:$4 sm:$0xff]  }
 0x1e2   :  { %v13745_v39 = vpop.f32.mrf.mxu1  ;;  %13985 = vmatprep.subr.bf16.mxu0 %v15470_v59  ;;  %10394 = vmatmul.mubr.bf16.vlgmr.msra.gmra.mxu1 %v15477_v3  ;;  %v15520_v59 = vld [vmem:[#allocation2 + $0xe38] sm:$0xff]   ;;  %v15528_v3 = vld [vmem:[#allocation2 + $0xe28] sm:$0xff]  }
 0x1e3   :  { %v13724_v41 = vpop.f32.mrf.mxu0  ;;  %14038 = vmatpush3.bf16.msra.mxu1 %v15483_v8  ;;  %v15533_v8 = vld [vmem:[#allocation2 + $0xea0] sm:$0xff]  }
 0x1e4   :  { %v13725_v43 = vadd.f32 %v13724_v41, %v13723_v37  ;;  %v13746_v44 = vpop.f32.mrf.mxu1  ;;  %14039 = vmatprep.subr.bf16.mxu1 %v15485_v10  ;;  %v15505_v37 = vld [vmem:[#allocation2 + $0xdc8] sm:$0xff]   ;;  %v15535_v10 = vld [vmem:[#allocation2 + $0xed8] sm:$0xff]  }
 0x1e5   :  { %v13747_v46 = vadd.f32 %v13746_v44, %v13745_v39  ;;  %v13726_v47 = vpop.f32.mrf.mxu0  ;;  %13986 = vmatpush3.bf16.msra.mxu0 %v15472_v62  ;;  %v15523_v62 = vld [vmem:[#allocation2 + $0xef0] sm:$0xff]  }
 0x1e6   :  { %v9863_v49 = vadd.f32 %v13725_v43, %v16565_v2  ;;  %v13748_v50 = vpop.f32.mrf.mxu1  ;;  %v15476_v2 = vld [vmem:[%s17226_s0 + $0xc4] ss:$528 sps:$4 sm:$0xff]   ;;  %14015 = vmatprep.subr.bf16.mxu0 %v15480_v5 }
 0x1e7   :  { %v13727_v52 = vpop.f32.mrf.mxu0  ;;  %10352 = vmatprep.mubr.bf16.mxu0 %v15476_v2  ;;  %14040 = vmatpush3.bf16.msra.mxu1 %v15487_v12  ;;  %v15527_v2 = vld [vmem:[#allocation2 + $0xee8] sm:$0xff]   ;;  %v15530_v5 = vld [vmem:[#allocation2 + $0xe60] sm:$0xff]   ;;  %v15537_v12 = vld [vmem:[#allocation2 + $0xe98] sm:$0xff]  }
 0x1e8   :  { %v16583_v54 = vadd.f32 %v13747_v46, %v9863_v49  ;;  %v13728_v55 = vadd.f32 %v13727_v52, %v13726_v47  ;;  %v13749_v56 = vpop.f32.mrf.mxu1  ;;  %10353 = vmatmul.mubr.bf16.vlgmr.msra.gmra.mxu0 %v15474_v1  ;;  %14041 = vmatprep.subr.bf16.mxu1 %v15489_v14  ;;  %v15508_v46 = vld [vmem:[#allocation2 + $0xd40] sm:$0xff]   ;;  %v15526_v1 = vld [vmem:[#allocation2 + $0xe68] sm:$0xff]   ;;  %v15538_v14 = vld [vmem:[#allocation2 + $0xe50] sm:$0xff]  }
 0x1e9   :  { %v13750_v58 = vadd.f32 %v13749_v56, %v13748_v50  ;;  %14016 = vmatpush3.bf16.msra.mxu0 %v15482_v7  ;;  %v15510_v50 = vld [vmem:[#allocation2 + $0xd00] sm:$0xff]   ;;  %v15517_v56 = vld [vmem:[%s17226_s0 + $0xdc] ss:$528 sps:$4 sm:$0xff]  }
 0x1ea   :  { %v9866_v60 = vadd.f32 %v13728_v55, %v16568_v11  ;;  %14017 = vmatprep.subr.bf16.mxu0 %v15484_v9  ;;  %v15486_v11 = vld [vmem:[#allocation2 + $0xd30] sm:$0xff]   ;;  %v15515_v55 = vld [vmem:[%s17226_s0 + $0xd8] ss:$528 sps:$4 sm:$0xff]   ;;  %10475 = vmatprep.mubr.bf16.mxu1 %v15517_v56  ;;  %v15532_v7 = vld [vmem:[#allocation2 + $0xe20] sm:$0xff]  }
 0x1eb   :  { %14042 = vmatpush3.bf16.msra.mxu1 %v15491_v16  ;;  %v15534_v9 = vld [vmem:[#allocation2 + $0xe58] sm:$0xff]   ;;  %v15567_v56 = vld [vmem:[#allocation2 + $0xfa8] sm:$0xff]  }
 0x1ec   :  { %v16586_v63 = vadd.f32 %v13750_v58, %v9866_v60  ;;  %14043 = vmatprep.subr.bf16.mxu1 %v15493_v18  ;;  %v15519_v58 = vld [vmem:[#allocation2 + $0xef8] sm:$0xff]   ;;  %v15540_v18 = vld [vmem:[#allocation2 + $0xe10] sm:$0xff]  }
 0x1ed   :  { %14018 = vmatpush3.bf16.msra.mxu0 %v15486_v11  ;;  %v15521_v60 = vld [vmem:[#allocation2 + $0xeb8] sm:$0xff]  }
 0x1ee   :  { %14019 = vmatprep.subr.bf16.mxu0 %v15488_v13  ;;  %v15536_v11 = vld [vmem:[#allocation2 + $0xe18] sm:$0xff]  }
 0x1ef   :  { %14044 = vmatpush3.bf16.msra.mxu1 %v15495_v20  ;;  %v15541_v20 = vld [vmem:[#allocation2 + $0xe90] sm:$0xff]  }
 0x1f0   :  { %14045 = vmatprep.subr.bf16.mxu1 %v15497_v22 }
 0x1f1   :  { %14020 = vmatpush3.bf16.msra.mxu0 %v15490_v15  ;;  %v15539_v15 = vld [vmem:[#allocation2 + $0xed0] sm:$0xff]  }
 0x1f2   :  { %14021 = vmatprep.subr.bf16.mxu0 %v15492_v17 }
 0x1f3   :  { %14046 = vmatpush3.bf16.msra.mxu1 %v15499_v24 }
 0x1f4   :  { %14047 = vmatprep.subr.bf16.mxu1 %v15501_v27 }
 0x1f5   :  { %14022 = vmatpush3.bf16.msra.mxu0 %v15494_v19 }
 0x1f6   :  { %14023 = vmatprep.subr.bf16.mxu0 %v15496_v21 }
 0x1f7   :  { %14048 = vmatpush3.bf16.msra.mxu1 %v15503_v31 }
 0x1f8   :  { %14049 = vmatprep.subr.bf16.mxu1 %v15505_v37  ;;  %v15547_v37 = vld [vmem:[#allocation2 + $0xec0] sm:$0xff]  }
 0x1f9   :  { %14024 = vmatpush3.bf16.msra.mxu0 %v15498_v23  ;;  %v15542_v23 = vld [vmem:[#allocation2 + $0xe48] sm:$0xff]  }
 0x1fa   :  { %14025 = vmatprep.subr.bf16.mxu0 %v15500_v25 }
 0x1fb   :  { %14050 = vmatpush3.bf16.msra.mxu1 %v15507_v42  ;;  %v15552_v42 = vld [vmem:[%s17226_s0 + $0xe4] ss:$528 sps:$4 sm:$0xff]  }
 0x1fc   :  { %14051 = vmatprep.subr.bf16.mxu1 %v15509_v48  ;;  %v15559_v48 = vld [vmem:[#allocation2 + $0xfb8] sm:$0xff]  }
 0x1fd   :  { %14026 = vmatpush3.bf16.msra.mxu0 %v15502_v29  ;;  %v15544_v29 = vld [vmem:[#allocation2 + $0xe08] sm:$0xff]  }
 0x1fe   :  { %14027 = vmatprep.subr.bf16.mxu0 %v15504_v34  ;;  %v15546_v34 = vld [vmem:[#allocation2 + $0xe40] sm:$0xff]  }
 0x1ff   :  { %14052 = vmatpush3.bf16.msra.mxu1 %v15511_v51  ;;  %v15562_v51 = vld [vmem:[#allocation2 + $0xf30] sm:$0xff]  }
 0x200   :  { %14081 = vmatprep.subr.bf16.mxu1 %v15519_v58  ;;  %v15569_v58 = vld [vmem:[#allocation2 + $0xfe0] sm:$0xff]  }
 0x201   :  { %v13767_v26 = vpop.f32.mrf.mxu0  ;;  %14028 = vmatpush3.bf16.msra.mxu0 %v15506_v40  ;;  %v15549_v40 = vld [vmem:[#allocation2 + $0xe80] sm:$0xff]  }
 0x202   :  { %v13789_v28 = vpop.f32.mrf.mxu1  ;;  %14029 = vmatprep.subr.bf16.mxu0 %v15508_v46  ;;  %10476 = vmatmul.mubr.bf16.vlgmr.msra.gmra.mxu1 %v15515_v55  ;;  %v15557_v46 = vld [vmem:[#allocation2 + $0xff8] sm:$0xff]   ;;  %v15566_v55 = vld [vmem:[#allocation2 + $0xf28] sm:$0xff]  }
 0x203   :  { %v13768_v30 = vpop.f32.mrf.mxu0  ;;  %14082 = vmatpush3.bf16.msra.mxu1 %v15521_v60  ;;  %v15571_v60 = vld [vmem:[#allocation2 + $0xfa0] sm:$0xff]  }
 0x204   :  { %v13769_v32 = vadd.f32 %v13768_v30, %v13767_v26  ;;  %v13790_v33 = vpop.f32.mrf.mxu1  ;;  %14083 = vmatprep.subr.bf16.mxu1 %v15523_v62  ;;  %v15543_v26 = vld [vmem:[#allocation2 + $0xec8] sm:$0xff]   ;;  %v15573_v62 = vld [vmem:[#allocation2 + $0xfd8] sm:$0xff]  }
 0x205   :  { %v13791_v35 = vadd.f32 %v13790_v33, %v13789_v28  ;;  %v13770_v36 = vpop.f32.mrf.mxu0  ;;  %14030 = vmatpush3.bf16.msra.mxu0 %v15510_v50  ;;  %v15561_v50 = vld [vmem:[#allocation2 + $0xff0] sm:$0xff]  }
 0x206   :  { %v9945_v38 = vadd.f32 %v13769_v32, %v16583_v54  ;;  %v13792_v39 = vpop.f32.mrf.mxu1  ;;  %v15514_v54 = vld [vmem:[%s17226_s0 + $0xd4] ss:$528 sps:$4 sm:$0xff]   ;;  %14059 = vmatprep.subr.bf16.mxu0 %v15518_v57  ;;  %v15545_v32 = vld [vmem:[#allocation2 + $0xe88] sm:$0xff]  }
 0x207   :  { %v13771_v41 = vpop.f32.mrf.mxu0  ;;  %10434 = vmatprep.mubr.bf16.mxu0 %v15514_v54  ;;  %14084 = vmatpush3.bf16.msra.mxu1 %v15525_v0  ;;  %v15565_v54 = vld [vmem:[#allocation2 + $0xfe8] sm:$0xff]   ;;  %v15568_v57 = vld [vmem:[#allocation2 + $0xf60] sm:$0xff]   ;;  %v15575_v0 = vld [vmem:[#allocation2 + $0xf98] sm:$0xff]  }
 0x208   :  { %v16601_v43 = vadd.f32 %v13791_v35, %v9945_v38  ;;  %v13772_v44 = vadd.f32 %v13771_v41, %v13770_v36  ;;  %v13793_v45 = vpop.f32.mrf.mxu1  ;;  %10435 = vmatmul.mubr.bf16.vlgmr.msra.gmra.mxu0 %v15512_v53  ;;  %14085 = vmatprep.subr.bf16.mxu1 %v15527_v2  ;;  %v15548_v38 = vld [vmem:[#allocation2 + $0xe00] sm:$0xff]   ;;  %v15564_v53 = vld [vmem:[#allocation2 + $0xf68] sm:$0xff]   ;;  %v15576_v2 = vld [vmem:[#allocation2 + $0xf50] sm:$0xff]  }
 0x209   :  { %v13794_v47 = vadd.f32 %v13793_v45, %v13792_v39  ;;  %14060 = vmatpush3.bf16.msra.mxu0 %v15520_v59  ;;  %v15550_v41 = vld [vmem:[%s17226_s0 + $0xe0] ss:$528 sps:$4 sm:$0xff]   ;;  %10516 = vmatprep.mubr.bf16.mxu0 %v15552_v42  ;;  %v15556_v45 = vld [vmem:[#allocation2 + $0xf78] sm:$0xff]   ;;  %v15603_v42 = vld [vmem:[#allocation2 + $0x10e8] sm:$0xff]  }
 0x20a   :  { %v9948_v49 = vadd.f32 %v13772_v44, %v16586_v63  ;;  %14061 = vmatprep.subr.bf16.mxu0 %v15522_v61  ;;  %v15524_v63 = vld [vmem:[#allocation2 + $0xe30] sm:$0xff]   ;;  %v15555_v44 = vld [vmem:[%s17226_s0 + $0xec] ss:$528 sps:$4 sm:$0xff]   ;;  %v15570_v59 = vld [vmem:[#allocation2 + $0xf20] sm:$0xff]  }
 0x20b   :  { %14086 = vmatpush3.bf16.msra.mxu1 %v15529_v4  ;;  %10557 = vmatprep.mubr.bf16.mxu1 %v15555_v44  ;;  %v15572_v61 = vld [vmem:[#allocation2 + $0xf58] sm:$0xff]   ;;  %v15577_v4 = vld [vmem:[#allocation2 + $0xfd0] sm:$0xff]   ;;  %v15605_v44 = vld [vmem:[#allocation2 + $0x10a8] sm:$0xff]  }
 0x20c   :  { %v16604_v52 = vadd.f32 %v13794_v47, %v9948_v49  ;;  %14087 = vmatprep.subr.bf16.mxu1 %v15531_v6  ;;  %v15558_v47 = vld [vmem:[#allocation2 + $0xf38] sm:$0xff]   ;;  %v15560_v49 = vld [vmem:[#allocation2 + $0xf70] sm:$0xff]  }
 0x20d   :  { %14062 = vmatpush3.bf16.msra.mxu0 %v15524_v63  ;;  %v15574_v63 = vld [vmem:[#allocation2 + $0xf18] sm:$0xff]   ;;  %v15578_v6 = vld [vmem:[#allocation2 + $0xf10] sm:$0xff]  }
 0x20e   :  { %14063 = vmatprep.subr.bf16.mxu0 %v15526_v1 }
 0x20f   :  { %14088 = vmatpush3.bf16.msra.mxu1 %v15533_v8 }
 0x210   :  { %14089 = vmatprep.subr.bf16.mxu1 %v15535_v10 }
 0x211   :  { %14064 = vmatpush3.bf16.msra.mxu0 %v15528_v3 }
 0x212   :  { %14065 = vmatprep.subr.bf16.mxu0 %v15530_v5 }
 0x213   :  { %14090 = vmatpush3.bf16.msra.mxu1 %v15537_v12  ;;  %v15580_v12 = vld [vmem:[#allocation2 + $0xf48] sm:$0xff]  }
 0x214   :  { %14091 = vmatprep.subr.bf16.mxu1 %v15539_v15  ;;  %v15581_v15 = vld [vmem:[#allocation2 + $0xfc8] sm:$0xff]  }
 0x215   :  { %14066 = vmatpush3.bf16.msra.mxu0 %v15532_v7 }
 0x216   :  { %14067 = vmatprep.subr.bf16.mxu0 %v15534_v9  ;;  %v15579_v9 = vld [vmem:[#allocation2 + $0xf90] sm:$0xff]  }
 0x217   :  { %14092 = vmatpush3.bf16.msra.mxu1 %v15541_v20 }
 0x218   :  { %14093 = vmatprep.subr.bf16.mxu1 %v15543_v26  ;;  %v15586_v26 = vld [vmem:[#allocation2 + $0xf00] sm:$0xff]  }
 0x219   :  { %14068 = vmatpush3.bf16.msra.mxu0 %v15536_v11 }
 0x21a   :  { %14069 = vmatprep.subr.bf16.mxu0 %v15538_v14 }
 0x21b   :  { %14094 = vmatpush3.bf16.msra.mxu1 %v15545_v32  ;;  %v15593_v32 = vld [vmem:[%s17226_s0 + $0xfc] ss:$528 sps:$4 sm:$0xff]  }
 0x21c   :  { %14095 = vmatprep.subr.bf16.mxu1 %v15547_v37  ;;  %v15598_v37 = vld [vmem:[#allocation2 + $0x1070] sm:$0xff]  }
 0x21d   :  { %14070 = vmatpush3.bf16.msra.mxu0 %v15540_v18 }
 0x21e   :  { %14071 = vmatprep.subr.bf16.mxu0 %v15542_v23  ;;  %v15584_v23 = vld [vmem:[#allocation2 + $0xf40] sm:$0xff]  }
 0x21f   :  { %14096 = vmatpush3.bf16.msra.mxu1 %v15549_v40  ;;  %v15601_v40 = vld [vmem:[#allocation2 + $0x10b0] sm:$0xff]  }
 0x220   :  { %14125 = vmatprep.subr.bf16.mxu1 %v15557_v46  ;;  %v15607_v46 = vld [vmem:[#allocation2 + $0x10e0] sm:$0xff]  }
 0x221   :  { %14072 = vmatpush3.bf16.msra.mxu0 %v15544_v29  ;;  %v15588_v29 = vld [vmem:[%s17226_s0 + $0xf0] ss:$528 sps:$4 sm:$0xff]  }
 0x222   :  { %v13833_v16 = vpop.f32.mrf.mxu1  ;;  %14073 = vmatprep.subr.bf16.mxu0 %v15546_v34  ;;  %v15595_v34 = vld [vmem:[#allocation2 + $0x10f8] sm:$0xff]  }
 0x224   :  { %v13834_v21 = vpop.f32.mrf.mxu1 }
 0x225   :  { %v13835_v25 = vadd.f32 %v13834_v21, %v13833_v16  ;;  %14074 = vmatpush3.bf16.msra.mxu0 %v15548_v38  ;;  %v15583_v21 = vld [vmem:[#allocation2 + $0xf88] sm:$0xff]   ;;  %v15599_v38 = vld [vmem:[#allocation2 + $0x10f0] sm:$0xff]  }
 0x226   :  { %v13836_v27 = vpop.f32.mrf.mxu1  ;;  %14103 = vmatprep.subr.bf16.mxu0 %v15556_v45  ;;  %v15606_v45 = vld [vmem:[#allocation2 + $0x1060] sm:$0xff]  }
 0x228   :  { %v13811_v13 = vpop.f32.mrf.mxu0  ;;  %v13837_v33 = vpop.f32.mrf.mxu1  ;;  %10517 = vmatmul.mubr.bf16.vlgmr.msra.gmra.mxu0 %v15550_v41  ;;  %v15602_v41 = vld [vmem:[#allocation2 + $0x1068] sm:$0xff]  }
 0x229   :  { %v13838_v36 = vadd.f32 %v13837_v33, %v13836_v27  ;;  %14104 = vmatpush3.bf16.msra.mxu0 %v15558_v47  ;;  %v15594_v33 = vld [vmem:[#allocation2 + $0x1078] sm:$0xff]   ;;  %v15608_v47 = vld [vmem:[#allocation2 + $0x1020] sm:$0xff]  }
 0x22a   :  { %v13812_v17 = vpop.f32.mrf.mxu0  ;;  %14105 = vmatprep.subr.bf16.mxu0 %v15560_v49  ;;  %v15610_v49 = vld [vmem:[#allocation2 + $0x1058] sm:$0xff]  }
 0x22b   :  { %v13813_v19 = vadd.f32 %v13812_v17, %v13811_v13  ;;  %v15582_v17 = vld [vmem:[#allocation2 + $0xf08] sm:$0xff]  }
 0x22c   :  { %v13814_v22 = vpop.f32.mrf.mxu0 }
 0x22d   :  { %v10027_v24 = vadd.f32 %v13813_v19, %v16601_v43  ;;  %v15553_v43 = vld [vmem:[%s17226_s0 + $0xe8] ss:$528 sps:$4 sm:$0xff]   ;;  %14106 = vmatpush3.bf16.msra.mxu0 %v15562_v51 }
 0x22e   :  { %v13815_v28 = vpop.f32.mrf.mxu0  ;;  %10558 = vmatmul.mubr.bf16.vlgmr.msra.gmra.mxu1 %v15553_v43  ;;  %14107 = vmatprep.subr.bf16.mxu0 %v15564_v53  ;;  %v15604_v43 = vld [vmem:[#allocation2 + $0x1028] sm:$0xff]   ;;  %v15612_v51 = vld [vmem:[#allocation2 + $0x1018] sm:$0xff]   ;;  %v15614_v53 = vld [vmem:[#allocation2 + $0x1050] sm:$0xff]  }
 0x22f   :  { %v16619_v30 = vadd.f32 %v13835_v25, %v10027_v24  ;;  %v13816_v31 = vadd.f32 %v13815_v28, %v13814_v22  ;;  %14126 = vmatpush3.bf16.msra.mxu1 %v15559_v48  ;;  %v15585_v25 = vld [vmem:[#allocation2 + $0xfc0] sm:$0xff]   ;;  %10639 = vmatprep.mubr.bf16.mxu1 %v15593_v32  ;;  %v15643_v32 = vld [vmem:[#allocation2 + $0x11a8] sm:$0xff]  }
 0x230   :  { %14127 = vmatprep.subr.bf16.mxu1 %v15561_v50  ;;  %v15587_v28 = vld [vmem:[#allocation2 + $0xf80] sm:$0xff]   ;;  %v15611_v50 = vld [vmem:[#allocation2 + $0x10d8] sm:$0xff]  }
 0x231   :  { %v10030_v35 = vadd.f32 %v13816_v31, %v16604_v52  ;;  %v15563_v52 = vld [vmem:[#allocation2 + $0xfb0] sm:$0xff]   ;;  %14108 = vmatpush3.bf16.msra.mxu0 %v15566_v55  ;;  %v15591_v31 = vld [vmem:[%s17226_s0 + $0xf8] ss:$528 sps:$4 sm:$0xff]   ;;  %v15609_v48 = vld [vmem:[#allocation2 + $0x10a0] sm:$0xff]  }
 0x232   :  { %14109 = vmatprep.subr.bf16.mxu0 %v15568_v57  ;;  %v15615_v55 = vld [vmem:[#allocation2 + $0x10d0] sm:$0xff]  }
 0x233   :  { %v16622_v39 = vadd.f32 %v13838_v36, %v10030_v35  ;;  %14128 = vmatpush3.bf16.msra.mxu1 %v15563_v52  ;;  %v15596_v35 = vld [vmem:[#allocation2 + $0x1038] sm:$0xff]   ;;  %v15616_v57 = vld [vmem:[#allocation2 + $0x1010] sm:$0xff]  }
 0x234   :  { %14129 = vmatprep.subr.bf16.mxu1 %v15565_v54  ;;  %v15597_v36 = vld [vmem:[#allocation2 + $0x10b8] sm:$0xff]  }
 0x235   :  { %14110 = vmatpush3.bf16.msra.mxu0 %v15570_v59  ;;  %v15613_v52 = vld [vmem:[#allocation2 + $0x1098] sm:$0xff]   ;;  %v15617_v59 = vld [vmem:[#allocation2 + $0x1090] sm:$0xff]  }
 0x236   :  { %14111 = vmatprep.subr.bf16.mxu0 %v15572_v61 }
 0x237   :  { %14130 = vmatpush3.bf16.msra.mxu1 %v15567_v56 }
 0x238   :  { %14131 = vmatprep.subr.bf16.mxu1 %v15569_v58 }
 0x239   :  { %14112 = vmatpush3.bf16.msra.mxu0 %v15574_v63 }
 0x23a   :  { %14113 = vmatprep.subr.bf16.mxu0 %v15576_v2 }
 0x23b   :  { %14132 = vmatpush3.bf16.msra.mxu1 %v15571_v60 }
 0x23c   :  { %14133 = vmatprep.subr.bf16.mxu1 %v15573_v62  ;;  %v15618_v62 = vld [vmem:[#allocation2 + $0x1048] sm:$0xff]  }
 0x23d   :  { %14114 = vmatpush3.bf16.msra.mxu0 %v15578_v6  ;;  %v15621_v6 = vld [vmem:[#allocation2 + $0x1088] sm:$0xff]  }
 0x23e   :  { %14115 = vmatprep.subr.bf16.mxu0 %v15580_v12  ;;  %v15623_v12 = vld [vmem:[#allocation2 + $0x10c0] sm:$0xff]  }
 0x23f   :  { %14134 = vmatpush3.bf16.msra.mxu1 %v15575_v0 }
 0x240   :  { %14135 = vmatprep.subr.bf16.mxu1 %v15577_v4  ;;  %v15620_v4 = vld [vmem:[#allocation2 + $0x1008] sm:$0xff]  }
 0x241   :  { %14116 = vmatpush3.bf16.msra.mxu0 %v15582_v17  ;;  %v15626_v17 = vld [vmem:[%s17226_s0 + $0x100] ss:$528 sps:$4 sm:$0xff]  }
 0x242   :  { %v13877_v3 = vpop.f32.mrf.mxu1  ;;  %14117 = vmatprep.subr.bf16.mxu0 %v15584_v23  ;;  %v15634_v23 = vld [vmem:[#allocation2 + $0x1138] sm:$0xff]  }
 0x243   :  { %14136 = vmatpush3.bf16.msra.mxu1 %v15579_v9 }
 0x244   :  { %v13878_v8 = vpop.f32.mrf.mxu1  ;;  %14137 = vmatprep.subr.bf16.mxu1 %v15581_v15  ;;  %v15625_v15 = vld [vmem:[#allocation2 + $0x1080] sm:$0xff]  }
 0x245   :  { %v13879_v10 = vadd.f32 %v13878_v8, %v13877_v3  ;;  %14118 = vmatpush3.bf16.msra.mxu0 %v15586_v26  ;;  %v15637_v26 = vld [vmem:[#allocation2 + $0x11f0] sm:$0xff]  }
 0x246   :  { %v13880_v14 = vpop.f32.mrf.mxu1  ;;  %14147 = vmatprep.subr.bf16.mxu0 %v15594_v33  ;;  %v15644_v33 = vld [vmem:[#allocation2 + $0x1160] sm:$0xff]  }
 0x247   :  { %14138 = vmatpush3.bf16.msra.mxu1 %v15583_v21  ;;  %v15632_v21 = vld [vmem:[#allocation2 + $0x1178] sm:$0xff]  }
 0x248   :  { %v13855_v1 = vpop.f32.mrf.mxu0  ;;  %v13881_v20 = vpop.f32.mrf.mxu1  ;;  %14139 = vmatprep.subr.bf16.mxu1 %v15585_v25  ;;  %v15636_v25 = vld [vmem:[#allocation2 + $0x1170] sm:$0xff]  }
 0x249   :  { %v13882_v22 = vadd.f32 %v13881_v20, %v13880_v14  ;;  %v15624_v14 = vld [vmem:[#allocation2 + $0x1000] sm:$0xff]   ;;  %v15631_v20 = vld [vmem:[%s17226_s0 + $0x10c] ss:$528 sps:$4 sm:$0xff]  }
 0x24a   :  { %v13856_v5 = vpop.f32.mrf.mxu0 }
 0x24b   :  { %v13857_v7 = vadd.f32 %v13856_v5, %v13855_v1  ;;  %14140 = vmatpush3.bf16.msra.mxu1 %v15587_v28  ;;  %v15619_v1 = vld [vmem:[#allocation2 + $0x10c8] sm:$0xff]   ;;  %v15639_v28 = vld [vmem:[#allocation2 + $0x11b0] sm:$0xff]  }
 0x24c   :  { %v13858_v11 = vpop.f32.mrf.mxu0  ;;  %14169 = vmatprep.subr.bf16.mxu1 %v15595_v34  ;;  %v15645_v34 = vld [vmem:[#allocation2 + $0x11e0] sm:$0xff]  }
 0x24d   :  { %v10109_v13 = vadd.f32 %v13857_v7, %v16619_v30  ;;  %v15590_v30 = vld [vmem:[%s17226_s0 + $0xf4] ss:$528 sps:$4 sm:$0xff]  }
 0x24e   :  { %v13859_v16 = vpop.f32.mrf.mxu0  ;;  %10598 = vmatprep.mubr.bf16.mxu0 %v15590_v30  ;;  %10640 = vmatmul.mubr.bf16.vlgmr.msra.gmra.mxu1 %v15591_v31  ;;  %v15641_v30 = vld [vmem:[#allocation2 + $0x11e8] sm:$0xff]  }
 0x24f   :  { %v16637_v18 = vadd.f32 %v13879_v10, %v10109_v13  ;;  %v13860_v19 = vadd.f32 %v13859_v16, %v13858_v11  ;;  %10599 = vmatmul.mubr.bf16.vlgmr.msra.gmra.mxu0 %v15588_v29  ;;  %14170 = vmatpush3.bf16.msra.mxu1 %v15597_v36  ;;  %v15622_v10 = vld [vmem:[#allocation2 + $0x1040] sm:$0xff]   ;;  %v15640_v29 = vld [vmem:[#allocation2 + $0x1168] sm:$0xff]  }
 0x250   :  { %14148 = vmatpush3.bf16.msra.mxu0 %v15596_v35  ;;  %14171 = vmatprep.subr.bf16.mxu1 %v15599_v38  ;;  %v15642_v31 = vld [vmem:[#allocation2 + $0x1128] sm:$0xff]   ;;  %v15646_v35 = vld [vmem:[#allocation2 + $0x1120] sm:$0xff]   ;;  %v15649_v38 = vld [vmem:[#allocation2 + $0x11d8] sm:$0xff]  }
 0x251   :  { %v10112_v24 = vadd.f32 %v13860_v19, %v16622_v39  ;;  %14149 = vmatprep.subr.bf16.mxu0 %v15598_v37  ;;  %v15600_v39 = vld [vmem:[#allocation2 + $0x1030] sm:$0xff]   ;;  %v15629_v19 = vld [vmem:[%s17226_s0 + $0x108] ss:$528 sps:$4 sm:$0xff]   ;;  %10721 = vmatprep.mubr.bf16.mxu1 %v15631_v20  ;;  %v15647_v36 = vld [vmem:[#allocation2 + $0x11a0] sm:$0xff]  }
 0x252   :  { %v15648_v37 = vld [vmem:[#allocation2 + $0x1158] sm:$0xff]   ;;  %v15681_v20 = vld [vmem:[#allocation2 + $0x12a8] sm:$0xff]  }
 0x253   :  { %v16640_v27 = vadd.f32 %v13882_v22, %v10112_v24  ;;  %14172 = vmatpush3.bf16.msra.mxu1 %v15601_v40  ;;  %v15633_v22 = vld [vmem:[#allocation2 + $0x11f8] sm:$0xff]  }
 0x254   :  { %14150 = vmatpush3.bf16.msra.mxu0 %v15600_v39  ;;  %14173 = vmatprep.subr.bf16.mxu1 %v15603_v42  ;;  %v15635_v24 = vld [vmem:[#allocation2 + $0x11b8] sm:$0xff]   ;;  %v15652_v42 = vld [vmem:[#allocation2 + $0x1150] sm:$0xff]  }
 0x255   :  { %14151 = vmatprep.subr.bf16.mxu0 %v15602_v41  ;;  %v15650_v39 = vld [vmem:[#allocation2 + $0x1118] sm:$0xff]  }
 0x256   :  { %v15651_v40 = vld [vmem:[#allocation2 + $0x1198] sm:$0xff]  }
 0x257   :  { %14174 = vmatpush3.bf16.msra.mxu1 %v15605_v44 }
 0x258   :  { %14152 = vmatpush3.bf16.msra.mxu0 %v15604_v43  ;;  %14175 = vmatprep.subr.bf16.mxu1 %v15607_v46  ;;  %v15653_v43 = vld [vmem:[#allocation2 + $0x11d0] sm:$0xff]  }
 0x259   :  { %14153 = vmatprep.subr.bf16.mxu0 %v15606_v45  ;;  %v15654_v46 = vld [vmem:[#allocation2 + $0x1110] sm:$0xff]  }
 0x25b   :  { %14176 = vmatpush3.bf16.msra.mxu1 %v15609_v48  ;;  %v15655_v48 = vld [vmem:[#allocation2 + $0x1190] sm:$0xff]  }
 0x25c   :  { %14154 = vmatpush3.bf16.msra.mxu0 %v15608_v47  ;;  %14177 = vmatprep.subr.bf16.mxu1 %v15611_v50 }
 0x25d   :  { %14155 = vmatprep.subr.bf16.mxu0 %v15610_v49 }
 0x25f   :  { %14178 = vmatpush3.bf16.msra.mxu1 %v15613_v52 }
 0x260   :  { %14156 = vmatpush3.bf16.msra.mxu0 %v15612_v51  ;;  %14179 = vmatprep.subr.bf16.mxu1 %v15615_v55  ;;  %v15656_v51 = vld [vmem:[#allocation2 + $0x1148] sm:$0xff]  }
 0x261   :  { %14157 = vmatprep.subr.bf16.mxu0 %v15614_v53 }
 0x262   :  { %v13921_v56 = vpop.f32.mrf.mxu1 }
 0x263   :  { %14180 = vmatpush3.bf16.msra.mxu1 %v15617_v59 }
 0x264   :  { %v13922_v61 = vpop.f32.mrf.mxu1  ;;  %14158 = vmatpush3.bf16.msra.mxu0 %v15616_v57  ;;  %14181 = vmatprep.subr.bf16.mxu1 %v15619_v1  ;;  %v15658_v57 = vld [vmem:[#allocation2 + $0x1108] sm:$0xff]   ;;  %v15661_v1 = vld [vmem:[#allocation2 + $0x11c0] sm:$0xff]  }
 0x265   :  { %v13923_v63 = vadd.f32 %v13922_v61, %v13921_v56  ;;  %14159 = vmatprep.subr.bf16.mxu0 %v15618_v62  ;;  %v15660_v62 = vld [vmem:[#allocation2 + $0x1140] sm:$0xff]  }
 0x266   :  { %v13924_v3 = vpop.f32.mrf.mxu1 }
 0x267   :  { %14182 = vmatpush3.bf16.msra.mxu1 %v15621_v6  ;;  %v15666_v6 = vld [vmem:[%s17226_s0 + $0x114] ss:$528 sps:$4 sm:$0xff]  }
 0x268   :  { %v13899_v54 = vpop.f32.mrf.mxu0  ;;  %v13925_v9 = vpop.f32.mrf.mxu1  ;;  %14160 = vmatpush3.bf16.msra.mxu0 %v15620_v4  ;;  %14183 = vmatprep.subr.bf16.mxu1 %v15623_v12  ;;  %v15663_v4 = vld [vmem:[#allocation2 + $0x1180] sm:$0xff]   ;;  %v15673_v12 = vld [vmem:[#allocation2 + $0x12b8] sm:$0xff]  }
 0x269   :  { %v13926_v11 = vadd.f32 %v13925_v9, %v13924_v3  ;;  %14161 = vmatprep.subr.bf16.mxu0 %v15622_v10  ;;  %v15670_v9 = vld [vmem:[#allocation2 + $0x1278] sm:$0xff]  }
 0x26a   :  { %v13900_v58 = vpop.f32.mrf.mxu0  ;;  %v15671_v10 = vld [vmem:[#allocation2 + $0x12f8] sm:$0xff]  }
 0x26b   :  { %v13901_v60 = vadd.f32 %v13900_v58, %v13899_v54  ;;  %14184 = vmatpush3.bf16.msra.mxu1 %v15625_v15  ;;  %v15657_v54 = vld [vmem:[#allocation2 + $0x11c8] sm:$0xff]   ;;  %v15676_v15 = vld [vmem:[#allocation2 + $0x1230] sm:$0xff]  }
 0x26c   :  { %v13902_v0 = vpop.f32.mrf.mxu0  ;;  %14162 = vmatpush3.bf16.msra.mxu0 %v15624_v14  ;;  %14213 = vmatprep.subr.bf16.mxu1 %v15633_v22  ;;  %v15675_v14 = vld [vmem:[#allocation2 + $0x12f0] sm:$0xff]   ;;  %v15683_v22 = vld [vmem:[#allocation2 + $0x12e0] sm:$0xff]  }
 0x26d   :  { %v10191_v2 = vadd.f32 %v13901_v60, %v16637_v18  ;;  %v15628_v18 = vld [vmem:[%s17226_s0 + $0x104] ss:$528 sps:$4 sm:$0xff]   ;;  %14191 = vmatprep.subr.bf16.mxu0 %v15632_v21  ;;  %v15659_v60 = vld [vmem:[#allocation2 + $0x1188] sm:$0xff]  }
 0x26e   :  { %v13903_v5 = vpop.f32.mrf.mxu0  ;;  %10680 = vmatprep.mubr.bf16.mxu0 %v15628_v18  ;;  %10722 = vmatmul.mubr.bf16.vlgmr.msra.gmra.mxu1 %v15629_v19  ;;  %v15679_v18 = vld [vmem:[#allocation2 + $0x12e8] sm:$0xff]   ;;  %v15682_v21 = vld [vmem:[#allocation2 + $0x1260] sm:$0xff]  }
 0x26f   :  { %v16655_v7 = vadd.f32 %v13923_v63, %v10191_v2  ;;  %v13904_v8 = vadd.f32 %v13903_v5, %v13902_v0  ;;  %10681 = vmatmul.mubr.bf16.vlgmr.msra.gmra.mxu0 %v15626_v17  ;;  %14214 = vmatpush3.bf16.msra.mxu1 %v15635_v24  ;;  %v15662_v2 = vld [vmem:[#allocation2 + $0x1100] sm:$0xff]   ;;  %v15678_v17 = vld [vmem:[#allocation2 + $0x1268] sm:$0xff]  }
 0x270   :  { %14192 = vmatpush3.bf16.msra.mxu0 %v15634_v23  ;;  %14215 = vmatprep.subr.bf16.mxu1 %v15637_v26  ;;  %v15664_v5 = vld [vmem:[%s17226_s0 + $0x110] ss:$528 sps:$4 sm:$0xff]   ;;  %v15680_v19 = vld [vmem:[#allocation2 + $0x1228] sm:$0xff]   ;;  %v15687_v26 = vld [vmem:[#allocation2 + $0x12d8] sm:$0xff]  }
 0x271   :  { %v10194_v13 = vadd.f32 %v13904_v8, %v16640_v27  ;;  %14193 = vmatprep.subr.bf16.mxu0 %v15636_v25  ;;  %v15638_v27 = vld [vmem:[#allocation2 + $0x1130] sm:$0xff]   ;;  %10762 = vmatprep.mubr.bf16.mxu0 %v15666_v6  ;;  %v15669_v8 = vld [vmem:[%s17226_s0 + $0x11c] ss:$528 sps:$4 sm:$0xff]   ;;  %v15684_v23 = vld [vmem:[#allocation2 + $0x1220] sm:$0xff]  }
 0x272   :  { %10803 = vmatprep.mubr.bf16.mxu1 %v15669_v8  ;;  %v15685_v24 = vld [vmem:[#allocation2 + $0x12a0] sm:$0xff]   ;;  %v15686_v25 = vld [vmem:[#allocation2 + $0x1258] sm:$0xff]   ;;  %v15717_v6 = vld [vmem:[#allocation2 + $0x13e8] sm:$0xff]  }
 0x273   :  { %v16658_v16 = vadd.f32 %v13926_v11, %v10194_v13  ;;  %14216 = vmatpush3.bf16.msra.mxu1 %v15639_v28  ;;  %v15672_v11 = vld [vmem:[#allocation2 + $0x1238] sm:$0xff]   ;;  %v15674_v13 = vld [vmem:[#allocation2 + $0x1270] sm:$0xff]   ;;  %v15719_v8 = vld [vmem:[#allocation2 + $0x13a8] sm:$0xff]  }
 0x274   :  { %14194 = vmatpush3.bf16.msra.mxu0 %v15638_v27  ;;  %14217 = vmatprep.subr.bf16.mxu1 %v15641_v30  ;;  %v15688_v27 = vld [vmem:[#allocation2 + $0x1218] sm:$0xff]   ;;  %v15690_v30 = vld [vmem:[#allocation2 + $0x1250] sm:$0xff]  }
 0x275   :  { %14195 = vmatprep.subr.bf16.mxu0 %v15640_v29  ;;  %v15689_v28 = vld [vmem:[#allocation2 + $0x1298] sm:$0xff]  }
 0x277   :  { %14218 = vmatpush3.bf16.msra.mxu1 %v15643_v32  ;;  %v15691_v32 = vld [vmem:[#allocation2 + $0x12d0] sm:$0xff]  }
 0x278   :  { %14196 = vmatpush3.bf16.msra.mxu0 %v15642_v31  ;;  %14219 = vmatprep.subr.bf16.mxu1 %v15645_v34  ;;  %v15692_v34 = vld [vmem:[#allocation2 + $0x1210] sm:$0xff]  }
 0x279   :  { %14197 = vmatprep.subr.bf16.mxu0 %v15644_v33 }
 0x27b   :  { %14220 = vmatpush3.bf16.msra.mxu1 %v15647_v36 }
 0x27c   :  { %14198 = vmatpush3.bf16.msra.mxu0 %v15646_v35  ;;  %14221 = vmatprep.subr.bf16.mxu1 %v15649_v38 }
 0x27d   :  { %14199 = vmatprep.subr.bf16.mxu0 %v15648_v37  ;;  %v15693_v37 = vld [vmem:[#allocation2 + $0x1290] sm:$0xff]  }
 0x27f   :  { %14222 = vmatpush3.bf16.msra.mxu1 %v15651_v40  ;;  %v15694_v40 = vld [vmem:[#allocation2 + $0x1248] sm:$0xff]  }
 0x280   :  { %14200 = vmatpush3.bf16.msra.mxu0 %v15650_v39  ;;  %14223 = vmatprep.subr.bf16.mxu1 %v15653_v43  ;;  %v15695_v43 = vld [vmem:[#allocation2 + $0x12c8] sm:$0xff]  }
 0x281   :  { %14201 = vmatprep.subr.bf16.mxu0 %v15652_v42 }
 0x282   :  { %v13965_v44 = vpop.f32.mrf.mxu1 }
 0x283   :  { %14224 = vmatpush3.bf16.msra.mxu1 %v15655_v48 }
 0x284   :  { %v13966_v49 = vpop.f32.mrf.mxu1  ;;  %14202 = vmatpush3.bf16.msra.mxu0 %v15654_v46  ;;  %14225 = vmatprep.subr.bf16.mxu1 %v15657_v54  ;;  %v15700_v54 = vld [vmem:[#allocation2 + $0x1200] sm:$0xff]  }
 0x285   :  { %v13967_v53 = vadd.f32 %v13966_v49, %v13965_v44  ;;  %14203 = vmatprep.subr.bf16.mxu0 %v15656_v51  ;;  %v15697_v49 = vld [vmem:[#allocation2 + $0x1288] sm:$0xff]   ;;  %v15698_v51 = vld [vmem:[#allocation2 + $0x1240] sm:$0xff]  }
 0x286   :  { %v13968_v55 = vpop.f32.mrf.mxu1 }
 0x287   :  { %14226 = vmatpush3.bf16.msra.mxu1 %v15659_v60  ;;  %v15707_v60 = vld [vmem:[%s17226_s0 + $0x12c] ss:$528 sps:$4 sm:$0xff]  }
 0x288   :  { %v13943_v41 = vpop.f32.mrf.mxu0  ;;  %v13969_v61 = vpop.f32.mrf.mxu1  ;;  %14204 = vmatpush3.bf16.msra.mxu0 %v15658_v57  ;;  %14227 = vmatprep.subr.bf16.mxu1 %v15661_v1  ;;  %v15702_v57 = vld [vmem:[%s17226_s0 + $0x120] ss:$528 sps:$4 sm:$0xff]  }
 0x289   :  { %v13970_v0 = vadd.f32 %v13969_v61, %v13968_v55  ;;  %14205 = vmatprep.subr.bf16.mxu0 %v15660_v62  ;;  %v15708_v61 = vld [vmem:[#allocation2 + $0x1378] sm:$0xff]   ;;  %v15712_v1 = vld [vmem:[#allocation2 + $0x1370] sm:$0xff]  }
 0x28a   :  { %v13944_v45 = vpop.f32.mrf.mxu0  ;;  %v15709_v62 = vld [vmem:[#allocation2 + $0x13f8] sm:$0xff]  }
 0x28b   :  { %v13945_v47 = vadd.f32 %v13944_v45, %v13943_v41  ;;  %14228 = vmatpush3.bf16.msra.mxu1 %v15663_v4  ;;  %v15696_v45 = vld [vmem:[#allocation2 + $0x1208] sm:$0xff]   ;;  %v15715_v4 = vld [vmem:[#allocation2 + $0x13b0] sm:$0xff]  }
 0x28c   :  { %v13946_v50 = vpop.f32.mrf.mxu0  ;;  %14206 = vmatpush3.bf16.msra.mxu0 %v15662_v2  ;;  %14257 = vmatprep.subr.bf16.mxu1 %v15671_v10  ;;  %v15713_v2 = vld [vmem:[#allocation2 + $0x13f0] sm:$0xff]   ;;  %v15721_v10 = vld [vmem:[#allocation2 + $0x13e0] sm:$0xff]  }
 0x28d   :  { %v10273_v52 = vadd.f32 %v13945_v47, %v16655_v7  ;;  %v15667_v7 = vld [vmem:[%s17226_s0 + $0x118] ss:$528 sps:$4 sm:$0xff]   ;;  %14235 = vmatprep.subr.bf16.mxu0 %v15670_v9  ;;  %v15720_v9 = vld [vmem:[#allocation2 + $0x1360] sm:$0xff]  }
 0x28e   :  { %v13947_v56 = vpop.f32.mrf.mxu0  ;;  %10804 = vmatmul.mubr.bf16.vlgmr.msra.gmra.mxu1 %v15667_v7  ;;  %v15718_v7 = vld [vmem:[#allocation2 + $0x1328] sm:$0xff]  }
 0x28f   :  { %v16673_v58 = vadd.f32 %v13967_v53, %v10273_v52  ;;  %v13948_v59 = vadd.f32 %v13947_v56, %v13946_v50  ;;  %10763 = vmatmul.mubr.bf16.vlgmr.msra.gmra.mxu0 %v15664_v5  ;;  %14258 = vmatpush3.bf16.msra.mxu1 %v15673_v12  ;;  %v15699_v53 = vld [vmem:[#allocation2 + $0x12c0] sm:$0xff]   ;;  %v15716_v5 = vld [vmem:[#allocation2 + $0x1368] sm:$0xff]  }
 0x290   :  { %14236 = vmatpush3.bf16.msra.mxu0 %v15672_v11  ;;  %14259 = vmatprep.subr.bf16.mxu1 %v15675_v14  ;;  %v15701_v56 = vld [vmem:[#allocation2 + $0x1280] sm:$0xff]   ;;  %v15725_v14 = vld [vmem:[#allocation2 + $0x13d8] sm:$0xff]  }
 0x291   :  { %v10276_v63 = vadd.f32 %v13948_v59, %v16658_v16  ;;  %14237 = vmatprep.subr.bf16.mxu0 %v15674_v13  ;;  %v15677_v16 = vld [vmem:[#allocation2 + $0x12b0] sm:$0xff]   ;;  %v15705_v59 = vld [vmem:[%s17226_s0 + $0x128] ss:$528 sps:$4 sm:$0xff]   ;;  %10885 = vmatprep.mubr.bf16.mxu1 %v15707_v60  ;;  %v15722_v11 = vld [vmem:[#allocation2 + $0x1320] sm:$0xff]  }
 0x292   :  { %v15723_v12 = vld [vmem:[#allocation2 + $0x13a0] sm:$0xff]   ;;  %v15724_v13 = vld [vmem:[#allocation2 + $0x1358] sm:$0xff]   ;;  %v15757_v60 = vld [vmem:[#allocation2 + $0x14a8] sm:$0xff]  }
 0x293   :  { %v16676_v3 = vadd.f32 %v13970_v0, %v10276_v63  ;;  %14260 = vmatpush3.bf16.msra.mxu1 %v15677_v16  ;;  %v15710_v63 = vld [vmem:[#allocation2 + $0x1338] sm:$0xff]  }
 0x294   :  { %14238 = vmatpush3.bf16.msra.mxu0 %v15676_v15  ;;  %14261 = vmatprep.subr.bf16.mxu1 %v15679_v18  ;;  %v15711_v0 = vld [vmem:[#allocation2 + $0x13b8] sm:$0xff]  }
 0x295   :  { %14239 = vmatprep.subr.bf16.mxu0 %v15678_v17  ;;  %v15726_v15 = vld [vmem:[#allocation2 + $0x1318] sm:$0xff]   ;;  %v15728_v17 = vld [vmem:[#allocation2 + $0x1350] sm:$0xff]  }
 0x296   :  { %v15727_v16 = vld [vmem:[#allocation2 + $0x1398] sm:$0xff]  }
 0x297   :  { %14262 = vmatpush3.bf16.msra.mxu1 %v15681_v20 }
 0x298   :  { %14240 = vmatpush3.bf16.msra.mxu0 %v15680_v19  ;;  %14263 = vmatprep.subr.bf16.mxu1 %v15683_v22  ;;  %v15729_v19 = vld [vmem:[#allocation2 + $0x13d0] sm:$0xff]  }
 0x299   :  { %14241 = vmatprep.subr.bf16.mxu0 %v15682_v21  ;;  %v15730_v21 = vld [vmem:[#allocation2 + $0x1310] sm:$0xff]  }
 0x29b   :  { %14264 = vmatpush3.bf16.msra.mxu1 %v15685_v24 }
 0x29c   :  { %14242 = vmatpush3.bf16.msra.mxu0 %v15684_v23  ;;  %14265 = vmatprep.subr.bf16.mxu1 %v15687_v26  ;;  %v15731_v23 = vld [vmem:[#allocation2 + $0x1390] sm:$0xff]   ;;  %v15732_v26 = vld [vmem:[#allocation2 + $0x1348] sm:$0xff]  }
 0x29d   :  { %14243 = vmatprep.subr.bf16.mxu0 %v15686_v25 }
 0x29f   :  { %14266 = vmatpush3.bf16.msra.mxu1 %v15689_v28 }
 0x2a0   :  { %14244 = vmatpush3.bf16.msra.mxu0 %v15688_v27  ;;  %14267 = vmatprep.subr.bf16.mxu1 %v15691_v32  ;;  %v15734_v32 = vld [vmem:[#allocation2 + $0x1308] sm:$0xff]  }
 0x2a1   :  { %14245 = vmatprep.subr.bf16.mxu0 %v15690_v30 }
 0x2a2   :  { %v14009_v31 = vpop.f32.mrf.mxu1 }
 0x2a3   :  { %14268 = vmatpush3.bf16.msra.mxu1 %v15693_v37 }
 0x2a4   :  { %v14010_v36 = vpop.f32.mrf.mxu1  ;;  %14246 = vmatpush3.bf16.msra.mxu0 %v15692_v34  ;;  %14269 = vmatprep.subr.bf16.mxu1 %v15695_v43  ;;  %v15735_v34 = vld [vmem:[#allocation2 + $0x1388] sm:$0xff]   ;;  %v15739_v43 = vld [vmem:[#allocation2 + $0x1380] sm:$0xff]  }
 0x2a5   :  { %v14011_v38 = vadd.f32 %v14010_v36, %v14009_v31  ;;  %14247 = vmatprep.subr.bf16.mxu0 %v15694_v40  ;;  %v15737_v40 = vld [vmem:[#allocation2 + $0x13c0] sm:$0xff]  }
 0x2a6   :  { %v14012_v42 = vpop.f32.mrf.mxu1 }
 0x2a7   :  { %14270 = vmatpush3.bf16.msra.mxu1 %v15697_v49  ;;  %v15746_v49 = vld [vmem:[#allocation2 + $0x1478] sm:$0xff]  }
 0x2a8   :  { %v13987_v29 = vpop.f32.mrf.mxu0  ;;  %v14013_v48 = vpop.f32.mrf.mxu1  ;;  %14248 = vmatpush3.bf16.msra.mxu0 %v15696_v45  ;;  %14271 = vmatprep.subr.bf16.mxu1 %v15699_v53  ;;  %v15740_v45 = vld [vmem:[%s17226_s0 + $0x130] ss:$528 sps:$4 sm:$0xff]  }
 0x2a9   :  { %v14014_v50 = vadd.f32 %v14013_v48, %v14012_v42  ;;  %14249 = vmatprep.subr.bf16.mxu0 %v15698_v51  ;;  %v15738_v42 = vld [vmem:[#allocation2 + $0x1300] sm:$0xff]   ;;  %v15745_v48 = vld [vmem:[%s17226_s0 + $0x13c] ss:$528 sps:$4 sm:$0xff]   ;;  %v15750_v53 = vld [vmem:[#allocation2 + $0x1470] sm:$0xff]  }
 0x2aa   :  { %v13988_v33 = vpop.f32.mrf.mxu0  ;;  %v15748_v51 = vld [vmem:[#allocation2 + $0x1438] sm:$0xff]  }
 0x2ab   :  { %v13989_v35 = vadd.f32 %v13988_v33, %v13987_v29  ;;  %14272 = vmatpush3.bf16.msra.mxu1 %v15701_v56  ;;  %v15733_v29 = vld [vmem:[#allocation2 + $0x13c8] sm:$0xff]   ;;  %v15753_v56 = vld [vmem:[#allocation2 + $0x14b0] sm:$0xff]  }
 0x2ac   :  { %v13990_v39 = vpop.f32.mrf.mxu0  ;;  %14250 = vmatpush3.bf16.msra.mxu0 %v15700_v54  ;;  %14301 = vmatprep.subr.bf16.mxu1 %v15709_v62  ;;  %v15751_v54 = vld [vmem:[#allocation2 + $0x14f0] sm:$0xff]   ;;  %v15759_v62 = vld [vmem:[#allocation2 + $0x14e0] sm:$0xff]  }
 0x2ad   :  { %v10355_v41 = vadd.f32 %v13989_v35, %v16673_v58  ;;  %v15704_v58 = vld [vmem:[%s17226_s0 + $0x124] ss:$528 sps:$4 sm:$0xff]   ;;  %14279 = vmatprep.subr.bf16.mxu0 %v15708_v61 }
 0x2ae   :  { %v13991_v44 = vpop.f32.mrf.mxu0  ;;  %10844 = vmatprep.mubr.bf16.mxu0 %v15704_v58  ;;  %10886 = vmatmul.mubr.bf16.vlgmr.msra.gmra.mxu1 %v15705_v59  ;;  %v15755_v58 = vld [vmem:[#allocation2 + $0x14e8] sm:$0xff]   ;;  %v15758_v61 = vld [vmem:[#allocation2 + $0x1460] sm:$0xff]  }
 0x2af   :  { %v16691_v46 = vadd.f32 %v14011_v38, %v10355_v41  ;;  %v13992_v47 = vadd.f32 %v13991_v44, %v13990_v39  ;;  %10845 = vmatmul.mubr.bf16.vlgmr.msra.gmra.mxu0 %v15702_v57  ;;  %14302 = vmatpush3.bf16.msra.mxu1 %v15711_v0  ;;  %v15736_v38 = vld [vmem:[#allocation2 + $0x1340] sm:$0xff]   ;;  %v15754_v57 = vld [vmem:[#allocation2 + $0x1468] sm:$0xff]  }
 0x2b0   :  { %14280 = vmatpush3.bf16.msra.mxu0 %v15710_v63  ;;  %14303 = vmatprep.subr.bf16.mxu1 %v15713_v2  ;;  %v15756_v59 = vld [vmem:[#allocation2 + $0x1428] sm:$0xff]   ;;  %v15760_v63 = vld [vmem:[#allocation2 + $0x1420] sm:$0xff]   ;;  %v15763_v2 = vld [vmem:[#allocation2 + $0x14d8] sm:$0xff]  }
 0x2b1   :  { %v10358_v52 = vadd.f32 %v13992_v47, %v16676_v3  ;;  %14281 = vmatprep.subr.bf16.mxu0 %v15712_v1  ;;  %v15714_v3 = vld [vmem:[#allocation2 + $0x1330] sm:$0xff]   ;;  %v15743_v47 = vld [vmem:[%s17226_s0 + $0x138] ss:$528 sps:$4 sm:$0xff]   ;;  %10967 = vmatprep.mubr.bf16.mxu1 %v15745_v48  ;;  %v15761_v0 = vld [vmem:[#allocation2 + $0x14a0] sm:$0xff]  }
 0x2b2   :  { %v15762_v1 = vld [vmem:[#allocation2 + $0x1458] sm:$0xff]   ;;  %v15795_v48 = vld [vmem:[#allocation2 + $0x15a8] sm:$0xff]  }
 0x2b3   :  { %v16694_v55 = vadd.f32 %v14014_v50, %v10358_v52  ;;  %14304 = vmatpush3.bf16.msra.mxu1 %v15715_v4  ;;  %v15747_v50 = vld [vmem:[#allocation2 + $0x14f8] sm:$0xff]  }
 0x2b4   :  { %14282 = vmatpush3.bf16.msra.mxu0 %v15714_v3  ;;  %14305 = vmatprep.subr.bf16.mxu1 %v15717_v6  ;;  %v15749_v52 = vld [vmem:[#allocation2 + $0x14b8] sm:$0xff]   ;;  %v15766_v6 = vld [vmem:[#allocation2 + $0x1450] sm:$0xff]  }
 0x2b5   :  { %14283 = vmatprep.subr.bf16.mxu0 %v15716_v5  ;;  %v15764_v3 = vld [vmem:[#allocation2 + $0x1418] sm:$0xff]  }
 0x2b6   :  { %v15765_v4 = vld [vmem:[#allocation2 + $0x1498] sm:$0xff]  }
 0x2b7   :  { %14306 = vmatpush3.bf16.msra.mxu1 %v15719_v8 }
 0x2b8   :  { %14284 = vmatpush3.bf16.msra.mxu0 %v15718_v7  ;;  %14307 = vmatprep.subr.bf16.mxu1 %v15721_v10  ;;  %v15767_v7 = vld [vmem:[#allocation2 + $0x14d0] sm:$0xff]  }
 0x2b9   :  { %14285 = vmatprep.subr.bf16.mxu0 %v15720_v9  ;;  %v15768_v10 = vld [vmem:[#allocation2 + $0x1410] sm:$0xff]  }
 0x2bb   :  { %14308 = vmatpush3.bf16.msra.mxu1 %v15723_v12  ;;  %v15769_v12 = vld [vmem:[#allocation2 + $0x1490] sm:$0xff]  }
 0x2bc   :  { %14286 = vmatpush3.bf16.msra.mxu0 %v15722_v11  ;;  %14309 = vmatprep.subr.bf16.mxu1 %v15725_v14 }
 0x2bd   :  { %14287 = vmatprep.subr.bf16.mxu0 %v15724_v13 }
 0x2bf   :  { %14310 = vmatpush3.bf16.msra.mxu1 %v15727_v16 }
 0x2c0   :  { %14288 = vmatpush3.bf16.msra.mxu0 %v15726_v15  ;;  %14311 = vmatprep.subr.bf16.mxu1 %v15729_v19  ;;  %v15770_v15 = vld [vmem:[#allocation2 + $0x1448] sm:$0xff]  }
 0x2c1   :  { %14289 = vmatprep.subr.bf16.mxu0 %v15728_v17 }
 0x2c2   :  { %v14053_v20 = vpop.f32.mrf.mxu1 }
 0x2c3   :  { %14312 = vmatpush3.bf16.msra.mxu1 %v15731_v23 }
 0x2c4   :  { %v14054_v25 = vpop.f32.mrf.mxu1  ;;  %14290 = vmatpush3.bf16.msra.mxu0 %v15730_v21  ;;  %14313 = vmatprep.subr.bf16.mxu1 %v15733_v29  ;;  %v15772_v21 = vld [vmem:[#allocation2 + $0x1408] sm:$0xff]   ;;  %v15775_v29 = vld [vmem:[#allocation2 + $0x14c0] sm:$0xff]  }
 0x2c5   :  { %v14055_v27 = vadd.f32 %v14054_v25, %v14053_v20  ;;  %14291 = vmatprep.subr.bf16.mxu0 %v15732_v26  ;;  %v15774_v26 = vld [vmem:[#allocation2 + $0x1440] sm:$0xff]  }
 0x2c6   :  { %v14056_v31 = vpop.f32.mrf.mxu1 }
 0x2c7   :  { %14314 = vmatpush3.bf16.msra.mxu1 %v15735_v34  ;;  %v15780_v34 = vld [vmem:[%s17226_s0 + $0x144] ss:$528 sps:$4 sm:$0xff]  }
 0x2c8   :  { %v14031_v18 = vpop.f32.mrf.mxu0  ;;  %v14057_v37 = vpop.f32.mrf.mxu1  ;;  %14292 = vmatpush3.bf16.msra.mxu0 %v15734_v32  ;;  %14315 = vmatprep.subr.bf16.mxu1 %v15737_v40  ;;  %v15777_v32 = vld [vmem:[#allocation2 + $0x1480] sm:$0xff]   ;;  %v15787_v40 = vld [vmem:[#allocation2 + $0x15b8] sm:$0xff]  }
 0x2c9   :  { %v14058_v39 = vadd.f32 %v14057_v37, %v14056_v31  ;;  %14293 = vmatprep.subr.bf16.mxu0 %v15736_v38  ;;  %v15784_v37 = vld [vmem:[#allocation2 + $0x1578] sm:$0xff]  }
 0x2ca   :  { %v14032_v22 = vpop.f32.mrf.mxu0  ;;  %v15785_v38 = vld [vmem:[#allocation2 + $0x15f8] sm:$0xff]  }
 0x2cb   :  { %v14033_v24 = vadd.f32 %v14032_v22, %v14031_v18  ;;  %14316 = vmatpush3.bf16.msra.mxu1 %v15739_v43  ;;  %v15771_v18 = vld [vmem:[#allocation2 + $0x14c8] sm:$0xff]   ;;  %v15790_v43 = vld [vmem:[#allocation2 + $0x1530] sm:$0xff]  }
 0x2cc   :  { %v14034_v28 = vpop.f32.mrf.mxu0  ;;  %14294 = vmatpush3.bf16.msra.mxu0 %v15738_v42  ;;  %14345 = vmatprep.subr.bf16.mxu1 %v15747_v50  ;;  %v15789_v42 = vld [vmem:[#allocation2 + $0x15f0] sm:$0xff]   ;;  %v15797_v50 = vld [vmem:[#allocation2 + $0x15e0] sm:$0xff]  }
 0x2cd   :  { %v10437_v30 = vadd.f32 %v14033_v24, %v16691_v46  ;;  %v15742_v46 = vld [vmem:[%s17226_s0 + $0x134] ss:$528 sps:$4 sm:$0xff]   ;;  %14323 = vmatprep.subr.bf16.mxu0 %v15746_v49  ;;  %v15773_v24 = vld [vmem:[#allocation2 + $0x1488] sm:$0xff]  }
 0x2ce   :  { %v14035_v33 = vpop.f32.mrf.mxu0  ;;  %10926 = vmatprep.mubr.bf16.mxu0 %v15742_v46  ;;  %10968 = vmatmul.mubr.bf16.vlgmr.msra.gmra.mxu1 %v15743_v47  ;;  %v15793_v46 = vld [vmem:[#allocation2 + $0x15e8] sm:$0xff]   ;;  %v15796_v49 = vld [vmem:[#allocation2 + $0x1560] sm:$0xff]  }
 0x2cf   :  { %v16709_v35 = vadd.f32 %v14055_v27, %v10437_v30  ;;  %v14036_v36 = vadd.f32 %v14035_v33, %v14034_v28  ;;  %10927 = vmatmul.mubr.bf16.vlgmr.msra.gmra.mxu0 %v15740_v45  ;;  %14346 = vmatpush3.bf16.msra.mxu1 %v15749_v52  ;;  %v15776_v30 = vld [vmem:[#allocation2 + $0x1400] sm:$0xff]   ;;  %v15792_v45 = vld [vmem:[#allocation2 + $0x1568] sm:$0xff]  }
 0x2d0   :  { %14324 = vmatpush3.bf16.msra.mxu0 %v15748_v51  ;;  %14347 = vmatprep.subr.bf16.mxu1 %v15751_v54  ;;  %v15778_v33 = vld [vmem:[%s17226_s0 + $0x140] ss:$528 sps:$4 sm:$0xff]   ;;  %v15794_v47 = vld [vmem:[#allocation2 + $0x1528] sm:$0xff]   ;;  %v15801_v54 = vld [vmem:[#allocation2 + $0x15d8] sm:$0xff]  }
 0x2d1   :  { %v10440_v41 = vadd.f32 %v14036_v36, %v16694_v55  ;;  %14325 = vmatprep.subr.bf16.mxu0 %v15750_v53  ;;  %v15752_v55 = vld [vmem:[#allocation2 + $0x1430] sm:$0xff]   ;;  %11008 = vmatprep.mubr.bf16.mxu0 %v15780_v34  ;;  %v15783_v36 = vld [vmem:[%s17226_s0 + $0x14c] ss:$528 sps:$4 sm:$0xff]   ;;  %v15798_v51 = vld [vmem:[#allocation2 + $0x1520] sm:$0xff]  }
 0x2d2   :  { %11049 = vmatprep.mubr.bf16.mxu1 %v15783_v36  ;;  %v15799_v52 = vld [vmem:[#allocation2 + $0x15a0] sm:$0xff]   ;;  %v15800_v53 = vld [vmem:[#allocation2 + $0x1558] sm:$0xff]   ;;  %v15831_v34 = vld [vmem:[#allocation2 + $0x16e8] sm:$0xff]  }
 0x2d3   :  { %v16712_v44 = vadd.f32 %v14058_v39, %v10440_v41  ;;  %14348 = vmatpush3.bf16.msra.mxu1 %v15753_v56  ;;  %v15786_v39 = vld [vmem:[#allocation2 + $0x1538] sm:$0xff]   ;;  %v15788_v41 = vld [vmem:[#allocation2 + $0x1570] sm:$0xff]   ;;  %v15833_v36 = vld [vmem:[#allocation2 + $0x16a8] sm:$0xff]  }
 0x2d4   :  { %14326 = vmatpush3.bf16.msra.mxu0 %v15752_v55  ;;  %14349 = vmatprep.subr.bf16.mxu1 %v15755_v58  ;;  %v15802_v55 = vld [vmem:[#allocation2 + $0x1518] sm:$0xff]   ;;  %v15804_v58 = vld [vmem:[#allocation2 + $0x1550] sm:$0xff]  }
 0x2d5   :  { %14327 = vmatprep.subr.bf16.mxu0 %v15754_v57  ;;  %v15803_v56 = vld [vmem:[#allocation2 + $0x1598] sm:$0xff]  }
 0x2d7   :  { %14350 = vmatpush3.bf16.msra.mxu1 %v15757_v60  ;;  %v15805_v60 = vld [vmem:[#allocation2 + $0x15d0] sm:$0xff]  }
 0x2d8   :  { %14328 = vmatpush3.bf16.msra.mxu0 %v15756_v59  ;;  %14351 = vmatprep.subr.bf16.mxu1 %v15759_v62  ;;  %v15806_v62 = vld [vmem:[#allocation2 + $0x1510] sm:$0xff]  }
 0x2d9   :  { %14329 = vmatprep.subr.bf16.mxu0 %v15758_v61 }
 0x2db   :  { %14352 = vmatpush3.bf16.msra.mxu1 %v15761_v0 }
 0x2dc   :  { %14330 = vmatpush3.bf16.msra.mxu0 %v15760_v63  ;;  %14353 = vmatprep.subr.bf16.mxu1 %v15763_v2 }
 0x2dd   :  { %14331 = vmatprep.subr.bf16.mxu0 %v15762_v1  ;;  %v15807_v1 = vld [vmem:[#allocation2 + $0x1590] sm:$0xff]  }
 0x2df   :  { %14354 = vmatpush3.bf16.msra.mxu1 %v15765_v4  ;;  %v15808_v4 = vld [vmem:[#allocation2 + $0x1548] sm:$0xff]  }
 0x2e0   :  { %14332 = vmatpush3.bf16.msra.mxu0 %v15764_v3  ;;  %14355 = vmatprep.subr.bf16.mxu1 %v15767_v7  ;;  %v15809_v7 = vld [vmem:[#allocation2 + $0x15c8] sm:$0xff]  }
 0x2e1   :  { %14333 = vmatprep.subr.bf16.mxu0 %v15766_v6 }
 0x2e3   :  { %14356 = vmatpush3.bf16.msra.mxu1 %v15769_v12 }
 0x2e4   :  { %14334 = vmatpush3.bf16.msra.mxu0 %v15768_v10  ;;  %14357 = vmatprep.subr.bf16.mxu1 %v15771_v18  ;;  %v15814_v18 = vld [vmem:[#allocation2 + $0x1500] sm:$0xff]  }
 0x2e5   :  { %14335 = vmatprep.subr.bf16.mxu0 %v15770_v15  ;;  %v15812_v15 = vld [vmem:[#allocation2 + $0x1540] sm:$0xff]  }
 0x2e7   :  { %14358 = vmatpush3.bf16.msra.mxu1 %v15773_v24  ;;  %v15821_v24 = vld [vmem:[%s17226_s0 + $0x15c] ss:$528 sps:$4 sm:$0xff]  }
 0x2e8   :  { %v14075_v5 = vpop.f32.mrf.mxu0  ;;  %14336 = vmatpush3.bf16.msra.mxu0 %v15772_v21  ;;  %14359 = vmatprep.subr.bf16.mxu1 %v15775_v29  ;;  %v15816_v21 = vld [vmem:[%s17226_s0 + $0x150] ss:$528 sps:$4 sm:$0xff]  }
 0x2e9   :  { %14337 = vmatprep.subr.bf16.mxu0 %v15774_v26  ;;  %v15823_v26 = vld [vmem:[#allocation2 + $0x16f8] sm:$0xff]   ;;  %v15826_v29 = vld [vmem:[#allocation2 + $0x1670] sm:$0xff]  }
 0x2ea   :  { %v14076_v9 = vpop.f32.mrf.mxu0 }
 0x2eb   :  { %v14077_v11 = vadd.f32 %v14076_v9, %v14075_v5  ;;  %14360 = vmatpush3.bf16.msra.mxu1 %v15777_v32  ;;  %v15810_v9 = vld [vmem:[#allocation2 + $0x1508] sm:$0xff]   ;;  %v15829_v32 = vld [vmem:[#allocation2 + $0x16b0] sm:$0xff]  }
 0x2ec   :  { %v14078_v14 = vpop.f32.mrf.mxu0  ;;  %14338 = vmatpush3.bf16.msra.mxu0 %v15776_v30  ;;  %14389 = vmatprep.subr.bf16.mxu1 %v15785_v38  ;;  %v15827_v30 = vld [vmem:[#allocation2 + $0x16f0] sm:$0xff]   ;;  %v15835_v38 = vld [vmem:[#allocation2 + $0x16e0] sm:$0xff]  }
 0x2ed   :  { %v10519_v16 = vadd.f32 %v14077_v11, %v16709_v35  ;;  %v15781_v35 = vld [vmem:[%s17226_s0 + $0x148] ss:$528 sps:$4 sm:$0xff]   ;;  %14367 = vmatprep.subr.bf16.mxu0 %v15784_v37  ;;  %v15834_v37 = vld [vmem:[#allocation2 + $0x1660] sm:$0xff]  }
 0x2ee   :  { %v14097_v8 = vpop.f32.mrf.mxu1  ;;  %v14079_v20 = vpop.f32.mrf.mxu0  ;;  %11050 = vmatmul.mubr.bf16.vlgmr.msra.gmra.mxu1 %v15781_v35  ;;  %v15832_v35 = vld [vmem:[#allocation2 + $0x1628] sm:$0xff]  }
 0x2ef   :  { %v14080_v23 = vadd.f32 %v14079_v20, %v14078_v14  ;;  %11009 = vmatmul.mubr.bf16.vlgmr.msra.gmra.mxu0 %v15778_v33  ;;  %14390 = vmatpush3.bf16.msra.mxu1 %v15787_v40  ;;  %v15815_v20 = vld [vmem:[#allocation2 + $0x1580] sm:$0xff]   ;;  %v15830_v33 = vld [vmem:[#allocation2 + $0x1668] sm:$0xff]  }
 0x2f0   :  { %v14098_v13 = vpop.f32.mrf.mxu1  ;;  %14368 = vmatpush3.bf16.msra.mxu0 %v15786_v39  ;;  %14391 = vmatprep.subr.bf16.mxu1 %v15789_v42  ;;  %v15836_v39 = vld [vmem:[#allocation2 + $0x1620] sm:$0xff]   ;;  %v15839_v42 = vld [vmem:[#allocation2 + $0x16d8] sm:$0xff]  }
 0x2f1   :  { %v14099_v17 = vadd.f32 %v14098_v13, %v14097_v8  ;;  %v10522_v27 = vadd.f32 %v14080_v23, %v16712_v44  ;;  %14369 = vmatprep.subr.bf16.mxu0 %v15788_v41  ;;  %v15791_v44 = vld [vmem:[#allocation2 + $0x15b0] sm:$0xff]   ;;  %v15811_v13 = vld [vmem:[#allocation2 + $0x1588] sm:$0xff]   ;;  %11131 = vmatprep.mubr.bf16.mxu1 %v15821_v24  ;;  %v15837_v40 = vld [vmem:[#allocation2 + $0x16a0] sm:$0xff]  }
 0x2f2   :  { %v14100_v19 = vpop.f32.mrf.mxu1  ;;  %v15819_v23 = vld [vmem:[%s17226_s0 + $0x158] ss:$528 sps:$4 sm:$0xff]  }
 0x2f3   :  { %v16727_v22 = vadd.f32 %v14099_v17, %v10519_v16  ;;  %14392 = vmatpush3.bf16.msra.mxu1 %v15791_v44  ;;  %v15813_v17 = vld [vmem:[#allocation2 + $0x15c0] sm:$0xff]   ;;  %v15838_v41 = vld [vmem:[#allocation2 + $0x1658] sm:$0xff]   ;;  %v15871_v24 = vld [vmem:[#allocation2 + $0x17a8] sm:$0xff]  }
 0x2f4   :  { %v14101_v25 = vpop.f32.mrf.mxu1  ;;  %14370 = vmatpush3.bf16.msra.mxu0 %v15790_v43  ;;  %14393 = vmatprep.subr.bf16.mxu1 %v15793_v46  ;;  %v15840_v43 = vld [vmem:[#allocation2 + $0x1618] sm:$0xff]  }
 0x2f5   :  { %v14102_v28 = vadd.f32 %v14101_v25, %v14100_v19  ;;  %14371 = vmatprep.subr.bf16.mxu0 %v15792_v45  ;;  %v15822_v25 = vld [vmem:[#allocation2 + $0x1678] sm:$0xff]   ;;  %v15842_v45 = vld [vmem:[#allocation2 + $0x1650] sm:$0xff]  }
 0x2f6   :  { %v15841_v44 = vld [vmem:[#allocation2 + $0x1698] sm:$0xff]  }
 0x2f7   :  { %v16730_v31 = vadd.f32 %v14102_v28, %v10522_v27  ;;  %14394 = vmatpush3.bf16.msra.mxu1 %v15795_v48  ;;  %v15824_v27 = vld [vmem:[#allocation2 + $0x1638] sm:$0xff]  }
 0x2f8   :  { %14372 = vmatpush3.bf16.msra.mxu0 %v15794_v47  ;;  %14395 = vmatprep.subr.bf16.mxu1 %v15797_v50  ;;  %v15825_v28 = vld [vmem:[#allocation2 + $0x16b8] sm:$0xff]   ;;  %v15843_v47 = vld [vmem:[#allocation2 + $0x16d0] sm:$0xff]  }
 0x2f9   :  { %14373 = vmatprep.subr.bf16.mxu0 %v15796_v49  ;;  %v15844_v49 = vld [vmem:[#allocation2 + $0x1610] sm:$0xff]  }
 0x2fb   :  { %14396 = vmatpush3.bf16.msra.mxu1 %v15799_v52 }
 0x2fc   :  { %14374 = vmatpush3.bf16.msra.mxu0 %v15798_v51  ;;  %14397 = vmatprep.subr.bf16.mxu1 %v15801_v54  ;;  %v15845_v51 = vld [vmem:[#allocation2 + $0x1690] sm:$0xff]   ;;  %v15846_v54 = vld [vmem:[#allocation2 + $0x1648] sm:$0xff]  }
 0x2fd   :  { %14375 = vmatprep.subr.bf16.mxu0 %v15800_v53 }
 0x2ff   :  { %14398 = vmatpush3.bf16.msra.mxu1 %v15803_v56 }
 0x300   :  { %14376 = vmatpush3.bf16.msra.mxu0 %v15802_v55  ;;  %14399 = vmatprep.subr.bf16.mxu1 %v15805_v60  ;;  %v15848_v60 = vld [vmem:[#allocation2 + $0x1608] sm:$0xff]  }
 0x301   :  { %14377 = vmatprep.subr.bf16.mxu0 %v15804_v58 }
 0x303   :  { %14400 = vmatpush3.bf16.msra.mxu1 %v15807_v1 }
 0x304   :  { %14378 = vmatpush3.bf16.msra.mxu0 %v15806_v62  ;;  %14401 = vmatprep.subr.bf16.mxu1 %v15809_v7  ;;  %v15849_v62 = vld [vmem:[#allocation2 + $0x1688] sm:$0xff]   ;;  %v15853_v7 = vld [vmem:[#allocation2 + $0x1680] sm:$0xff]  }
 0x305   :  { %14379 = vmatprep.subr.bf16.mxu0 %v15808_v4  ;;  %v15851_v4 = vld [vmem:[#allocation2 + $0x16c0] sm:$0xff]  }
 0x307   :  { %14402 = vmatpush3.bf16.msra.mxu1 %v15811_v13  ;;  %v15860_v13 = vld [vmem:[#allocation2 + $0x1778] sm:$0xff]  }
 0x308   :  { %14380 = vmatpush3.bf16.msra.mxu0 %v15810_v9  ;;  %14403 = vmatprep.subr.bf16.mxu1 %v15813_v17  ;;  %v15854_v9 = vld [vmem:[%s17226_s0 + $0x160] ss:$528 sps:$4 sm:$0xff]  }
 0x309   :  { %14381 = vmatprep.subr.bf16.mxu0 %v15812_v15  ;;  %v15862_v15 = vld [vmem:[#allocation2 + $0x1738] sm:$0xff]   ;;  %v15864_v17 = vld [vmem:[#allocation2 + $0x1770] sm:$0xff]  }
 0x30b   :  { %14404 = vmatpush3.bf16.msra.mxu1 %v15815_v20  ;;  %v15867_v20 = vld [vmem:[#allocation2 + $0x17b0] sm:$0xff]  }
 0x30c   :  { %14382 = vmatpush3.bf16.msra.mxu0 %v15814_v18  ;;  %14433 = vmatprep.subr.bf16.mxu1 %v15823_v26  ;;  %v15865_v18 = vld [vmem:[#allocation2 + $0x17f0] sm:$0xff]   ;;  %v15873_v26 = vld [vmem:[#allocation2 + $0x17e0] sm:$0xff]  }
 0x30d   :  { %14411 = vmatprep.subr.bf16.mxu0 %v15822_v25  ;;  %v15872_v25 = vld [vmem:[#allocation2 + $0x1760] sm:$0xff]  }
 0x30e   :  { %v14141_v59 = vpop.f32.mrf.mxu1  ;;  %11132 = vmatmul.mubr.bf16.vlgmr.msra.gmra.mxu1 %v15819_v23  ;;  %v15870_v23 = vld [vmem:[#allocation2 + $0x1728] sm:$0xff]  }
 0x30f   :  { %v14119_v57 = vpop.f32.mrf.mxu0  ;;  %14434 = vmatpush3.bf16.msra.mxu1 %v15825_v28  ;;  %v15875_v28 = vld [vmem:[#allocation2 + $0x17a0] sm:$0xff]  }
 0x310   :  { %v14142_v0 = vpop.f32.mrf.mxu1  ;;  %14435 = vmatprep.subr.bf16.mxu1 %v15827_v30  ;;  %v15877_v30 = vld [vmem:[#allocation2 + $0x17d8] sm:$0xff]  }
 0x311   :  { %v14120_v61 = vpop.f32.mrf.mxu0  ;;  %v14143_v2 = vadd.f32 %v14142_v0, %v14141_v59 }
 0x312   :  { %v14121_v63 = vadd.f32 %v14120_v61, %v14119_v57  ;;  %v14144_v6 = vpop.f32.mrf.mxu1  ;;  %v15847_v57 = vld [vmem:[#allocation2 + $0x16c8] sm:$0xff]  }
 0x313   :  { %v14122_v3 = vpop.f32.mrf.mxu0  ;;  %14436 = vmatpush3.bf16.msra.mxu1 %v15829_v32  ;;  %v15879_v32 = vld [vmem:[#allocation2 + $0x1798] sm:$0xff]  }
 0x314   :  { %v10601_v5 = vadd.f32 %v14121_v63, %v16727_v22  ;;  %v14145_v12 = vpop.f32.mrf.mxu1  ;;  %v15818_v22 = vld [vmem:[%s17226_s0 + $0x154] ss:$528 sps:$4 sm:$0xff]   ;;  %14437 = vmatprep.subr.bf16.mxu1 %v15831_v34 }
 0x315   :  { %v14123_v8 = vpop.f32.mrf.mxu0  ;;  %v14146_v14 = vadd.f32 %v14145_v12, %v14144_v6  ;;  %11090 = vmatprep.mubr.bf16.mxu0 %v15818_v22  ;;  %v15852_v6 = vld [vmem:[#allocation2 + $0x1600] sm:$0xff]   ;;  %v15859_v12 = vld [vmem:[%s17226_s0 + $0x16c] ss:$528 sps:$4 sm:$0xff]   ;;  %v15881_v34 = vld [vmem:[#allocation2 + $0x17d0] sm:$0xff]  }
 0x316   :  { %v16745_v10 = vadd.f32 %v14143_v2, %v10601_v5  ;;  %v14124_v11 = vadd.f32 %v14123_v8, %v14122_v3  ;;  %11091 = vmatmul.mubr.bf16.vlgmr.msra.gmra.mxu0 %v15816_v21  ;;  %v15850_v2 = vld [vmem:[#allocation2 + $0x1640] sm:$0xff]   ;;  %11213 = vmatprep.mubr.bf16.mxu1 %v15859_v12  ;;  %v15868_v21 = vld [vmem:[#allocation2 + $0x1768] sm:$0xff]  }
 0x317   :  { %14412 = vmatpush3.bf16.msra.mxu0 %v15824_v27  ;;  %14438 = vmatpush3.bf16.msra.mxu1 %v15833_v36  ;;  %v15869_v22 = vld [vmem:[#allocation2 + $0x17e8] sm:$0xff]   ;;  %v15874_v27 = vld [vmem:[#allocation2 + $0x1720] sm:$0xff]   ;;  %v15883_v36 = vld [vmem:[#allocation2 + $0x1790] sm:$0xff]  }
 0x318   :  { %v10604_v16 = vadd.f32 %v14124_v11, %v16730_v31  ;;  %14413 = vmatprep.subr.bf16.mxu0 %v15826_v29  ;;  %v15828_v31 = vld [vmem:[#allocation2 + $0x1630] sm:$0xff]   ;;  %14439 = vmatprep.subr.bf16.mxu1 %v15835_v38  ;;  %v15857_v11 = vld [vmem:[%s17226_s0 + $0x168] ss:$528 sps:$4 sm:$0xff]  }
 0x319   :  { %v15876_v29 = vld [vmem:[#allocation2 + $0x1758] sm:$0xff]   ;;  %v15885_v38 = vld [vmem:[#allocation2 + $0x17c8] sm:$0xff]  }
 0x31a   :  { %v16748_v19 = vadd.f32 %v14146_v14, %v10604_v16  ;;  %v15861_v14 = vld [vmem:[#allocation2 + $0x17f8] sm:$0xff]   ;;  %v15923_v12 = vld [vmem:[#allocation2 + $0x18c8] sm:$0xff]  }
 0x31b   :  { %14414 = vmatpush3.bf16.msra.mxu0 %v15828_v31  ;;  %14440 = vmatpush3.bf16.msra.mxu1 %v15837_v40  ;;  %v15863_v16 = vld [vmem:[#allocation2 + $0x17b8] sm:$0xff]   ;;  %v15887_v40 = vld [vmem:[#allocation2 + $0x1788] sm:$0xff]  }
 0x31c   :  { %14415 = vmatprep.subr.bf16.mxu0 %v15830_v33  ;;  %14441 = vmatprep.subr.bf16.mxu1 %v15839_v42  ;;  %v15878_v31 = vld [vmem:[#allocation2 + $0x1718] sm:$0xff]   ;;  %v15880_v33 = vld [vmem:[#allocation2 + $0x1750] sm:$0xff]   ;;  %v15889_v42 = vld [vmem:[#allocation2 + $0x17c0] sm:$0xff]  }
 0x31f   :  { %14416 = vmatpush3.bf16.msra.mxu0 %v15832_v35  ;;  %14442 = vmatpush3.bf16.msra.mxu1 %v15841_v44  ;;  %v15882_v35 = vld [vmem:[#allocation2 + $0x1710] sm:$0xff]   ;;  %v15891_v44 = vld [vmem:[#allocation2 + $0x1780] sm:$0xff]  }
 0x320   :  { %14417 = vmatprep.subr.bf16.mxu0 %v15834_v37  ;;  %14443 = vmatprep.subr.bf16.mxu1 %v15843_v47  ;;  %v15884_v37 = vld [vmem:[#allocation2 + $0x1748] sm:$0xff]  }
 0x321   :  { %v15895_v47 = vld [vmem:[%s17226_s0 + $0x178] ss:$528 sps:$4 sm:$0xff]  }
 0x323   :  { %14418 = vmatpush3.bf16.msra.mxu0 %v15836_v39  ;;  %14444 = vmatpush3.bf16.msra.mxu1 %v15845_v51  ;;  %v15886_v39 = vld [vmem:[#allocation2 + $0x1708] sm:$0xff]   ;;  %v15900_v51 = vld [vmem:[#allocation2 + $0x1838] sm:$0xff]  }
 0x324   :  { %14419 = vmatprep.subr.bf16.mxu0 %v15838_v41  ;;  %14445 = vmatprep.subr.bf16.mxu1 %v15847_v57  ;;  %v15888_v41 = vld [vmem:[#allocation2 + $0x1740] sm:$0xff]   ;;  %v15906_v57 = vld [vmem:[#allocation2 + $0x1868] sm:$0xff]  }
 0x327   :  { %14420 = vmatpush3.bf16.msra.mxu0 %v15840_v43  ;;  %14446 = vmatpush3.bf16.msra.mxu1 %v15849_v62  ;;  %v15890_v43 = vld [vmem:[#allocation2 + $0x1700] sm:$0xff]  }
 0x328   :  { %14421 = vmatprep.subr.bf16.mxu0 %v15842_v45  ;;  %14447 = vmatprep.subr.bf16.mxu1 %v15851_v4  ;;  %v15892_v45 = vld [vmem:[%s17226_s0 + $0x170] ss:$528 sps:$4 sm:$0xff]   ;;  %v15916_v4 = vld [vmem:[#allocation2 + $0x1818] sm:$0xff]  }
 0x329   :  { %v15911_v62 = vld [vmem:[#allocation2 + $0x18e0] sm:$0xff]  }
 0x32b   :  { %14422 = vmatpush3.bf16.msra.mxu0 %v15844_v49  ;;  %14448 = vmatpush3.bf16.msra.mxu1 %v15853_v7  ;;  %v15898_v49 = vld [vmem:[#allocation2 + $0x1878] sm:$0xff]   ;;  %v15919_v7 = vld [vmem:[#allocation2 + $0x18d0] sm:$0xff]  }
 0x32c   :  { %14423 = vmatprep.subr.bf16.mxu0 %v15846_v54  ;;  %14477 = vmatprep.subr.bf16.mxu1 %v15861_v14  ;;  %v15903_v54 = vld [vmem:[#allocation2 + $0x18f0] sm:$0xff]   ;;  %v15925_v14 = vld [vmem:[#allocation2 + $0x1888] sm:$0xff]  }
 0x32e   :  { %v14185_v48 = vpop.f32.mrf.mxu1  ;;  %11214 = vmatmul.mubr.bf16.vlgmr.msra.gmra.mxu1 %v15857_v11  ;;  %v15922_v11 = vld [vmem:[#allocation2 + $0x1848] sm:$0xff]  }
 0x32f   :  { %v14163_v46 = vpop.f32.mrf.mxu0  ;;  %14424 = vmatpush3.bf16.msra.mxu0 %v15848_v60  ;;  %14478 = vmatpush3.bf16.msra.mxu1 %v15863_v16  ;;  %v15909_v60 = vld [vmem:[#allocation2 + $0x18a8] sm:$0xff]   ;;  %v15927_v16 = vld [vmem:[#allocation2 + $0x18c0] sm:$0xff]  }
 0x330   :  { %v14186_v53 = vpop.f32.mrf.mxu1  ;;  %14425 = vmatprep.subr.bf16.mxu0 %v15850_v2  ;;  %14479 = vmatprep.subr.bf16.mxu1 %v15865_v18  ;;  %v15914_v2 = vld [vmem:[#allocation2 + $0x1858] sm:$0xff]   ;;  %v15929_v18 = vld [vmem:[#allocation2 + $0x1880] sm:$0xff]  }
 0x331   :  { %v14164_v50 = vpop.f32.mrf.mxu0  ;;  %v14187_v55 = vadd.f32 %v14186_v53, %v14185_v48  ;;  %v15897_v48 = vld [vmem:[%s17226_s0 + $0x17c] ss:$528 sps:$4 sm:$0xff]   ;;  %v15902_v53 = vld [vmem:[#allocation2 + $0x1870] sm:$0xff]  }
 0x332   :  { %v14165_v52 = vadd.f32 %v14164_v50, %v14163_v46  ;;  %v14188_v59 = vpop.f32.mrf.mxu1  ;;  %v15894_v46 = vld [vmem:[%s17226_s0 + $0x174] ss:$528 sps:$4 sm:$0xff]   ;;  %11295 = vmatprep.mubr.bf16.mxu1 %v15897_v48  ;;  %v15899_v50 = vld [vmem:[#allocation2 + $0x18f8] sm:$0xff]   ;;  %v15961_v48 = vld [vmem:[#allocation2 + $0x19c8] sm:$0xff]  }
 0x333   :  { %v14166_v56 = vpop.f32.mrf.mxu0  ;;  %14426 = vmatpush3.bf16.msra.mxu0 %v15852_v6  ;;  %14480 = vmatpush3.bf16.msra.mxu1 %v15867_v20  ;;  %v15918_v6 = vld [vmem:[#allocation2 + $0x1850] sm:$0xff]  }
 0x334   :  { %v10683_v58 = vadd.f32 %v14165_v52, %v16745_v10  ;;  %v14189_v1 = vpop.f32.mrf.mxu1  ;;  %v15856_v10 = vld [vmem:[%s17226_s0 + $0x164] ss:$528 sps:$4 sm:$0xff]   ;;  %14455 = vmatprep.subr.bf16.mxu0 %v15860_v13  ;;  %14481 = vmatprep.subr.bf16.mxu1 %v15869_v22  ;;  %v15901_v52 = vld [vmem:[#allocation2 + $0x18b8] sm:$0xff]   ;;  %v15924_v13 = vld [vmem:[#allocation2 + $0x1808] sm:$0xff]  }
 0x335   :  { %v14167_v61 = vpop.f32.mrf.mxu0  ;;  %v14190_v3 = vadd.f32 %v14189_v1, %v14188_v59  ;;  %11172 = vmatprep.mubr.bf16.mxu0 %v15856_v10  ;;  %v15908_v59 = vld [vmem:[#allocation2 + $0x1828] sm:$0xff]   ;;  %v15913_v1 = vld [vmem:[#allocation2 + $0x18a0] sm:$0xff]   ;;  %v15921_v10 = vld [vmem:[#allocation2 + $0x1890] sm:$0xff]  }
 0x336   :  { %v16763_v63 = vadd.f32 %v14187_v55, %v10683_v58  ;;  %v14168_v0 = vadd.f32 %v14167_v61, %v14166_v56  ;;  %11173 = vmatmul.mubr.bf16.vlgmr.msra.gmra.mxu0 %v15854_v9  ;;  %v15904_v55 = vld [vmem:[#allocation2 + $0x1830] sm:$0xff]   ;;  %v15907_v58 = vld [vmem:[#allocation2 + $0x18e8] sm:$0xff]   ;;  %v15910_v61 = vld [vmem:[#allocation2 + $0x1860] sm:$0xff]  }
 0x337   :  { %14456 = vmatpush3.bf16.msra.mxu0 %v15862_v15  ;;  %14482 = vmatpush3.bf16.msra.mxu1 %v15871_v24  ;;  %v15905_v56 = vld [vmem:[#allocation2 + $0x18b0] sm:$0xff]   ;;  %v15926_v15 = vld [vmem:[#allocation2 + $0x1840] sm:$0xff]   ;;  %v15935_v22 = vld [vmem:[%s17226_s0 + $0x18c] ss:$528 sps:$4 sm:$0xff]  }
 0x338   :  { %v10686_v5 = vadd.f32 %v14168_v0, %v16748_v19  ;;  %14457 = vmatprep.subr.bf16.mxu0 %v15864_v17  ;;  %v15866_v19 = vld [vmem:[#allocation2 + $0x1730] sm:$0xff]   ;;  %14483 = vmatprep.subr.bf16.mxu1 %v15873_v26  ;;  %v15912_v0 = vld [vmem:[#allocation2 + $0x1820] sm:$0xff]   ;;  %v15937_v24 = vld [vmem:[#allocation2 + $0x19f8] sm:$0xff]  }
 0x339   :  { %11254 = vmatprep.mubr.bf16.mxu0 %v15894_v46  ;;  %v15920_v9 = vld [vmem:[#allocation2 + $0x1810] sm:$0xff]   ;;  %v15928_v17 = vld [vmem:[#allocation2 + $0x1800] sm:$0xff]   ;;  %v15939_v26 = vld [vmem:[#allocation2 + $0x19b8] sm:$0xff]  }
 0x33a   :  { %v16766_v8 = vadd.f32 %v14190_v3, %v10686_v5  ;;  %v15915_v3 = vld [vmem:[#allocation2 + $0x18d8] sm:$0xff]   ;;  %v15932_v20 = vld [vmem:[%s17226_s0 + $0x184] ss:$528 sps:$4 sm:$0xff]  }
 0x33b   :  { %14458 = vmatpush3.bf16.msra.mxu0 %v15866_v19  ;;  %14484 = vmatpush3.bf16.msra.mxu1 %v15875_v28  ;;  %v15917_v5 = vld [vmem:[#allocation2 + $0x1898] sm:$0xff]   ;;  %v15930_v19 = vld [vmem:[%s17226_s0 + $0x180] ss:$528 sps:$4 sm:$0xff]  }
 0x33c   :  { %14459 = vmatprep.subr.bf16.mxu0 %v15868_v21  ;;  %14485 = vmatprep.subr.bf16.mxu1 %v15877_v30  ;;  %v15933_v21 = vld [vmem:[%s17226_s0 + $0x188] ss:$528 sps:$4 sm:$0xff]   ;;  %v15941_v28 = vld [vmem:[#allocation2 + $0x19f0] sm:$0xff]  }
 0x33d   :  { %v15943_v30 = vld [vmem:[#allocation2 + $0x19b0] sm:$0xff]  }
 0x33e   :  { %v15959_v46 = vld [vmem:[#allocation2 + $0x1990] sm:$0xff]  }
 0x33f   :  { %14460 = vmatpush3.bf16.msra.mxu0 %v15870_v23  ;;  %14486 = vmatpush3.bf16.msra.mxu1 %v15879_v32  ;;  %v15936_v23 = vld [vmem:[#allocation2 + $0x1978] sm:$0xff]   ;;  %v15945_v32 = vld [vmem:[#allocation2 + $0x19e8] sm:$0xff]  }
 0x340   :  { %14461 = vmatprep.subr.bf16.mxu0 %v15872_v25  ;;  %14487 = vmatprep.subr.bf16.mxu1 %v15881_v34  ;;  %v15938_v25 = vld [vmem:[#allocation2 + $0x1938] sm:$0xff]   ;;  %v15947_v34 = vld [vmem:[#allocation2 + $0x19a8] sm:$0xff]  }
 0x343   :  { %14462 = vmatpush3.bf16.msra.mxu0 %v15874_v27  ;;  %14488 = vmatpush3.bf16.msra.mxu1 %v15883_v36  ;;  %v15940_v27 = vld [vmem:[#allocation2 + $0x1970] sm:$0xff]   ;;  %v15949_v36 = vld [vmem:[#allocation2 + $0x19e0] sm:$0xff]  }
 0x344   :  { %14463 = vmatprep.subr.bf16.mxu0 %v15876_v29  ;;  %14489 = vmatprep.subr.bf16.mxu1 %v15885_v38  ;;  %v15942_v29 = vld [vmem:[#allocation2 + $0x1930] sm:$0xff]   ;;  %v15951_v38 = vld [vmem:[#allocation2 + $0x19a0] sm:$0xff]  }
 0x347   :  { %14464 = vmatpush3.bf16.msra.mxu0 %v15878_v31  ;;  %14490 = vmatpush3.bf16.msra.mxu1 %v15887_v40  ;;  %v15944_v31 = vld [vmem:[#allocation2 + $0x1968] sm:$0xff]   ;;  %v15953_v40 = vld [vmem:[#allocation2 + $0x19d8] sm:$0xff]  }
 0x348   :  { %14465 = vmatprep.subr.bf16.mxu0 %v15880_v33  ;;  %14491 = vmatprep.subr.bf16.mxu1 %v15889_v42  ;;  %v15946_v33 = vld [vmem:[#allocation2 + $0x1928] sm:$0xff]   ;;  %v15955_v42 = vld [vmem:[#allocation2 + $0x1998] sm:$0xff]  }
 0x34b   :  { %14466 = vmatpush3.bf16.msra.mxu0 %v15882_v35  ;;  %14492 = vmatpush3.bf16.msra.mxu1 %v15891_v44  ;;  %v15948_v35 = vld [vmem:[#allocation2 + $0x1960] sm:$0xff]   ;;  %v15957_v44 = vld [vmem:[#allocation2 + $0x19d0] sm:$0xff]  }
 0x34c   :  { %14467 = vmatprep.subr.bf16.mxu0 %v15884_v37  ;;  %14521 = vmatprep.subr.bf16.mxu1 %v15899_v50  ;;  %v15950_v37 = vld [vmem:[#allocation2 + $0x1920] sm:$0xff]   ;;  %v15963_v50 = vld [vmem:[#allocation2 + $0x1988] sm:$0xff]  }
 0x34e   :  { %11296 = vmatmul.mubr.bf16.vlgmr.msra.gmra.mxu1 %v15895_v47  ;;  %v15960_v47 = vld [vmem:[#allocation2 + $0x1948] sm:$0xff]  }
 0x34f   :  { %14468 = vmatpush3.bf16.msra.mxu0 %v15886_v39  ;;  %14522 = vmatpush3.bf16.msra.mxu1 %v15901_v52  ;;  %v15952_v39 = vld [vmem:[#allocation2 + $0x1958] sm:$0xff]   ;;  %v15965_v52 = vld [vmem:[#allocation2 + $0x19c0] sm:$0xff]  }
 0x350   :  { %14469 = vmatprep.subr.bf16.mxu0 %v15888_v41  ;;  %14523 = vmatprep.subr.bf16.mxu1 %v15903_v54  ;;  %v15954_v41 = vld [vmem:[#allocation2 + $0x1918] sm:$0xff]   ;;  %v15967_v54 = vld [vmem:[#allocation2 + $0x1980] sm:$0xff]  }
 0x351   :  { %11377 = vmatprep.mubr.bf16.mxu1 %v15935_v22  ;;  %v15999_v22 = vld [vmem:[#allocation2 + $0x1ac8] sm:$0xff]  }
 0x353   :  { %14470 = vmatpush3.bf16.msra.mxu0 %v15890_v43  ;;  %14524 = vmatpush3.bf16.msra.mxu1 %v15905_v56  ;;  %v15956_v43 = vld [vmem:[#allocation2 + $0x1950] sm:$0xff]  }
 0x354   :  { %14499 = vmatprep.subr.bf16.mxu0 %v15898_v49  ;;  %14525 = vmatprep.subr.bf16.mxu1 %v15907_v58  ;;  %v15962_v49 = vld [vmem:[#allocation2 + $0x1908] sm:$0xff]   ;;  %v15970_v56 = vld [vmem:[%s17226_s0 + $0x194] ss:$528 sps:$4 sm:$0xff]  }
 0x355   :  { %v15973_v58 = vld [vmem:[%s17226_s0 + $0x19c] ss:$528 sps:$4 sm:$0xff]  }
 0x356   :  { %11255 = vmatmul.mubr.bf16.vlgmr.msra.gmra.mxu0 %v15892_v45  ;;  %v15958_v45 = vld [vmem:[#allocation2 + $0x1910] sm:$0xff]  }
 0x357   :  { %14500 = vmatpush3.bf16.msra.mxu0 %v15900_v51  ;;  %14526 = vmatpush3.bf16.msra.mxu1 %v15909_v60  ;;  %v15964_v51 = vld [vmem:[#allocation2 + $0x1940] sm:$0xff]   ;;  %v15975_v60 = vld [vmem:[#allocation2 + $0x1af8] sm:$0xff]  }
 0x358   :  { %14501 = vmatprep.subr.bf16.mxu0 %v15902_v53  ;;  %14527 = vmatprep.subr.bf16.mxu1 %v15911_v62  ;;  %v15966_v53 = vld [vmem:[#allocation2 + $0x1900] sm:$0xff]   ;;  %v15977_v62 = vld [vmem:[#allocation2 + $0x1ab8] sm:$0xff]  }
 0x359   :  { %11336 = vmatprep.mubr.bf16.mxu0 %v15932_v20  ;;  %v15997_v20 = vld [vmem:[#allocation2 + $0x1a90] sm:$0xff]  }
 0x35b   :  { %14502 = vmatpush3.bf16.msra.mxu0 %v15904_v55  ;;  %14528 = vmatpush3.bf16.msra.mxu1 %v15913_v1  ;;  %v15968_v55 = vld [vmem:[%s17226_s0 + $0x190] ss:$528 sps:$4 sm:$0xff]  }
 0x35c   :  { %14503 = vmatprep.subr.bf16.mxu0 %v15906_v57  ;;  %14529 = vmatprep.subr.bf16.mxu1 %v15915_v3  ;;  %v15971_v57 = vld [vmem:[%s17226_s0 + $0x198] ss:$528 sps:$4 sm:$0xff]   ;;  %v15979_v1 = vld [vmem:[#allocation2 + $0x1af0] sm:$0xff]  }
 0x35d   :  { %v15981_v3 = vld [vmem:[#allocation2 + $0x1ab0] sm:$0xff]  }
 0x35f   :  { %14504 = vmatpush3.bf16.msra.mxu0 %v15908_v59  ;;  %14530 = vmatpush3.bf16.msra.mxu1 %v15917_v5  ;;  %v15974_v59 = vld [vmem:[#allocation2 + $0x1a78] sm:$0xff]   ;;  %v15983_v5 = vld [vmem:[#allocation2 + $0x1ae8] sm:$0xff]  }
 0x360   :  { %14505 = vmatprep.subr.bf16.mxu0 %v15910_v61  ;;  %14531 = vmatprep.subr.bf16.mxu1 %v15919_v7  ;;  %v15976_v61 = vld [vmem:[#allocation2 + $0x1a38] sm:$0xff]   ;;  %v15985_v7 = vld [vmem:[#allocation2 + $0x1aa8] sm:$0xff]  }
 0x363   :  { %14506 = vmatpush3.bf16.msra.mxu0 %v15912_v0  ;;  %14532 = vmatpush3.bf16.msra.mxu1 %v15921_v10  ;;  %v15978_v0 = vld [vmem:[#allocation2 + $0x1a70] sm:$0xff]   ;;  %v15987_v10 = vld [vmem:[#allocation2 + $0x1ae0] sm:$0xff]  }
 0x364   :  { %14507 = vmatprep.subr.bf16.mxu0 %v15914_v2  ;;  %14533 = vmatprep.subr.bf16.mxu1 %v15923_v12  ;;  %v15980_v2 = vld [vmem:[#allocation2 + $0x1a30] sm:$0xff]   ;;  %v15989_v12 = vld [vmem:[#allocation2 + $0x1aa0] sm:$0xff]  }
 0x367   :  { %14508 = vmatpush3.bf16.msra.mxu0 %v15916_v4  ;;  %14534 = vmatpush3.bf16.msra.mxu1 %v15925_v14  ;;  %v15982_v4 = vld [vmem:[#allocation2 + $0x1a68] sm:$0xff]   ;;  %v15991_v14 = vld [vmem:[#allocation2 + $0x1ad8] sm:$0xff]  }
 0x368   :  { %14509 = vmatprep.subr.bf16.mxu0 %v15918_v6  ;;  %14535 = vmatprep.subr.bf16.mxu1 %v15927_v16  ;;  %v15984_v6 = vld [vmem:[#allocation2 + $0x1a28] sm:$0xff]   ;;  %v15993_v16 = vld [vmem:[#allocation2 + $0x1a98] sm:$0xff]  }
 0x36b   :  { %14510 = vmatpush3.bf16.msra.mxu0 %v15920_v9  ;;  %14536 = vmatpush3.bf16.msra.mxu1 %v15929_v18  ;;  %v15986_v9 = vld [vmem:[#allocation2 + $0x1a60] sm:$0xff]   ;;  %v15995_v18 = vld [vmem:[#allocation2 + $0x1ad0] sm:$0xff]  }
 0x36c   :  { %14511 = vmatprep.subr.bf16.mxu0 %v15922_v11  ;;  %14565 = vmatprep.subr.bf16.mxu1 %v15937_v24  ;;  %v15988_v11 = vld [vmem:[#allocation2 + $0x1a20] sm:$0xff]   ;;  %v16001_v24 = vld [vmem:[#allocation2 + $0x1a88] sm:$0xff]  }
 0x36e   :  { %11378 = vmatmul.mubr.bf16.vlgmr.msra.gmra.mxu1 %v15933_v21  ;;  %v15998_v21 = vld [vmem:[#allocation2 + $0x1a48] sm:$0xff]  }
 0x36f   :  { %14512 = vmatpush3.bf16.msra.mxu0 %v15924_v13  ;;  %14566 = vmatpush3.bf16.msra.mxu1 %v15939_v26  ;;  %v15990_v13 = vld [vmem:[#allocation2 + $0x1a58] sm:$0xff]   ;;  %v16003_v26 = vld [vmem:[#allocation2 + $0x1ac0] sm:$0xff]  }
 0x370   :  { %14513 = vmatprep.subr.bf16.mxu0 %v15926_v15  ;;  %14567 = vmatprep.subr.bf16.mxu1 %v15941_v28  ;;  %v15992_v15 = vld [vmem:[#allocation2 + $0x1a18] sm:$0xff]   ;;  %v16005_v28 = vld [vmem:[#allocation2 + $0x1a80] sm:$0xff]  }
 0x371   :  { %11459 = vmatprep.mubr.bf16.mxu1 %v15973_v58  ;;  %v16037_v58 = vld [vmem:[#allocation2 + $0x1bc8] sm:$0xff]  }
 0x373   :  { %14514 = vmatpush3.bf16.msra.mxu0 %v15928_v17  ;;  %14568 = vmatpush3.bf16.msra.mxu1 %v15943_v30  ;;  %v15994_v17 = vld [vmem:[#allocation2 + $0x1a50] sm:$0xff]  }
 0x374   :  { %14543 = vmatprep.subr.bf16.mxu0 %v15936_v23  ;;  %14569 = vmatprep.subr.bf16.mxu1 %v15945_v32  ;;  %v16000_v23 = vld [vmem:[#allocation2 + $0x1a08] sm:$0xff]   ;;  %v16008_v30 = vld [vmem:[%s17226_s0 + $0x1a4] ss:$528 sps:$4 sm:$0xff]  }
 0x375   :  { %v16011_v32 = vld [vmem:[%s17226_s0 + $0x1ac] ss:$528 sps:$4 sm:$0xff]  }
 0x376   :  { %11337 = vmatmul.mubr.bf16.vlgmr.msra.gmra.mxu0 %v15930_v19  ;;  %v15996_v19 = vld [vmem:[#allocation2 + $0x1a10] sm:$0xff]  }
 0x377   :  { %14544 = vmatpush3.bf16.msra.mxu0 %v15938_v25  ;;  %14570 = vmatpush3.bf16.msra.mxu1 %v15947_v34  ;;  %v16002_v25 = vld [vmem:[#allocation2 + $0x1a40] sm:$0xff]   ;;  %v16013_v34 = vld [vmem:[#allocation2 + $0x1bf8] sm:$0xff]  }
 0x378   :  { %14545 = vmatprep.subr.bf16.mxu0 %v15940_v27  ;;  %14571 = vmatprep.subr.bf16.mxu1 %v15949_v36  ;;  %v16004_v27 = vld [vmem:[#allocation2 + $0x1a00] sm:$0xff]   ;;  %v16015_v36 = vld [vmem:[#allocation2 + $0x1bb8] sm:$0xff]  }
 0x379   :  { %11418 = vmatprep.mubr.bf16.mxu0 %v15970_v56  ;;  %v16035_v56 = vld [vmem:[#allocation2 + $0x1b90] sm:$0xff]  }
 0x37b   :  { %14546 = vmatpush3.bf16.msra.mxu0 %v15942_v29  ;;  %14572 = vmatpush3.bf16.msra.mxu1 %v15951_v38  ;;  %v16006_v29 = vld [vmem:[%s17226_s0 + $0x1a0] ss:$528 sps:$4 sm:$0xff]  }
 0x37c   :  { %14547 = vmatprep.subr.bf16.mxu0 %v15944_v31  ;;  %14573 = vmatprep.subr.bf16.mxu1 %v15953_v40  ;;  %v16009_v31 = vld [vmem:[%s17226_s0 + $0x1a8] ss:$528 sps:$4 sm:$0xff]   ;;  %v16017_v38 = vld [vmem:[#allocation2 + $0x1bf0] sm:$0xff]  }
 0x37d   :  { %v16019_v40 = vld [vmem:[#allocation2 + $0x1bb0] sm:$0xff]  }
 0x37f   :  { %14548 = vmatpush3.bf16.msra.mxu0 %v15946_v33  ;;  %14574 = vmatpush3.bf16.msra.mxu1 %v15955_v42  ;;  %v16012_v33 = vld [vmem:[#allocation2 + $0x1b78] sm:$0xff]   ;;  %v16021_v42 = vld [vmem:[#allocation2 + $0x1be8] sm:$0xff]  }
 0x380   :  { %14549 = vmatprep.subr.bf16.mxu0 %v15948_v35  ;;  %14575 = vmatprep.subr.bf16.mxu1 %v15957_v44  ;;  %v16014_v35 = vld [vmem:[#allocation2 + $0x1b38] sm:$0xff]   ;;  %v16023_v44 = vld [vmem:[#allocation2 + $0x1ba8] sm:$0xff]  }
 0x383   :  { %14550 = vmatpush3.bf16.msra.mxu0 %v15950_v37  ;;  %14576 = vmatpush3.bf16.msra.mxu1 %v15959_v46  ;;  %v16016_v37 = vld [vmem:[#allocation2 + $0x1b70] sm:$0xff]   ;;  %v16025_v46 = vld [vmem:[#allocation2 + $0x1be0] sm:$0xff]  }
 0x384   :  { %14551 = vmatprep.subr.bf16.mxu0 %v15952_v39  ;;  %14577 = vmatprep.subr.bf16.mxu1 %v15961_v48  ;;  %v16018_v39 = vld [vmem:[#allocation2 + $0x1b30] sm:$0xff]   ;;  %v16027_v48 = vld [vmem:[#allocation2 + $0x1ba0] sm:$0xff]  }
 0x387   :  { %14552 = vmatpush3.bf16.msra.mxu0 %v15954_v41  ;;  %14578 = vmatpush3.bf16.msra.mxu1 %v15963_v50  ;;  %v16020_v41 = vld [vmem:[#allocation2 + $0x1b68] sm:$0xff]   ;;  %v16029_v50 = vld [vmem:[#allocation2 + $0x1bd8] sm:$0xff]  }
 0x388   :  { %14553 = vmatprep.subr.bf16.mxu0 %v15956_v43  ;;  %14579 = vmatprep.subr.bf16.mxu1 %v15965_v52  ;;  %v16022_v43 = vld [vmem:[#allocation2 + $0x1b28] sm:$0xff]   ;;  %v16031_v52 = vld [vmem:[#allocation2 + $0x1b98] sm:$0xff]  }
 0x38b   :  { %14554 = vmatpush3.bf16.msra.mxu0 %v15958_v45  ;;  %14580 = vmatpush3.bf16.msra.mxu1 %v15967_v54  ;;  %v16024_v45 = vld [vmem:[#allocation2 + $0x1b60] sm:$0xff]   ;;  %v16033_v54 = vld [vmem:[#allocation2 + $0x1bd0] sm:$0xff]  }
 0x38c   :  { %14555 = vmatprep.subr.bf16.mxu0 %v15960_v47  ;;  %14609 = vmatprep.subr.bf16.mxu1 %v15975_v60  ;;  %v16026_v47 = vld [vmem:[#allocation2 + $0x1b20] sm:$0xff]   ;;  %v16039_v60 = vld [vmem:[#allocation2 + $0x1b88] sm:$0xff]  }
 0x38e   :  { %11460 = vmatmul.mubr.bf16.vlgmr.msra.gmra.mxu1 %v15971_v57  ;;  %v16036_v57 = vld [vmem:[#allocation2 + $0x1b48] sm:$0xff]  }
 0x38f   :  { %14556 = vmatpush3.bf16.msra.mxu0 %v15962_v49  ;;  %14610 = vmatpush3.bf16.msra.mxu1 %v15977_v62  ;;  %v16028_v49 = vld [vmem:[#allocation2 + $0x1b58] sm:$0xff]   ;;  %v16041_v62 = vld [vmem:[#allocation2 + $0x1bc0] sm:$0xff]  }
 0x390   :  { %14557 = vmatprep.subr.bf16.mxu0 %v15964_v51  ;;  %14611 = vmatprep.subr.bf16.mxu1 %v15979_v1  ;;  %v16030_v51 = vld [vmem:[#allocation2 + $0x1b18] sm:$0xff]   ;;  %v16043_v1 = vld [vmem:[#allocation2 + $0x1b80] sm:$0xff]  }
 0x391   :  { %11541 = vmatprep.mubr.bf16.mxu1 %v16011_v32  ;;  %v16075_v32 = vld [vmem:[#allocation2 + $0x1cc8] sm:$0xff]  }
 0x393   :  { %14558 = vmatpush3.bf16.msra.mxu0 %v15966_v53  ;;  %14612 = vmatpush3.bf16.msra.mxu1 %v15981_v3  ;;  %v16032_v53 = vld [vmem:[#allocation2 + $0x1b50] sm:$0xff]  }
 0x394   :  { %14587 = vmatprep.subr.bf16.mxu0 %v15974_v59  ;;  %14613 = vmatprep.subr.bf16.mxu1 %v15983_v5  ;;  %v16038_v59 = vld [vmem:[#allocation2 + $0x1b08] sm:$0xff]   ;;  %v16046_v3 = vld [vmem:[%s17226_s0 + $0x1b4] ss:$528 sps:$4 sm:$0xff]  }
 0x395   :  { %v16049_v5 = vld [vmem:[%s17226_s0 + $0x1bc] ss:$528 sps:$4 sm:$0xff]  }
 0x396   :  { %11419 = vmatmul.mubr.bf16.vlgmr.msra.gmra.mxu0 %v15968_v55  ;;  %v16034_v55 = vld [vmem:[#allocation2 + $0x1b10] sm:$0xff]  }
 0x397   :  { %14588 = vmatpush3.bf16.msra.mxu0 %v15976_v61  ;;  %14614 = vmatpush3.bf16.msra.mxu1 %v15985_v7  ;;  %v16040_v61 = vld [vmem:[#allocation2 + $0x1b40] sm:$0xff]   ;;  %v16051_v7 = vld [vmem:[#allocation2 + $0x1cf8] sm:$0xff]  }
 0x398   :  { %14589 = vmatprep.subr.bf16.mxu0 %v15978_v0  ;;  %14615 = vmatprep.subr.bf16.mxu1 %v15987_v10  ;;  %v16042_v0 = vld [vmem:[#allocation2 + $0x1b00] sm:$0xff]   ;;  %v16053_v10 = vld [vmem:[#allocation2 + $0x1cb8] sm:$0xff]  }
 0x399   :  { %11500 = vmatprep.mubr.bf16.mxu0 %v16008_v30  ;;  %v16073_v30 = vld [vmem:[#allocation2 + $0x1c90] sm:$0xff]  }
 0x39b   :  { %14590 = vmatpush3.bf16.msra.mxu0 %v15980_v2  ;;  %14616 = vmatpush3.bf16.msra.mxu1 %v15989_v12  ;;  %v16044_v2 = vld [vmem:[%s17226_s0 + $0x1b0] ss:$528 sps:$4 sm:$0xff]  }
 0x39c   :  { %14591 = vmatprep.subr.bf16.mxu0 %v15982_v4  ;;  %14617 = vmatprep.subr.bf16.mxu1 %v15991_v14  ;;  %v16047_v4 = vld [vmem:[%s17226_s0 + $0x1b8] ss:$528 sps:$4 sm:$0xff]   ;;  %v16055_v12 = vld [vmem:[#allocation2 + $0x1cf0] sm:$0xff]  }
 0x39d   :  { %v16057_v14 = vld [vmem:[#allocation2 + $0x1cb0] sm:$0xff]  }
 0x39f   :  { %14592 = vmatpush3.bf16.msra.mxu0 %v15984_v6  ;;  %14618 = vmatpush3.bf16.msra.mxu1 %v15993_v16  ;;  %v16050_v6 = vld [vmem:[#allocation2 + $0x1c78] sm:$0xff]   ;;  %v16059_v16 = vld [vmem:[#allocation2 + $0x1ce8] sm:$0xff]  }
 0x3a0   :  { %14593 = vmatprep.subr.bf16.mxu0 %v15986_v9  ;;  %14619 = vmatprep.subr.bf16.mxu1 %v15995_v18  ;;  %v16052_v9 = vld [vmem:[#allocation2 + $0x1c38] sm:$0xff]   ;;  %v16061_v18 = vld [vmem:[#allocation2 + $0x1ca8] sm:$0xff]  }
 0x3a3   :  { %14594 = vmatpush3.bf16.msra.mxu0 %v15988_v11  ;;  %14620 = vmatpush3.bf16.msra.mxu1 %v15997_v20  ;;  %v16054_v11 = vld [vmem:[#allocation2 + $0x1c70] sm:$0xff]   ;;  %v16063_v20 = vld [vmem:[#allocation2 + $0x1ce0] sm:$0xff]  }
 0x3a4   :  { %14595 = vmatprep.subr.bf16.mxu0 %v15990_v13  ;;  %14621 = vmatprep.subr.bf16.mxu1 %v15999_v22  ;;  %v16056_v13 = vld [vmem:[#allocation2 + $0x1c30] sm:$0xff]   ;;  %v16065_v22 = vld [vmem:[#allocation2 + $0x1ca0] sm:$0xff]  }
 0x3a7   :  { %14596 = vmatpush3.bf16.msra.mxu0 %v15992_v15  ;;  %14622 = vmatpush3.bf16.msra.mxu1 %v16001_v24  ;;  %v16058_v15 = vld [vmem:[#allocation2 + $0x1c68] sm:$0xff]   ;;  %v16067_v24 = vld [vmem:[#allocation2 + $0x1cd8] sm:$0xff]  }
 0x3a8   :  { %14597 = vmatprep.subr.bf16.mxu0 %v15994_v17  ;;  %14623 = vmatprep.subr.bf16.mxu1 %v16003_v26  ;;  %v16060_v17 = vld [vmem:[#allocation2 + $0x1c28] sm:$0xff]   ;;  %v16069_v26 = vld [vmem:[#allocation2 + $0x1c98] sm:$0xff]  }
 0x3ab   :  { %14598 = vmatpush3.bf16.msra.mxu0 %v15996_v19  ;;  %14624 = vmatpush3.bf16.msra.mxu1 %v16005_v28  ;;  %v16062_v19 = vld [vmem:[#allocation2 + $0x1c60] sm:$0xff]   ;;  %v16071_v28 = vld [vmem:[#allocation2 + $0x1cd0] sm:$0xff]  }
 0x3ac   :  { %14599 = vmatprep.subr.bf16.mxu0 %v15998_v21  ;;  %14653 = vmatprep.subr.bf16.mxu1 %v16013_v34  ;;  %v16064_v21 = vld [vmem:[#allocation2 + $0x1c20] sm:$0xff]   ;;  %v16077_v34 = vld [vmem:[#allocation2 + $0x1c88] sm:$0xff]  }
 0x3ae   :  { %11542 = vmatmul.mubr.bf16.vlgmr.msra.gmra.mxu1 %v16009_v31  ;;  %v16074_v31 = vld [vmem:[#allocation2 + $0x1c48] sm:$0xff]  }
 0x3af   :  { %14600 = vmatpush3.bf16.msra.mxu0 %v16000_v23  ;;  %14654 = vmatpush3.bf16.msra.mxu1 %v16015_v36  ;;  %v16066_v23 = vld [vmem:[#allocation2 + $0x1c58] sm:$0xff]   ;;  %v16079_v36 = vld [vmem:[#allocation2 + $0x1cc0] sm:$0xff]  }
 0x3b0   :  { %14601 = vmatprep.subr.bf16.mxu0 %v16002_v25  ;;  %14655 = vmatprep.subr.bf16.mxu1 %v16017_v38  ;;  %v16068_v25 = vld [vmem:[#allocation2 + $0x1c18] sm:$0xff]   ;;  %v16081_v38 = vld [vmem:[#allocation2 + $0x1c80] sm:$0xff]  }
 0x3b1   :  { %11623 = vmatprep.mubr.bf16.mxu1 %v16049_v5  ;;  %v16113_v5 = vld [vmem:[#allocation2 + $0x1dc8] sm:$0xff]  }
 0x3b3   :  { %14602 = vmatpush3.bf16.msra.mxu0 %v16004_v27  ;;  %14656 = vmatpush3.bf16.msra.mxu1 %v16019_v40  ;;  %v16070_v27 = vld [vmem:[#allocation2 + $0x1c50] sm:$0xff]  }
 0x3b4   :  { %14631 = vmatprep.subr.bf16.mxu0 %v16012_v33  ;;  %14657 = vmatprep.subr.bf16.mxu1 %v16021_v42  ;;  %v16076_v33 = vld [vmem:[#allocation2 + $0x1c08] sm:$0xff]   ;;  %v16084_v40 = vld [vmem:[%s17226_s0 + $0x1c4] ss:$528 sps:$4 sm:$0xff]  }
 0x3b5   :  { %v16087_v42 = vld [vmem:[%s17226_s0 + $0x1cc] ss:$528 sps:$4 sm:$0xff]  }
 0x3b6   :  { %11501 = vmatmul.mubr.bf16.vlgmr.msra.gmra.mxu0 %v16006_v29  ;;  %v16072_v29 = vld [vmem:[#allocation2 + $0x1c10] sm:$0xff]  }
 0x3b7   :  { %14632 = vmatpush3.bf16.msra.mxu0 %v16014_v35  ;;  %14658 = vmatpush3.bf16.msra.mxu1 %v16023_v44  ;;  %v16078_v35 = vld [vmem:[#allocation2 + $0x1c40] sm:$0xff]   ;;  %v16089_v44 = vld [vmem:[#allocation2 + $0x1df8] sm:$0xff]  }
 0x3b8   :  { %14633 = vmatprep.subr.bf16.mxu0 %v16016_v37  ;;  %14659 = vmatprep.subr.bf16.mxu1 %v16025_v46  ;;  %v16080_v37 = vld [vmem:[#allocation2 + $0x1c00] sm:$0xff]   ;;  %v16091_v46 = vld [vmem:[#allocation2 + $0x1db8] sm:$0xff]  }
 0x3b9   :  { %11582 = vmatprep.mubr.bf16.mxu0 %v16046_v3  ;;  %v16111_v3 = vld [vmem:[#allocation2 + $0x1d90] sm:$0xff]  }
 0x3bb   :  { %14634 = vmatpush3.bf16.msra.mxu0 %v16018_v39  ;;  %14660 = vmatpush3.bf16.msra.mxu1 %v16027_v48  ;;  %v16082_v39 = vld [vmem:[%s17226_s0 + $0x1c0] ss:$528 sps:$4 sm:$0xff]  }
 0x3bc   :  { %14635 = vmatprep.subr.bf16.mxu0 %v16020_v41  ;;  %14661 = vmatprep.subr.bf16.mxu1 %v16029_v50  ;;  %v16085_v41 = vld [vmem:[%s17226_s0 + $0x1c8] ss:$528 sps:$4 sm:$0xff]   ;;  %v16093_v48 = vld [vmem:[#allocation2 + $0x1df0] sm:$0xff]  }
 0x3bd   :  { %v16095_v50 = vld [vmem:[#allocation2 + $0x1db0] sm:$0xff]  }
 0x3bf   :  { %14636 = vmatpush3.bf16.msra.mxu0 %v16022_v43  ;;  %14662 = vmatpush3.bf16.msra.mxu1 %v16031_v52  ;;  %v16088_v43 = vld [vmem:[#allocation2 + $0x1d78] sm:$0xff]   ;;  %v16097_v52 = vld [vmem:[#allocation2 + $0x1de8] sm:$0xff]  }
 0x3c0   :  { %14637 = vmatprep.subr.bf16.mxu0 %v16024_v45  ;;  %14663 = vmatprep.subr.bf16.mxu1 %v16033_v54  ;;  %v16090_v45 = vld [vmem:[#allocation2 + $0x1d38] sm:$0xff]   ;;  %v16099_v54 = vld [vmem:[#allocation2 + $0x1da8] sm:$0xff]  }
 0x3c3   :  { %14638 = vmatpush3.bf16.msra.mxu0 %v16026_v47  ;;  %14664 = vmatpush3.bf16.msra.mxu1 %v16035_v56  ;;  %v16092_v47 = vld [vmem:[#allocation2 + $0x1d70] sm:$0xff]   ;;  %v16101_v56 = vld [vmem:[#allocation2 + $0x1de0] sm:$0xff]  }
 0x3c4   :  { %14639 = vmatprep.subr.bf16.mxu0 %v16028_v49  ;;  %14665 = vmatprep.subr.bf16.mxu1 %v16037_v58  ;;  %v16094_v49 = vld [vmem:[#allocation2 + $0x1d30] sm:$0xff]   ;;  %v16103_v58 = vld [vmem:[#allocation2 + $0x1da0] sm:$0xff]  }
 0x3c7   :  { %14640 = vmatpush3.bf16.msra.mxu0 %v16030_v51  ;;  %14666 = vmatpush3.bf16.msra.mxu1 %v16039_v60  ;;  %v16096_v51 = vld [vmem:[#allocation2 + $0x1d68] sm:$0xff]   ;;  %v16105_v60 = vld [vmem:[#allocation2 + $0x1dd8] sm:$0xff]  }
 0x3c8   :  { %14641 = vmatprep.subr.bf16.mxu0 %v16032_v53  ;;  %14667 = vmatprep.subr.bf16.mxu1 %v16041_v62  ;;  %v16098_v53 = vld [vmem:[#allocation2 + $0x1d28] sm:$0xff]   ;;  %v16107_v62 = vld [vmem:[#allocation2 + $0x1d98] sm:$0xff]  }
 0x3cb   :  { %14642 = vmatpush3.bf16.msra.mxu0 %v16034_v55  ;;  %14668 = vmatpush3.bf16.msra.mxu1 %v16043_v1  ;;  %v16100_v55 = vld [vmem:[#allocation2 + $0x1d60] sm:$0xff]   ;;  %v16109_v1 = vld [vmem:[#allocation2 + $0x1dd0] sm:$0xff]  }
 0x3cc   :  { %14643 = vmatprep.subr.bf16.mxu0 %v16036_v57  ;;  %14697 = vmatprep.subr.bf16.mxu1 %v16051_v7  ;;  %v16102_v57 = vld [vmem:[#allocation2 + $0x1d20] sm:$0xff]   ;;  %v16115_v7 = vld [vmem:[#allocation2 + $0x1d88] sm:$0xff]  }
 0x3ce   :  { %11624 = vmatmul.mubr.bf16.vlgmr.msra.gmra.mxu1 %v16047_v4  ;;  %v16112_v4 = vld [vmem:[#allocation2 + $0x1d48] sm:$0xff]  }
 0x3cf   :  { %14644 = vmatpush3.bf16.msra.mxu0 %v16038_v59  ;;  %14698 = vmatpush3.bf16.msra.mxu1 %v16053_v10  ;;  %v16104_v59 = vld [vmem:[#allocation2 + $0x1d58] sm:$0xff]   ;;  %v16117_v10 = vld [vmem:[#allocation2 + $0x1dc0] sm:$0xff]  }
 0x3d0   :  { %14645 = vmatprep.subr.bf16.mxu0 %v16040_v61  ;;  %14699 = vmatprep.subr.bf16.mxu1 %v16055_v12  ;;  %v16106_v61 = vld [vmem:[#allocation2 + $0x1d18] sm:$0xff]   ;;  %v16119_v12 = vld [vmem:[#allocation2 + $0x1d80] sm:$0xff]  }
 0x3d1   :  { %11705 = vmatprep.mubr.bf16.mxu1 %v16087_v42  ;;  %v16151_v42 = vld [vmem:[#allocation2 + $0x1ec8] sm:$0xff]  }
 0x3d3   :  { %14646 = vmatpush3.bf16.msra.mxu0 %v16042_v0  ;;  %14700 = vmatpush3.bf16.msra.mxu1 %v16057_v14  ;;  %v16108_v0 = vld [vmem:[#allocation2 + $0x1d50] sm:$0xff]  }
 0x3d4   :  { %14675 = vmatprep.subr.bf16.mxu0 %v16050_v6  ;;  %14701 = vmatprep.subr.bf16.mxu1 %v16059_v16  ;;  %v16114_v6 = vld [vmem:[#allocation2 + $0x1d08] sm:$0xff]   ;;  %v16122_v14 = vld [vmem:[%s17226_s0 + $0x1d4] ss:$528 sps:$4 sm:$0xff]  }
 0x3d5   :  { %v16125_v16 = vld [vmem:[%s17226_s0 + $0x1dc] ss:$528 sps:$4 sm:$0xff]  }
 0x3d6   :  { %11583 = vmatmul.mubr.bf16.vlgmr.msra.gmra.mxu0 %v16044_v2  ;;  %v16110_v2 = vld [vmem:[#allocation2 + $0x1d10] sm:$0xff]  }
 0x3d7   :  { %14676 = vmatpush3.bf16.msra.mxu0 %v16052_v9  ;;  %14702 = vmatpush3.bf16.msra.mxu1 %v16061_v18  ;;  %v16116_v9 = vld [vmem:[#allocation2 + $0x1d40] sm:$0xff]   ;;  %v16127_v18 = vld [vmem:[#allocation2 + $0x1ef8] sm:$0xff]  }
 0x3d8   :  { %14677 = vmatprep.subr.bf16.mxu0 %v16054_v11  ;;  %14703 = vmatprep.subr.bf16.mxu1 %v16063_v20  ;;  %v16118_v11 = vld [vmem:[#allocation2 + $0x1d00] sm:$0xff]   ;;  %v16129_v20 = vld [vmem:[#allocation2 + $0x1eb8] sm:$0xff]  }
 0x3d9   :  { %11664 = vmatprep.mubr.bf16.mxu0 %v16084_v40  ;;  %v16149_v40 = vld [vmem:[#allocation2 + $0x1e90] sm:$0xff]  }
 0x3db   :  { %14678 = vmatpush3.bf16.msra.mxu0 %v16056_v13  ;;  %14704 = vmatpush3.bf16.msra.mxu1 %v16065_v22  ;;  %v16120_v13 = vld [vmem:[%s17226_s0 + $0x1d0] ss:$528 sps:$4 sm:$0xff]  }
 0x3dc   :  { %14679 = vmatprep.subr.bf16.mxu0 %v16058_v15  ;;  %14705 = vmatprep.subr.bf16.mxu1 %v16067_v24  ;;  %v16123_v15 = vld [vmem:[%s17226_s0 + $0x1d8] ss:$528 sps:$4 sm:$0xff]   ;;  %v16131_v22 = vld [vmem:[#allocation2 + $0x1ef0] sm:$0xff]  }
 0x3dd   :  { %v16133_v24 = vld [vmem:[#allocation2 + $0x1eb0] sm:$0xff]  }
 0x3df   :  { %14680 = vmatpush3.bf16.msra.mxu0 %v16060_v17  ;;  %14706 = vmatpush3.bf16.msra.mxu1 %v16069_v26  ;;  %v16126_v17 = vld [vmem:[#allocation2 + $0x1e78] sm:$0xff]   ;;  %v16135_v26 = vld [vmem:[#allocation2 + $0x1ee8] sm:$0xff]  }
 0x3e0   :  { %14681 = vmatprep.subr.bf16.mxu0 %v16062_v19  ;;  %14707 = vmatprep.subr.bf16.mxu1 %v16071_v28  ;;  %v16128_v19 = vld [vmem:[#allocation2 + $0x1e38] sm:$0xff]   ;;  %v16137_v28 = vld [vmem:[#allocation2 + $0x1ea8] sm:$0xff]  }
 0x3e3   :  { %14682 = vmatpush3.bf16.msra.mxu0 %v16064_v21  ;;  %14708 = vmatpush3.bf16.msra.mxu1 %v16073_v30  ;;  %v16130_v21 = vld [vmem:[#allocation2 + $0x1e70] sm:$0xff]   ;;  %v16139_v30 = vld [vmem:[#allocation2 + $0x1ee0] sm:$0xff]  }
 0x3e4   :  { %14683 = vmatprep.subr.bf16.mxu0 %v16066_v23  ;;  %14709 = vmatprep.subr.bf16.mxu1 %v16075_v32  ;;  %v16132_v23 = vld [vmem:[#allocation2 + $0x1e30] sm:$0xff]   ;;  %v16141_v32 = vld [vmem:[#allocation2 + $0x1ea0] sm:$0xff]  }
 0x3e7   :  { %14684 = vmatpush3.bf16.msra.mxu0 %v16068_v25  ;;  %14710 = vmatpush3.bf16.msra.mxu1 %v16077_v34  ;;  %v16134_v25 = vld [vmem:[#allocation2 + $0x1e68] sm:$0xff]   ;;  %v16143_v34 = vld [vmem:[#allocation2 + $0x1ed8] sm:$0xff]  }
 0x3e8   :  { %14685 = vmatprep.subr.bf16.mxu0 %v16070_v27  ;;  %14711 = vmatprep.subr.bf16.mxu1 %v16079_v36  ;;  %v16136_v27 = vld [vmem:[#allocation2 + $0x1e28] sm:$0xff]   ;;  %v16145_v36 = vld [vmem:[#allocation2 + $0x1e98] sm:$0xff]  }
 0x3eb   :  { %14686 = vmatpush3.bf16.msra.mxu0 %v16072_v29  ;;  %14712 = vmatpush3.bf16.msra.mxu1 %v16081_v38  ;;  %v16138_v29 = vld [vmem:[#allocation2 + $0x1e60] sm:$0xff]   ;;  %v16147_v38 = vld [vmem:[#allocation2 + $0x1ed0] sm:$0xff]  }
 0x3ec   :  { %14687 = vmatprep.subr.bf16.mxu0 %v16074_v31  ;;  %14741 = vmatprep.subr.bf16.mxu1 %v16089_v44  ;;  %v16140_v31 = vld [vmem:[#allocation2 + $0x1e20] sm:$0xff]   ;;  %v16153_v44 = vld [vmem:[#allocation2 + $0x1e88] sm:$0xff]  }
 0x3ee   :  { %11706 = vmatmul.mubr.bf16.vlgmr.msra.gmra.mxu1 %v16085_v41  ;;  %v16150_v41 = vld [vmem:[#allocation2 + $0x1e48] sm:$0xff]  }
 0x3ef   :  { %14688 = vmatpush3.bf16.msra.mxu0 %v16076_v33  ;;  %14742 = vmatpush3.bf16.msra.mxu1 %v16091_v46  ;;  %v16142_v33 = vld [vmem:[#allocation2 + $0x1e58] sm:$0xff]   ;;  %v16155_v46 = vld [vmem:[#allocation2 + $0x1ec0] sm:$0xff]  }
 0x3f0   :  { %14689 = vmatprep.subr.bf16.mxu0 %v16078_v35  ;;  %14743 = vmatprep.subr.bf16.mxu1 %v16093_v48  ;;  %v16144_v35 = vld [vmem:[#allocation2 + $0x1e18] sm:$0xff]   ;;  %v16157_v48 = vld [vmem:[#allocation2 + $0x1e80] sm:$0xff]  }
 0x3f1   :  { %11787 = vmatprep.mubr.bf16.mxu1 %v16125_v16  ;;  %v16189_v16 = vld [vmem:[#allocation2 + $0x1fc8] sm:$0xff]  }
 0x3f3   :  { %14690 = vmatpush3.bf16.msra.mxu0 %v16080_v37  ;;  %14744 = vmatpush3.bf16.msra.mxu1 %v16095_v50  ;;  %v16146_v37 = vld [vmem:[#allocation2 + $0x1e50] sm:$0xff]  }
 0x3f4   :  { %14719 = vmatprep.subr.bf16.mxu0 %v16088_v43  ;;  %14745 = vmatprep.subr.bf16.mxu1 %v16097_v52  ;;  %v16152_v43 = vld [vmem:[#allocation2 + $0x1e08] sm:$0xff]   ;;  %v16160_v50 = vld [vmem:[%s17226_s0 + $0x1e4] ss:$528 sps:$4 sm:$0xff]  }
 0x3f5   :  { %v16163_v52 = vld [vmem:[%s17226_s0 + $0x1ec] ss:$528 sps:$4 sm:$0xff]  }
 0x3f6   :  { %11665 = vmatmul.mubr.bf16.vlgmr.msra.gmra.mxu0 %v16082_v39  ;;  %v16148_v39 = vld [vmem:[#allocation2 + $0x1e10] sm:$0xff]  }
 0x3f7   :  { %14720 = vmatpush3.bf16.msra.mxu0 %v16090_v45  ;;  %14746 = vmatpush3.bf16.msra.mxu1 %v16099_v54  ;;  %v16154_v45 = vld [vmem:[#allocation2 + $0x1e40] sm:$0xff]   ;;  %v16165_v54 = vld [vmem:[#allocation2 + $0x1ff8] sm:$0xff]  }
 0x3f8   :  { %14721 = vmatprep.subr.bf16.mxu0 %v16092_v47  ;;  %14747 = vmatprep.subr.bf16.mxu1 %v16101_v56  ;;  %v16156_v47 = vld [vmem:[#allocation2 + $0x1e00] sm:$0xff]   ;;  %v16167_v56 = vld [vmem:[#allocation2 + $0x1fb8] sm:$0xff]  }
 0x3f9   :  { %11746 = vmatprep.mubr.bf16.mxu0 %v16122_v14  ;;  %v16187_v14 = vld [vmem:[#allocation2 + $0x1f90] sm:$0xff]  }
 0x3fb   :  { %14722 = vmatpush3.bf16.msra.mxu0 %v16094_v49  ;;  %14748 = vmatpush3.bf16.msra.mxu1 %v16103_v58  ;;  %v16158_v49 = vld [vmem:[%s17226_s0 + $0x1e0] ss:$528 sps:$4 sm:$0xff]  }
 0x3fc   :  { %14723 = vmatprep.subr.bf16.mxu0 %v16096_v51  ;;  %14749 = vmatprep.subr.bf16.mxu1 %v16105_v60  ;;  %v16161_v51 = vld [vmem:[%s17226_s0 + $0x1e8] ss:$528 sps:$4 sm:$0xff]   ;;  %v16169_v58 = vld [vmem:[#allocation2 + $0x1ff0] sm:$0xff]  }
 0x3fd   :  { %v16171_v60 = vld [vmem:[#allocation2 + $0x1fb0] sm:$0xff]  }
 0x3ff   :  { %14724 = vmatpush3.bf16.msra.mxu0 %v16098_v53  ;;  %14750 = vmatpush3.bf16.msra.mxu1 %v16107_v62  ;;  %v16164_v53 = vld [vmem:[#allocation2 + $0x1f78] sm:$0xff]   ;;  %v16173_v62 = vld [vmem:[#allocation2 + $0x1fe8] sm:$0xff]  }
 0x400   :  { %14725 = vmatprep.subr.bf16.mxu0 %v16100_v55  ;;  %14751 = vmatprep.subr.bf16.mxu1 %v16109_v1  ;;  %v16166_v55 = vld [vmem:[#allocation2 + $0x1f38] sm:$0xff]   ;;  %v16175_v1 = vld [vmem:[#allocation2 + $0x1fa8] sm:$0xff]  }
 0x403   :  { %14726 = vmatpush3.bf16.msra.mxu0 %v16102_v57  ;;  %14752 = vmatpush3.bf16.msra.mxu1 %v16111_v3  ;;  %v16168_v57 = vld [vmem:[#allocation2 + $0x1f70] sm:$0xff]   ;;  %v16177_v3 = vld [vmem:[#allocation2 + $0x1fe0] sm:$0xff]  }
 0x404   :  { %14727 = vmatprep.subr.bf16.mxu0 %v16104_v59  ;;  %14753 = vmatprep.subr.bf16.mxu1 %v16113_v5  ;;  %v16170_v59 = vld [vmem:[#allocation2 + $0x1f30] sm:$0xff]   ;;  %v16179_v5 = vld [vmem:[#allocation2 + $0x1fa0] sm:$0xff]  }
 0x407   :  { %14728 = vmatpush3.bf16.msra.mxu0 %v16106_v61  ;;  %14754 = vmatpush3.bf16.msra.mxu1 %v16115_v7  ;;  %v16172_v61 = vld [vmem:[#allocation2 + $0x1f68] sm:$0xff]   ;;  %v16181_v7 = vld [vmem:[#allocation2 + $0x1fd8] sm:$0xff]  }
 0x408   :  { %14729 = vmatprep.subr.bf16.mxu0 %v16108_v0  ;;  %14755 = vmatprep.subr.bf16.mxu1 %v16117_v10  ;;  %v16174_v0 = vld [vmem:[#allocation2 + $0x1f28] sm:$0xff]   ;;  %v16183_v10 = vld [vmem:[#allocation2 + $0x1f98] sm:$0xff]  }
 0x40b   :  { %14730 = vmatpush3.bf16.msra.mxu0 %v16110_v2  ;;  %14756 = vmatpush3.bf16.msra.mxu1 %v16119_v12  ;;  %v16176_v2 = vld [vmem:[#allocation2 + $0x1f60] sm:$0xff]   ;;  %v16185_v12 = vld [vmem:[#allocation2 + $0x1fd0] sm:$0xff]  }
 0x40c   :  { %14731 = vmatprep.subr.bf16.mxu0 %v16112_v4  ;;  %14785 = vmatprep.subr.bf16.mxu1 %v16127_v18  ;;  %v16178_v4 = vld [vmem:[#allocation2 + $0x1f20] sm:$0xff]   ;;  %v16191_v18 = vld [vmem:[#allocation2 + $0x1f88] sm:$0xff]  }
 0x40e   :  { %11788 = vmatmul.mubr.bf16.vlgmr.msra.gmra.mxu1 %v16123_v15  ;;  %v16188_v15 = vld [vmem:[#allocation2 + $0x1f48] sm:$0xff]  }
 0x40f   :  { %14732 = vmatpush3.bf16.msra.mxu0 %v16114_v6  ;;  %14786 = vmatpush3.bf16.msra.mxu1 %v16129_v20  ;;  %v16180_v6 = vld [vmem:[#allocation2 + $0x1f58] sm:$0xff]   ;;  %v16193_v20 = vld [vmem:[#allocation2 + $0x1fc0] sm:$0xff]  }
 0x410   :  { %14733 = vmatprep.subr.bf16.mxu0 %v16116_v9  ;;  %14787 = vmatprep.subr.bf16.mxu1 %v16131_v22  ;;  %v16182_v9 = vld [vmem:[#allocation2 + $0x1f18] sm:$0xff]   ;;  %v16195_v22 = vld [vmem:[#allocation2 + $0x1f80] sm:$0xff]  }
 0x411   :  { %11869 = vmatprep.mubr.bf16.mxu1 %v16163_v52  ;;  %v16224_v52 = vld [vmem:[#allocation2 + $0x2010] sm:$0xff]  }
 0x413   :  { %14734 = vmatpush3.bf16.msra.mxu0 %v16118_v11  ;;  %14788 = vmatpush3.bf16.msra.mxu1 %v16133_v24  ;;  %v16184_v11 = vld [vmem:[#allocation2 + $0x1f50] sm:$0xff]  }
 0x414   :  { %14763 = vmatprep.subr.bf16.mxu0 %v16126_v17  ;;  %14789 = vmatprep.subr.bf16.mxu1 %v16135_v26  ;;  %v16190_v17 = vld [vmem:[#allocation2 + $0x1f08] sm:$0xff]   ;;  %v16198_v24 = vld [vmem:[%s17226_s0 + $0x1f4] ss:$528 sps:$4 sm:$0xff]  }
 0x415   :  { %v16201_v26 = vld [vmem:[%s17226_s0 + $0x1fc] ss:$528 sps:$4 sm:$0xff]  }
 0x416   :  { %11747 = vmatmul.mubr.bf16.vlgmr.msra.gmra.mxu0 %v16120_v13  ;;  %v16186_v13 = vld [vmem:[#allocation2 + $0x1f10] sm:$0xff]  }
 0x417   :  { %14764 = vmatpush3.bf16.msra.mxu0 %v16128_v19  ;;  %14790 = vmatpush3.bf16.msra.mxu1 %v16137_v28  ;;  %v16192_v19 = vld [vmem:[#allocation2 + $0x1f40] sm:$0xff]   ;;  %v16203_v28 = vld [vmem:[#allocation2 + $0x20f8] sm:$0xff]  }
 0x418   :  { %14765 = vmatprep.subr.bf16.mxu0 %v16130_v21  ;;  %14791 = vmatprep.subr.bf16.mxu1 %v16139_v30  ;;  %v16194_v21 = vld [vmem:[#allocation2 + $0x1f00] sm:$0xff]   ;;  %v16205_v30 = vld [vmem:[#allocation2 + $0x20b8] sm:$0xff]  }
 0x419   :  { %11828 = vmatprep.mubr.bf16.mxu0 %v16160_v50  ;;  %v16222_v50 = vld [vmem:[#allocation2 + $0x2050] sm:$0xff]  }
 0x41b   :  { %14766 = vmatpush3.bf16.msra.mxu0 %v16132_v23  ;;  %14792 = vmatpush3.bf16.msra.mxu1 %v16141_v32  ;;  %v16196_v23 = vld [vmem:[%s17226_s0 + $0x1f0] ss:$528 sps:$4 sm:$0xff]  }
 0x41c   :  { %14767 = vmatprep.subr.bf16.mxu0 %v16134_v25  ;;  %14793 = vmatprep.subr.bf16.mxu1 %v16143_v34  ;;  %v16199_v25 = vld [vmem:[%s17226_s0 + $0x1f8] ss:$528 sps:$4 sm:$0xff]   ;;  %v16207_v32 = vld [vmem:[#allocation2 + $0x20f0] sm:$0xff]  }
 0x41d   :  { %v16209_v34 = vld [vmem:[#allocation2 + $0x20b0] sm:$0xff]  }
 0x41f   :  { %14768 = vmatpush3.bf16.msra.mxu0 %v16136_v27  ;;  %14794 = vmatpush3.bf16.msra.mxu1 %v16145_v36  ;;  %v16202_v27 = vld [vmem:[#allocation2 + $0x2078] sm:$0xff]   ;;  %v16211_v36 = vld [vmem:[#allocation2 + $0x20e8] sm:$0xff]  }
 0x420   :  { %14769 = vmatprep.subr.bf16.mxu0 %v16138_v29  ;;  %14795 = vmatprep.subr.bf16.mxu1 %v16147_v38  ;;  %v16204_v29 = vld [vmem:[#allocation2 + $0x2038] sm:$0xff]   ;;  %v16213_v38 = vld [vmem:[#allocation2 + $0x20a8] sm:$0xff]  }
 0x423   :  { %14770 = vmatpush3.bf16.msra.mxu0 %v16140_v31  ;;  %14796 = vmatpush3.bf16.msra.mxu1 %v16149_v40  ;;  %v16206_v31 = vld [vmem:[#allocation2 + $0x2070] sm:$0xff]   ;;  %v16215_v40 = vld [vmem:[#allocation2 + $0x20e0] sm:$0xff]  }
 0x424   :  { %14771 = vmatprep.subr.bf16.mxu0 %v16142_v33  ;;  %14797 = vmatprep.subr.bf16.mxu1 %v16151_v42  ;;  %v16208_v33 = vld [vmem:[#allocation2 + $0x2030] sm:$0xff]   ;;  %v16888_v42 = vpop.f32.mrf.mxu0 }
 0x427   :  { %14772 = vmatpush3.bf16.msra.mxu0 %v16144_v35  ;;  %14798 = vmatpush3.bf16.msra.mxu1 %v16153_v44  ;;  %v16210_v35 = vld [vmem:[#allocation2 + $0x2068] sm:$0xff]   ;;  %v16218_v44 = vld [vmem:[#allocation2 + $0x2058] sm:$0xff]  }
 0x428   :  { %14773 = vmatprep.subr.bf16.mxu0 %v16146_v37  ;;  %14799 = vmatprep.subr.bf16.mxu1 %v16155_v46  ;;  %v16212_v37 = vld [vmem:[#allocation2 + $0x2028] sm:$0xff]   ;;  %v16220_v46 = vld [vmem:[#allocation2 + $0x2018] sm:$0xff]  }
 0x42b   :  { %14774 = vmatpush3.bf16.msra.mxu0 %v16148_v39  ;;  %14800 = vmatpush3.bf16.msra.mxu1 %v16157_v48  ;;  %v16214_v39 = vld [vmem:[#allocation2 + $0x2060] sm:$0xff]   ;;  %v16892_v48 = vpop.f32.mrf.mxu0 }
 0x42c   :  { %14775 = vmatprep.subr.bf16.mxu0 %v16150_v41  ;;  %14829 = vmatprep.subr.bf16.mxu1 %v16165_v54  ;;  %v16216_v41 = vld [vmem:[#allocation2 + $0x2020] sm:$0xff]  }
 0x42d   :  { %v16896_v54 = vpop.f32.mrf.mxu0 }
 0x42e   :  { %11870 = vmatmul.mubr.bf16.vlgmr.msra.gmra.mxu1 %v16161_v51  ;;  %v16223_v51 = vld [vmem:[#allocation2 + $0x20d0] sm:$0xff]  }
 0x42f   :  { %14776 = vmatpush3.bf16.msra.mxu0 %v16152_v43  ;;  %14830 = vmatpush3.bf16.msra.mxu1 %v16167_v56  ;;  %v16217_v43 = vld [vmem:[#allocation2 + $0x20a0] sm:$0xff]   ;;  %v16226_v56 = vld [vmem:[#allocation2 + $0x2048] sm:$0xff]  }
 0x430   :  { %14777 = vmatprep.subr.bf16.mxu0 %v16154_v45  ;;  %14831 = vmatprep.subr.bf16.mxu1 %v16169_v58  ;;  %v16219_v45 = vld [vmem:[#allocation2 + $0x20d8] sm:$0xff]   ;;  %v16228_v58 = vld [vmem:[#allocation2 + $0x2008] sm:$0xff]  }
 0x431   :  { %11951 = vmatprep.mubr.bf16.mxu1 %v16201_v26 }
 0x433   :  { %14778 = vmatpush3.bf16.msra.mxu0 %v16156_v47  ;;  %14832 = vmatpush3.bf16.msra.mxu1 %v16171_v60  ;;  %v16890_v47 = vpop.f32.mrf.mxu1  ;;  %v16900_v60 = vpop.f32.mrf.mxu0 }
 0x434   :  { %14807 = vmatprep.subr.bf16.mxu0 %v16164_v53  ;;  %14833 = vmatprep.subr.bf16.mxu1 %v16173_v62  ;;  %v16230_v62 = vld [vmem:[#allocation2 + $0x2040] sm:$0xff]  }
 0x435   :  { %v16894_v53 = vpop.f32.mrf.mxu1 }
 0x436   :  { %11829 = vmatmul.mubr.bf16.vlgmr.msra.gmra.mxu0 %v16158_v49  ;;  %v16221_v49 = vld [vmem:[#allocation2 + $0x2098] sm:$0xff]  }
 0x437   :  { %14808 = vmatpush3.bf16.msra.mxu0 %v16166_v55  ;;  %14834 = vmatpush3.bf16.msra.mxu1 %v16175_v1  ;;  %v16225_v55 = vld [vmem:[#allocation2 + $0x2090] sm:$0xff]   ;;  %v16231_v1 = vld [vmem:[#allocation2 + $0x20c0] sm:$0xff]  }
 0x438   :  { %14809 = vmatprep.subr.bf16.mxu0 %v16168_v57  ;;  %14835 = vmatprep.subr.bf16.mxu1 %v16177_v3  ;;  %v16227_v57 = vld [vmem:[#allocation2 + $0x20c8] sm:$0xff]  }
 0x439   :  { %11910 = vmatprep.mubr.bf16.mxu0 %v16198_v24 }
 0x43b   :  { %14810 = vmatpush3.bf16.msra.mxu0 %v16170_v59  ;;  %14836 = vmatpush3.bf16.msra.mxu1 %v16179_v5  ;;  %v16898_v59 = vpop.f32.mrf.mxu1  ;;  %v16234_v5 = vld [vmem:[%s17226_s0 + $0x200] ss:$528 sps:$4 sm:$0xff]  }
 0x43c   :  { %14811 = vmatprep.subr.bf16.mxu0 %v16172_v61  ;;  %14837 = vmatprep.subr.bf16.mxu1 %v16181_v7  ;;  %v16229_v61 = vld [vmem:[#allocation2 + $0x2088] sm:$0xff]  }
 0x43d   :  { %v16904_v3 = vpop.f32.mrf.mxu1 }
 0x43f   :  { %14812 = vmatpush3.bf16.msra.mxu0 %v16174_v0  ;;  %14838 = vmatpush3.bf16.msra.mxu1 %v16183_v10  ;;  %v16902_v0 = vpop.f32.mrf.mxu0  ;;  %v16912_v7 = vpop.f32.mrf.mxu1  ;;  %v16237_v10 = vld [vmem:[%s17226_s0 + $0x208] ss:$528 sps:$4 sm:$0xff]  }
 0x440   :  { %14813 = vmatprep.subr.bf16.mxu0 %v16176_v2  ;;  %14839 = vmatprep.subr.bf16.mxu1 %v16185_v12  ;;  %v16232_v2 = vld [vmem:[#allocation2 + $0x2000] sm:$0xff]  }
 0x441   :  { %v16922_v12 = vpop.f32.mrf.mxu1 }
 0x443   :  { %14814 = vmatpush3.bf16.msra.mxu0 %v16178_v4  ;;  %14840 = vmatpush3.bf16.msra.mxu1 %v16187_v14  ;;  %v16233_v4 = vld [vmem:[#allocation2 + $0x2080] sm:$0xff]   ;;  %v16926_v14 = vpop.f32.mrf.mxu1 }
 0x444   :  { %14815 = vmatprep.subr.bf16.mxu0 %v16180_v6  ;;  %14841 = vmatprep.subr.bf16.mxu1 %v16189_v16  ;;  %v16236_v6 = vld [vmem:[%s17226_s0 + $0x204] ss:$528 sps:$4 sm:$0xff]  }
 0x447   :  { %14816 = vmatpush3.bf16.msra.mxu0 %v16182_v9  ;;  %14842 = vmatpush3.bf16.msra.mxu1 %v16191_v18  ;;  %v16914_v9 = vpop.f32.mrf.mxu0 }
 0x448   :  { %14817 = vmatprep.subr.bf16.mxu0 %v16184_v11  ;;  %14843 = vmatprep.subr.bf16.mxu1 %v16193_v20  ;;  %v16239_v11 = vld [vmem:[%s17226_s0 + $0x20c] ss:$528 sps:$4 sm:$0xff]  }
 0x44b   :  { %14818 = vmatpush3.bf16.msra.mxu0 %v16186_v13  ;;  %14844 = vmatpush3.bf16.msra.mxu1 %v16195_v22  ;;  %v16924_v13 = vpop.f32.mrf.mxu0 }
 0x44c   :  { %14819 = vmatprep.subr.bf16.mxu0 %v16188_v15  ;;  %14873 = vmatprep.subr.bf16.mxu1 %v16203_v28 }
 0x44d   :  { %v16928_v15 = vpop.f32.mrf.mxu0 }
 0x44e   :  { %11952 = vmatmul.mubr.bf16.vlgmr.msra.gmra.mxu1 %v16199_v25 }
 0x44f   :  { %14820 = vmatpush3.bf16.msra.mxu0 %v16190_v17  ;;  %14874 = vmatpush3.bf16.msra.mxu1 %v16205_v30  ;;  %v16930_v16 = vpop.f32.mrf.mxu0  ;;  %v16932_v17 = vpop.f32.mrf.mxu1 }
 0x450   :  { %14821 = vmatprep.subr.bf16.mxu0 %v16192_v19  ;;  %14875 = vmatprep.subr.bf16.mxu1 %v16207_v32 }
 0x451   :  { %12033 = vmatprep.mubr.bf16.mxu1 %v16239_v11  ;;  %v16934_v18 = vpop.f32.mrf.mxu1  ;;  %v16936_v19 = vpop.f32.mrf.mxu0  ;;  %v12049_v11 = vld [vmem:[%s17229_s3 + $0x28] sm:$0xff] }
 0x453   :  { %14822 = vmatpush3.bf16.msra.mxu0 %v16194_v21  ;;  %14876 = vmatpush3.bf16.msra.mxu1 %v16209_v34  ;;  %v16938_v20 = vpop.f32.mrf.mxu1  ;;  %v16940_v21 = vpop.f32.mrf.mxu0 }
 0x454   :  { %14851 = vmatprep.subr.bf16.mxu0 %v16202_v27  ;;  %14877 = vmatprep.subr.bf16.mxu1 %v16211_v36  ;;  %v12059_v36 = vld [vmem:[%s17229_s3 + $0x78] sm:$0xff] }
 0x455   :  { %v16942_v22 = vpop.f32.mrf.mxu1 }
 0x456   :  { %11911 = vmatmul.mubr.bf16.vlgmr.msra.gmra.mxu0 %v16196_v23  ;;  %v16944_v23 = vpop.f32.mrf.mxu0 }
 0x457   :  { %14852 = vmatpush3.bf16.msra.mxu0 %v16204_v29  ;;  %14878 = vmatpush3.bf16.msra.mxu1 %v16213_v38  ;;  %v16948_v25 = vpop.f32.mrf.mxu1  ;;  %v12057_v38 = vld [vmem:[%s17229_s3 + $0x68] sm:$0xff] }
 0x458   :  { %14853 = vmatprep.subr.bf16.mxu0 %v16206_v31  ;;  %14879 = vmatprep.subr.bf16.mxu1 %v16215_v40  ;;  %v16946_v24 = vpop.f32.mrf.mxu0 }
 0x459   :  { %11992 = vmatprep.mubr.bf16.mxu0 %v16236_v6  ;;  %v16950_v26 = vpop.f32.mrf.mxu1 }
 0x45a   :  { %v16952_v27 = vpop.f32.mrf.mxu0 }
 0x45b   :  { %14854 = vmatpush3.bf16.msra.mxu0 %v16208_v33  ;;  %14880 = vmatpush3.bf16.msra.mxu1 %v16217_v43  ;;  %v16954_v28 = vpop.f32.mrf.mxu1  ;;  %v12055_v43 = vld [vmem:[%s17229_s3 + $0x58] sm:$0xff] }
 0x45c   :  { %14855 = vmatprep.subr.bf16.mxu0 %v16210_v35  ;;  %14881 = vmatprep.subr.bf16.mxu1 %v16219_v45  ;;  %v16956_v29 = vpop.f32.mrf.mxu0 }
 0x45d   :  { %v16958_v30 = vpop.f32.mrf.mxu1 }
 0x45e   :  { %v16960_v31 = vpop.f32.mrf.mxu0 }
 0x45f   :  { %14856 = vmatpush3.bf16.msra.mxu0 %v16212_v37  ;;  %14882 = vmatpush3.bf16.msra.mxu1 %v16221_v49  ;;  %v16964_v33 = vpop.f32.mrf.mxu1  ;;  %v12058_v37 = vld [vmem:[%s17229_s3 + $0x70] sm:$0xff] }
 0x460   :  { %14857 = vmatprep.subr.bf16.mxu0 %v16214_v39  ;;  %14883 = vmatprep.subr.bf16.mxu1 %v16223_v51  ;;  %v16962_v32 = vpop.f32.mrf.mxu0 }
 0x461   :  { %v16966_v34 = vpop.f32.mrf.mxu1 }
 0x462   :  { %v16968_v35 = vpop.f32.mrf.mxu0 }
 0x463   :  { %14858 = vmatpush3.bf16.msra.mxu0 %v16216_v41  ;;  %14884 = vmatpush3.bf16.msra.mxu1 %v16225_v55  ;;  %v16979_v39 = vpop.f32.mrf.mxu1  ;;  %v12056_v41 = vld [vmem:[%s17229_s3 + $0x60] sm:$0xff] }
 0x464   :  { %14859 = vmatprep.subr.bf16.mxu0 %v16218_v44  ;;  %14885 = vmatprep.subr.bf16.mxu1 %v16227_v57  ;;  %v16981_v40 = vpop.f32.mrf.mxu0  ;;  %v12051_v57 = vld [vmem:[%s17229_s3 + $0x38] sm:$0xff] }
 0x465   :  { %v16989_v44 = vpop.f32.mrf.mxu1 }
 0x466   :  { %v16991_v45 = vpop.f32.mrf.mxu0 }
 0x467   :  { %14860 = vmatpush3.bf16.msra.mxu0 %v16220_v46  ;;  %14886 = vmatpush3.bf16.msra.mxu1 %v16229_v61  ;;  %v12054_v46 = vld [vmem:[%s17229_s3 + $0x50] sm:$0xff]  ;;  %v17001_v51 = vpop.f32.mrf.mxu1 }
 0x468   :  { %14861 = vmatprep.subr.bf16.mxu0 %v16222_v50  ;;  %14887 = vmatprep.subr.bf16.mxu1 %v16231_v1  ;;  %v16996_v49 = vpop.f32.mrf.mxu0  ;;  %v12053_v50 = vld [vmem:[%s17229_s3 + $0x48] sm:$0xff] }
 0x469   :  { %v17006_v55 = vpop.f32.mrf.mxu1 }
 0x46b   :  { %14862 = vmatpush3.bf16.msra.mxu0 %v16224_v52  ;;  %14888 = vmatpush3.bf16.msra.mxu1 %v16233_v4  ;;  %v12052_v52 = vld [vmem:[%s17229_s3 + $0x40] sm:$0xff] }
 0x46c   :  { %14863 = vmatprep.subr.bf16.mxu0 %v16226_v56  ;;  %v17008_v56 = vpop.f32.mrf.mxu0 }
 0x46e   :  { %12034 = vmatmul.mubr.bf16.vlgmr.msra.gmra.mxu1 %v16237_v10  ;;  %v17015_v61 = vpop.f32.mrf.mxu0 }
 0x46f   :  { %14864 = vmatpush3.bf16.msra.mxu0 %v16228_v58  ;;  %v17013_v58 = vpop.f32.mrf.mxu1 }
 0x470   :  { %14865 = vmatprep.subr.bf16.mxu0 %v16230_v62  ;;  %v17019_v1 = vpop.f32.mrf.mxu0 }
 0x471   :  { %v17017_v62 = vpop.f32.mrf.mxu1 }
 0x473   :  { %14866 = vmatpush3.bf16.msra.mxu0 %v16232_v2  ;;  %v17021_v2 = vpop.f32.mrf.mxu0  ;;  %v17023_v4 = vpop.f32.mrf.mxu1 }
 0x474   :  { %14923 = vmatprep.subr.mxu0 %v12059_v36 }
 0x475   :  { %v17028_v6 = vpop.f32.mrf.mxu1  ;;  %v17030_v10 = vpop.f32.mrf.mxu0 }
 0x476   :  { %11993 = vmatmul.mubr.bf16.vlgmr.msra.gmra.mxu0 %v16234_v5  ;;  %v12050_v5 = vld [vmem:[%s17229_s3 + $0x30] sm:$0xff] }
 0x477   :  { %14924 = vmatpush3.msra.mxu0 %v12059_v36  ;;  %v12048_v36 = vld [vmem:[%s17229_s3 + $0x20] sm:$0xff] }
 0x478   :  { %14925 = vmatprep.subr.mxu0 %v12058_v37 }
 0x479   :  { %14926 = vmatpush3.msra.mxu0 %v12058_v37  ;;  %v17038_v37 = vpop.f32.mrf.mxu1 }
 0x47a   :  { %14927 = vmatprep.subr.mxu0 %v12057_v38  ;;  %17234 = vst [vmem:[#allocation13_spill] sm:$0xff] %v17038_v37 }
 0x47b   :  { %14928 = vmatpush3.msra.mxu0 %v12057_v38  ;;  %v17040_v38 = vpop.f32.mrf.mxu0 }
 0x47c   :  { %14929 = vmatprep.subr.mxu0 %v12056_v41  ;;  %17235 = vst [vmem:[#allocation14_spill] sm:$0xff] %v17040_v38  ;;  %v12148_v38 = vld [vmem:[#allocation7 + $0x20] sm:$0xff] }
 0x47d   :  { %14930 = vmatpush3.msra.mxu0 %v12056_v41  ;;  %v12047_v41 = vld [vmem:[%s17229_s3 + $0x18] sm:$0xff] }
 0x47e   :  { %14931 = vmatprep.subr.mxu0 %v12055_v43 }
 0x47f   :  { %14932 = vmatpush3.msra.mxu0 %v12055_v43  ;;  %v12046_v43 = vld [vmem:[%s17229_s3 + $0x10] sm:$0xff] }
 0x480   :  { %14933 = vmatprep.subr.mxu0 %v12054_v46 }
 0x481   :  { %14934 = vmatpush3.msra.mxu0 %v12054_v46  ;;  %v17048_v46 = vpop.f32.mrf.mxu1 }
 0x482   :  { %14935 = vmatprep.subr.mxu0 %v12053_v50  ;;  %17236 = vst [vmem:[#allocation15_spill] sm:$0xff] %v17048_v46 }
 0x483   :  { %14936 = vmatpush3.msra.mxu0 %v12053_v50  ;;  %v17050_v50 = vpop.f32.mrf.mxu0 }
 0x484   :  { %14937 = vmatprep.subr.mxu0 %v12052_v52  ;;  %17237 = vst [vmem:[#allocation16_spill] sm:$0xff] %v17050_v50 }
 0x485   :  { %14938 = vmatpush3.msra.mxu0 %v12052_v52  ;;  %v12045_v52 = vld [vmem:[%s17229_s3 + $0x8] sm:$0xff] }
 0x486   :  { %14939 = vmatprep.subr.mxu0 %v12051_v57 }
 0x487   :  { %14940 = vmatpush3.msra.mxu0 %v12051_v57  ;;  %v12044_v57 = vld [vmem:[%s17229_s3] sm:$0xff] }
 0x488   :  { %14941 = vmatprep.subr.mxu0 %v12050_v5 }
 0x489   :  { %14942 = vmatpush3.msra.mxu0 %v12050_v5  ;;  %v17058_v5 = vpop.f32.mrf.mxu0 }
 0x48a   :  { %14943 = vmatprep.subr.mxu0 %v12049_v11  ;;  %17238 = vst [vmem:[#allocation17_spill] sm:$0xff] %v17058_v5 }
 0x48b   :  { %14944 = vmatpush3.msra.mxu0 %v12049_v11  ;;  %v12151_v11 = vld [vmem:[#allocation7 + $0x38] sm:$0xff]  ;;  %v17064_v50 = vpop.f32.mrf.mxu0 }
 0x48c   :  { %14945 = vmatprep.subr.mxu0 %v12048_v36  ;;  %14958 = vmatprep.subr.mxu1 %v12151_v11  ;;  %17241 = vst [vmem:[#allocation20_spill] sm:$0xff] %v17064_v50 }
 0x48d   :  { %14946 = vmatpush3.msra.mxu0 %v12048_v36  ;;  %v12150_v36 = vld [vmem:[#allocation7 + $0x30] sm:$0xff]  ;;  %14959 = vmatpush3.msra.mxu1 %v12151_v11 }
 0x48e   :  { %14947 = vmatprep.subr.mxu0 %v12047_v41  ;;  %14960 = vmatprep.subr.mxu1 %v12150_v36 }
 0x48f   :  { %14948 = vmatpush3.msra.mxu0 %v12047_v41  ;;  %v17060_v41 = vpop.f32.mrf.mxu1  ;;  %14961 = vmatpush3.msra.mxu1 %v12150_v36 }
 0x490   :  { %14949 = vmatprep.subr.mxu0 %v12046_v43  ;;  %17239 = vst [vmem:[#allocation18_spill] sm:$0xff] %v17060_v41 }
 0x491   :  { %14950 = vmatpush3.msra.mxu0 %v12046_v43  ;;  %v12149_v43 = vld [vmem:[#allocation7 + $0x28] sm:$0xff]  ;;  %v17062_v46 = vpop.f32.mrf.mxu1 }
 0x492   :  { %14951 = vmatprep.subr.mxu0 %v12045_v52  ;;  %17240 = vst [vmem:[#allocation19_spill] sm:$0xff] %v17062_v46  ;;  %14962 = vmatprep.subr.mxu1 %v12149_v43 }
 0x493   :  { %14952 = vmatpush3.msra.mxu0 %v12045_v52  ;;  %14963 = vmatpush3.msra.mxu1 %v12149_v43  ;;  %v17066_v5 = vpop.f32.mrf.mxu1  ;;  %v17068_v52 = vpop.f32.mrf.mxu0 }
 0x494   :  { %14953 = vmatprep.subr.mxu0 %v12044_v57  ;;  %17242 = vst [vmem:[#allocation21_spill] sm:$0xff] %v17068_v52  ;;  %14964 = vmatprep.subr.mxu1 %v12148_v38  ;;  %v14209_v52 = vadd.f32 %v16892_v48, %v16888_v42 }
 0x495   :  { %14954 = vmatpush3.msra.mxu0 %v12044_v57  ;;  %14965 = vmatpush3.msra.mxu1 %v12148_v38  ;;  %v17070_v41 = vpop.f32.mrf.mxu1  ;;  %v17072_v57 = vpop.f32.mrf.mxu0 }
 0x496   :  { %17243 = vst [vmem:[#allocation22_spill] sm:$0xff] %v17070_v41  ;;  %17244 = vst [vmem:[#allocation23_spill] sm:$0xff] %v17072_v57 }
 0x497   :  { %v17074_v11 = vpop.f32.mrf.mxu0  ;;  %v17076_v46 = vpop.f32.mrf.mxu1 }
 0x498   :  { %17245 = vst [vmem:[#allocation24_spill] sm:$0xff] %v17074_v11  ;;  %17246 = vst [vmem:[#allocation25_spill] sm:$0xff] %v17076_v46  ;;  %v10765_v11 = vadd.f32 %v14209_v52, %v16763_v63  ;;  %v14212_v46 = vadd.f32 %v16900_v60, %v16896_v54  ;;  %v14234_v63 = vadd.f32 %v16904_v3, %v16898_v59 }
 0x499   :  { %v17078_v50 = vpop.f32.mrf.mxu1  ;;  %v17080_v36 = vpop.f32.mrf.mxu0  ;;  %v14278_v3 = vadd.f32 %v16932_v17, %v16926_v14  ;;  %v14322_v17 = vadd.f32 %v16948_v25, %v16942_v22  ;;  %v14366_v22 = vadd.f32 %v16964_v33, %v16958_v30  ;;  %v14410_v33 = vadd.f32 %v17001_v51, %v16989_v44 }
 0x49a   :  { %17247 = vst [vmem:[#allocation26_spill] sm:$0xff] %v17078_v50  ;;  %v14231_v50 = vadd.f32 %v16894_v53, %v16890_v47  ;;  %v14275_v47 = vadd.f32 %v16922_v12, %v16912_v7  ;;  %v14256_v53 = vadd.f32 %v16928_v15, %v16924_v13  ;;  %v14319_v12 = vadd.f32 %v16938_v20, %v16934_v18 }
 0x49b   :  { %v17082_v37 = vpop.f32.mrf.mxu1  ;;  %v17084_v43 = vpop.f32.mrf.mxu0  ;;  %v14300_v13 = vadd.f32 %v16944_v23, %v16940_v21  ;;  %v14363_v20 = vadd.f32 %v16954_v28, %v16950_v26  ;;  %v14344_v21 = vadd.f32 %v16960_v31, %v16956_v29  ;;  %v14407_v26 = vadd.f32 %v16979_v39, %v16966_v34 }
 0x49c   :  { %17248 = vst [vmem:[#allocation27_spill] sm:$0xff] %v17082_v37  ;;  %17249 = vst [vmem:[#allocation28_spill] sm:$0xff] %v17084_v43  ;;  %v14253_v43 = vadd.f32 %v16914_v9, %v16902_v0  ;;  %v14297_v9 = vadd.f32 %v16936_v19, %v16930_v16  ;;  %v14341_v16 = vadd.f32 %v16952_v27, %v16946_v24 }
 0x49d   :  { %v17088_v38 = vpop.f32.mrf.mxu1  ;;  %v17090_v41 = vpop.f32.mrf.mxu0  ;;  %v14385_v24 = vadd.f32 %v16968_v35, %v16962_v32  ;;  %v14388_v28 = vadd.f32 %v16991_v45, %v16981_v40  ;;  %v14429_v35 = vadd.f32 %v17008_v56, %v16996_v49  ;;  %v14451_v39 = vadd.f32 %v17013_v58, %v17006_v55  ;;  %v17252_v55 = vld [vmem:[#allocation13_spill] sm:$0xff] }
 0x49e   :  { %17250 = vst [vmem:[#allocation29_spill] sm:$0xff] %v17088_v38  ;;  %v10806_v38 = vadd.f32 %v14231_v50, %v10765_v11  ;;  %v14432_v40 = vadd.f32 %v17019_v1, %v17015_v61  ;;  %v14473_v56 = vadd.f32 %v17030_v10, %v17021_v2  ;;  %v14454_v44 = vadd.f32 %v17023_v4, %v17017_v62  ;;  %v17254_v61 = vld [vmem:[#allocation16_spill] sm:$0xff]  ;;  %v17259_v4 = vld [vmem:[#allocation19_spill] sm:$0xff] }
 0x49f   :  { %v17092_v57 = vpop.f32.mrf.mxu0  ;;  %v17099_v37 = vpop.f32.mrf.mxu1  ;;  %v14495_v58 = vadd.f32 %v17252_v55, %v17028_v6  ;;  %v17260_v6 = vld [vmem:[#allocation21_spill] sm:$0xff] }
 0x4a0   :  { %17251 = vst [vmem:[#allocation30_spill] sm:$0xff] %v17092_v57  ;;  %v10768_v57 = vadd.f32 %v14212_v46, %v16766_v8  ;;  %v10847_v52 = vadd.f32 %v14253_v43, %v10806_v38 }
 0x4a1   :  { %v17103_v42 = vpop.f32.mrf.mxu1  ;;  %v17105_v48 = vpop.f32.mrf.mxu0 }
 0x4a2   :  { %v10809_v0 = vadd.f32 %v14234_v63, %v10768_v57  ;;  %v10888_v50 = vadd.f32 %v14275_v47, %v10847_v52 }
 0x4a3   :  { %v17114_v54 = vpop.f32.mrf.mxu1  ;;  %v17116_v60 = vpop.f32.mrf.mxu0 }
 0x4a4   :  { %v10850_v8 = vadd.f32 %v14256_v53, %v10809_v0  ;;  %v10929_v7 = vadd.f32 %v14297_v9, %v10888_v50 }
 0x4a5   :  { %v17120_v46 = vpop.f32.mrf.mxu1  ;;  %v17122_v59 = vpop.f32.mrf.mxu0 }
 0x4a6   :  { %v10891_v57 = vadd.f32 %v14278_v3, %v10850_v8  ;;  %v10970_v11 = vadd.f32 %v14319_v12, %v10929_v7 }
 0x4a7   :  { %v17130_v15 = vpop.f32.mrf.mxu0  ;;  %v17134_v19 = vpop.f32.mrf.mxu1 }
 0x4a8   :  { %v10932_v43 = vadd.f32 %v14300_v13, %v10891_v57  ;;  %v11011_v18 = vadd.f32 %v14341_v16, %v10970_v11  ;;  %v17253_v13 = vld [vmem:[#allocation14_spill] sm:$0xff]  ;;  %v17255_v16 = vld [vmem:[#allocation17_spill] sm:$0xff]  ;;  %v17256_v11 = vld [vmem:[#allocation20_spill] sm:$0xff] }
 0x4a9   :  { %v17136_v38 = vpop.f32.mrf.mxu1  ;;  %v17138_v14 = vpop.f32.mrf.mxu0  ;;  %v14476_v1 = vadd.f32 %v17254_v61, %v17253_v13  ;;  %v17268_v13 = vld [vmem:[#allocation30_spill] sm:$0xff] }
 0x4aa   :  { %v10973_v23 = vadd.f32 %v14322_v17, %v10932_v43  ;;  %v11052_v52 = vadd.f32 %v14363_v20, %v11011_v18  ;;  %v14517_v43 = vadd.f32 %v17256_v11, %v17255_v16  ;;  %v17269_v11 = vld [vmem:[#allocation29_spill] sm:$0xff] }
 0x4ab   :  { %v17148_v27 = vpop.f32.mrf.mxu1  ;;  %v17150_v63 = vpop.f32.mrf.mxu0 }
 0x4ac   :  { %v11014_v47 = vadd.f32 %v14344_v21, %v10973_v23  ;;  %v11093_v25 = vadd.f32 %v14385_v24, %v11052_v52  ;;  %v17257_v21 = vld [vmem:[#allocation15_spill] sm:$0xff]  ;;  %v17258_v23 = vld [vmem:[#allocation18_spill] sm:$0xff]  ;;  %v14539_v52 = vadd.f32 %v17066_v5, %v17259_v4  ;;  %v17267_v5 = vld [vmem:[#allocation28_spill] sm:$0xff] }
 0x4ad   :  { %v17158_v29 = vpop.f32.mrf.mxu1  ;;  %v17160_v31 = vpop.f32.mrf.mxu0  ;;  %v14498_v24 = vadd.f32 %v17258_v23, %v17257_v21 }
 0x4ae   :  { %v11055_v32 = vadd.f32 %v14366_v22, %v11014_v47  ;;  %v11134_v0 = vadd.f32 %v14407_v26, %v11093_v25  ;;  %v17261_v47 = vld [vmem:[#allocation23_spill] sm:$0xff] }
 0x4af   :  { %v17166_v30 = vpop.f32.mrf.mxu1  ;;  %v14520_v22 = vadd.f32 %v17261_v47, %v17260_v6 }
 0x4b0   :  { %v11096_v9 = vadd.f32 %v14388_v28, %v11055_v32  ;;  %v11175_v34 = vadd.f32 %v14429_v35, %v11134_v0  ;;  %v17262_v28 = vld [vmem:[#allocation24_spill] sm:$0xff] }
 0x4b1   :  { %v17174_v45 = vpop.f32.mrf.mxu1  ;;  %v14561_v32 = vadd.f32 %v17080_v36, %v17262_v28  ;;  %v14605_v36 = vadd.f32 %v17105_v48, %v17268_v13  ;;  %v14674_v28 = vadd.f32 %v17166_v30, %v17158_v29 }
 0x4b2   :  { %v11137_v49 = vadd.f32 %v14410_v33, %v11096_v9  ;;  %v11216_v8 = vadd.f32 %v14451_v39, %v11175_v34  ;;  %v17263_v34 = vld [vmem:[#allocation22_spill] sm:$0xff]  ;;  %v17264_v39 = vld [vmem:[#allocation25_spill] sm:$0xff] }
 0x4b3   :  { %v14714_v7 = vpop.f32.mrf.mxu1 }
 0x4b4   :  { %v11178_v3 = vadd.f32 %v14432_v40, %v11137_v49  ;;  %v11257_v51 = vadd.f32 %v14473_v56, %v11216_v8  ;;  %v14542_v40 = vadd.f32 %v17264_v39, %v17263_v34  ;;  %v17265_v56 = vld [vmem:[#allocation26_spill] sm:$0xff]  ;;  %v17266_v8 = vld [vmem:[#allocation27_spill] sm:$0xff] }
 0x4b5   :  { %v14716_v17 = vpop.f32.mrf.mxu1 }
 0x4b6   :  { %v17164_v53 = vpop.f32.mrf.mxu0  ;;  %v11219_v57 = vadd.f32 %v14454_v44, %v11178_v3  ;;  %v11298_v10 = vadd.f32 %v14495_v58, %v11257_v51  ;;  %v14583_v3 = vadd.f32 %v17266_v8, %v17265_v56  ;;  %v14564_v44 = vadd.f32 %v17090_v41, %v17267_v5 }
 0x4b7   :  { %v14717_v25 = vpop.f32.mrf.mxu1  ;;  %v14608_v41 = vadd.f32 %v17122_v59, %v17116_v60 }
 0x4b8   :  { %v14692_v50 = vpop.f32.mrf.mxu0  ;;  %v11260_v18 = vadd.f32 %v14476_v1, %v11219_v57  ;;  %v11339_v62 = vadd.f32 %v14517_v43, %v11298_v10  ;;  %v14586_v43 = vadd.f32 %v17099_v37, %v17269_v11  ;;  %v14630_v37 = vadd.f32 %v17134_v19, %v17120_v46 }
 0x4b9   :  { %v14693_v59 = vadd.f32 %v14692_v50, %v17164_v53  ;;  %v14715_v46 = vadd.f32 %v14714_v7, %v17174_v45  ;;  %v14718_v53 = vadd.f32 %v14717_v25, %v14716_v17 }
 0x4ba   :  { %v14694_v12 = vpop.f32.mrf.mxu0  ;;  %v11301_v26 = vadd.f32 %v14498_v24, %v11260_v18  ;;  %v11380_v9 = vadd.f32 %v14539_v52, %v11339_v62  ;;  %v14627_v18 = vadd.f32 %v17114_v54, %v17103_v42  ;;  %v14649_v24 = vadd.f32 %v17138_v14, %v17130_v15 }
 0x4bb   :  { %v14671_v42 = vadd.f32 %v17148_v27, %v17136_v38  ;;  %v14652_v54 = vadd.f32 %v17160_v31, %v17150_v63 }
 0x4bc   :  { %v14695_v2 = vpop.f32.mrf.mxu0  ;;  %v11342_v33 = vadd.f32 %v14520_v22, %v11301_v26  ;;  %v11421_v49 = vadd.f32 %v14561_v32, %v11380_v9 }
 0x4bd   :  { %v14696_v19 = vadd.f32 %v14695_v2, %v14694_v12 }
 0x4be   :  { %v11383_v58 = vadd.f32 %v14542_v40, %v11342_v33  ;;  %v11462_v61 = vadd.f32 %v14583_v3, %v11421_v49 }
 0x4c0   :  { %v11424_v1 = vadd.f32 %v14564_v44, %v11383_v58  ;;  %v11503_v10 = vadd.f32 %v14605_v36, %v11462_v61 }
 0x4c2   :  { %v11465_v23 = vadd.f32 %v14586_v43, %v11424_v1  ;;  %v11544_v62 = vadd.f32 %v14627_v18, %v11503_v10 }
 0x4c4   :  { %v11506_v4 = vadd.f32 %v14608_v41, %v11465_v23  ;;  %v11585_v47 = vadd.f32 %v14649_v24, %v11544_v62 }
 0x4c6   :  { %v11547_v60 = vadd.f32 %v14630_v37, %v11506_v4  ;;  %v11626_v14 = vadd.f32 %v14671_v42, %v11585_v47 }
 0x4c8   :  { %v11588_v26 = vadd.f32 %v14652_v54, %v11547_v60  ;;  %v11667_v32 = vadd.f32 %v14693_v59, %v11626_v14  ;;  %v12147_v14 = vld [vmem:[#allocation7 + $0x18] sm:$0xff] }
 0x4c9   :  { %14966 = vmatprep.subr.mxu1 %v12147_v14 }
 0x4ca   :  { %v11629_v38 = vadd.f32 %v14674_v28, %v11588_v26  ;;  %v11708_v63 = vadd.f32 %v14715_v46, %v11667_v32  ;;  %14967 = vmatpush3.msra.mxu1 %v12147_v14  ;;  %v12146_v26 = vld [vmem:[#allocation7 + $0x10] sm:$0xff]  ;;  %v12145_v28 = vld [vmem:[#allocation7 + $0x8] sm:$0xff]  ;;  %v12144_v32 = vld [vmem:[#allocation7] sm:$0xff] }
 0x4cb   :  { %14968 = vmatprep.subr.mxu1 %v12146_v26  ;;  %v13439_v46 = vld [vmem:[#allocation6] ss:$0 sm:$0xff] }
 0x4cc   :  { %v11670_v31 = vadd.f32 %v14696_v19, %v11629_v38  ;;  %14969 = vmatpush3.msra.mxu1 %v12146_v26 }
 0x4cd   :  { %14970 = vmatprep.subr.mxu1 %v12145_v28 }
 0x4ce   :  { %v14757_v35 = vpop.f32.mrf.mxu1  ;;  %v11711_v3 = vadd.f32 %v14718_v53, %v11670_v31  ;;  %14971 = vmatpush3.msra.mxu1 %v12145_v28 }
 0x4cf   :  { %14972 = vmatprep.subr.mxu1 %v12144_v32 }
 0x4d0   :  { %v14758_v51 = vpop.f32.mrf.mxu1  ;;  %14973 = vmatpush3.msra.mxu1 %v12144_v32 }
 0x4d1   :  { %v14759_v40 = vadd.f32 %v14758_v51, %v14757_v35 }
 0x4d2   :  { %v14760_v57 = vpop.f32.mrf.mxu1 }
 0x4d4   :  { %v14761_v48 = vpop.f32.mrf.mxu1 }
 0x4d5   :  { %v14762_v12 = vadd.f32 %v14761_v48, %v14760_v57 }
 0x4d6   :  { %v14735_v20 = vpop.f32.mrf.mxu0 }
 0x4d8   :  { %v14736_v0 = vpop.f32.mrf.mxu0 }
 0x4d9   :  { %v14737_v27 = vadd.f32 %v14736_v0, %v14735_v20 }
 0x4da   :  { %v14738_v55 = vpop.f32.mrf.mxu0 }
 0x4db   :  { %v11749_v50 = vadd.f32 %v14737_v27, %v11708_v63  ;;  %v13440_v63 = vld [vmem:[#allocation9] ss:$0 sm:$0xff] }
 0x4dc   :  { %v14739_v16 = vpop.f32.mrf.mxu0 }
 0x4dd   :  { %v14740_v49 = vadd.f32 %v14739_v16, %v14738_v55  ;;  %v11790_v30 = vadd.f32 %v14759_v40, %v11749_v50 }
 0x4df   :  { %v11752_v5 = vadd.f32 %v14740_v49, %v11711_v3 }
 0x4e1   :  { %v11793_v0 = vadd.f32 %v14762_v12, %v11752_v5 }
 0x4ee   :  { %v14801_v52 = vpop.f32.mrf.mxu1 }
 0x4f0   :  { %v14802_v22 = vpop.f32.mrf.mxu1 }
 0x4f1   :  { %v14803_v44 = vadd.f32 %v14802_v22, %v14801_v52 }
 0x4f2   :  { %v14804_v9 = vpop.f32.mrf.mxu1 }
 0x4f4   :  { %v14805_v39 = vpop.f32.mrf.mxu1 }
 0x4f5   :  { %v14806_v35 = vadd.f32 %v14805_v39, %v14804_v9 }
 0x4f6   :  { %v14779_v21 = vpop.f32.mrf.mxu0 }
 0x4f8   :  { %v14780_v6 = vpop.f32.mrf.mxu0 }
 0x4f9   :  { %v14781_v29 = vadd.f32 %v14780_v6, %v14779_v21 }
 0x4fa   :  { %v14782_v15 = vpop.f32.mrf.mxu0 }
 0x4fb   :  { %v11831_v2 = vadd.f32 %v14781_v29, %v11790_v30 }
 0x4fc   :  { %v14783_v33 = vpop.f32.mrf.mxu0 }
 0x4fd   :  { %v14784_v20 = vadd.f32 %v14783_v33, %v14782_v15  ;;  %v11872_v17 = vadd.f32 %v14803_v44, %v11831_v2 }
 0x4ff   :  { %v11834_v25 = vadd.f32 %v14784_v20, %v11793_v0 }
 0x501   :  { %v11875_v11 = vadd.f32 %v14806_v35, %v11834_v25 }
 0x50e   :  { %v14845_v56 = vpop.f32.mrf.mxu1 }
 0x510   :  { %v14846_v45 = vpop.f32.mrf.mxu1 }
 0x511   :  { %v14847_v55 = vadd.f32 %v14846_v45, %v14845_v56 }
 0x512   :  { %v14848_v13 = vpop.f32.mrf.mxu1 }
 0x514   :  { %v14849_v1 = vpop.f32.mrf.mxu1 }
 0x515   :  { %v14850_v24 = vadd.f32 %v14849_v1, %v14848_v13 }
 0x516   :  { %v14823_v34 = vpop.f32.mrf.mxu0 }
 0x518   :  { %v14824_v8 = vpop.f32.mrf.mxu0 }
 0x519   :  { %v14825_v58 = vadd.f32 %v14824_v8, %v14823_v34 }
 0x51a   :  { %v14826_v7 = vpop.f32.mrf.mxu0 }
 0x51b   :  { %v11913_v51 = vadd.f32 %v14825_v58, %v11872_v17 }
 0x51c   :  { %v14827_v36 = vpop.f32.mrf.mxu0 }
 0x51d   :  { %v14828_v61 = vadd.f32 %v14827_v36, %v14826_v7  ;;  %v11954_v18 = vadd.f32 %v14847_v55, %v11913_v51 }
 0x51f   :  { %v11916_v57 = vadd.f32 %v14828_v61, %v11875_v11 }
 0x521   :  { %v11957_v6 = vadd.f32 %v14850_v24, %v11916_v57 }
 0x52e   :  { %v14889_v43 = vpop.f32.mrf.mxu1 }
 0x530   :  { %v14890_v21 = vpop.f32.mrf.mxu1 }
 0x531   :  { %v14891_v62 = vadd.f32 %v14890_v21, %v14889_v43 }
 0x532   :  { %v14892_v4 = vpop.f32.mrf.mxu1 }
 0x534   :  { %v14893_v42 = vpop.f32.mrf.mxu1 }
 0x535   :  { %v14894_v59 = vadd.f32 %v14893_v42, %v14892_v4 }
 0x536   :  { %v14867_v16 = vpop.f32.mrf.mxu0 }
 0x538   :  { %v14868_v10 = vpop.f32.mrf.mxu0 }
 0x539   :  { %v14869_v41 = vadd.f32 %v14868_v10, %v14867_v16 }
 0x53a   :  { %v14870_v23 = vpop.f32.mrf.mxu0 }
 0x53b   :  { %v11995_v48 = vadd.f32 %v14869_v41, %v11954_v18 }
 0x53c   :  { %v14871_v52 = vpop.f32.mrf.mxu0 }
 0x53d   :  { %v12036_v37 = vadd.f32 %v14891_v62, %v11995_v48  ;;  %v14872_v47 = vadd.f32 %v14871_v52, %v14870_v23 }
 0x53f   :  { %v12042_v54 = vmax.f32 %v12036_v37, 0.0  ;;  %v11998_v60 = vadd.f32 %v14872_v47, %v11957_v6 }
 0x541   :  { %v12039_v22 = vadd.f32 %v14894_v59, %v11998_v60  ;;  %14955 = vmatprep.mubr.f32.mxu0 %v12042_v54 }
 0x543   :  { %v12043_v15 = vmax.f32 %v12039_v22, 0.0 }
 0x545   :  { %14956 = vmatmul.mubr.f32.vlgmr.msra.gmra.mxu0 %v12043_v15 }
 0x605   :  { %v14957_v19 = vpop.f32.mrf.mxu0 }
 0x606   :  { %v12139_v9 = vadd.f32 %v14957_v19, %v13439_v46 }
 0x607   :  { %v12133_v33 = vpop.f32.mrf.mxu0 }
 0x608   :  { %v12134_v38 = vadd.f32 %v13439_v46, %v12133_v33  ;;  %v12143_v34 = vmax.f32 %v12139_v9, 0.0 }
 0x60a   :  { %v12142_v27 = vmax.f32 %v12134_v38, 0.0 }
 0x60c   :  { %14974 = vmatprep.mubr.msk.f32.mxu1 %vm12159_vm0, %v12142_v27 }
 0x60d   :  { %14975 = vmatmul.mubr.msk.f32.vlgmr.msra.gmra.mxu1 %vm12159_vm0, %v12143_v34 }
 0x6cd   :  { %v14976_v31 = vpop.f32.mrf.mxu1 }
 0x6ce   :  { %v12238_v39 = vadd.f32 %v14976_v31, %v13440_v63 }
 0x6cf   :  { %v12232_v53 = vpop.f32.mrf.mxu1 }
 0x6d0   :  { %12242 = vst [vmem:[%s17233_s7 + $0x8] sm:$0xff] %v12238_v39  ;;  %v12233_v50 = vadd.f32 %v13440_v63, %v12232_v53 }
 0x6d2   :  { %12241 = vst [vmem:[%s17233_s7] sm:$0xff] %v12233_v50 }
 0x6d3   :  { %12247 = vsyncpa [#allocation3], 1 }
 0x6d4   :  { %12248 = vsyncpa [#allocation5], 1 }
 0x6d5   :  { %12249 = vsyncpa [#allocation8], 1 }

</bundles_post_ra>
